<compile_context>
chip_gen: v7x
topology: tpu7x:2x2x1
jax: 0.10.0
libtpu: 0.0.40
codegen_flags: <defaults>
</compile_context>

<pallas_src>
import math

import jax
import jax.numpy as jnp
from jax.experimental import pallas as pl
from jax.experimental.pallas import tpu as pltpu

# ----- model dims (small, consistent with Decoder.forward) ------------------
B = 2                       # batch
IH, IW, E = 4, 4, 32        # info spatial dims + info_dim (encoder_dim)
P = IH * IW                 # info num_pixels
RH, RW = 8, 8               # relation spatial dims
R = RH * RW                 # relation num_pixels
EMBED = 16                  # embed_dim
HDIM = 32                   # h_dim (decoder dim)
ADIM = 32                   # attention_dim
VOCAB = 50                  # vocab_size
TMAX = 8                    # caption length (padded)
T_STEPS = TMAX - 1          # static upper bound on max(sent_len)
PRED_PAD = 128              # output slab width (lane-dense)
GPAD = 128                  # each LSTM gate padded to its own 128-lane group
ALPHA_OFF = 64              # alpha packed into lanes [64, 64+P) of the slab
assert ALPHA_OFF >= VOCAB and ALPHA_OFF + P <= PRED_PAD


# ---------------------------------------------------------------------------
# Fused decoder kernel: grid=(1,), unrolled time loop inside the body
# ---------------------------------------------------------------------------
def _decoder_kernel(
        sent_len_ref,                          # (B, 1) int32
        words_ref,                             # (T, B, EMBED)
        feat_ref,                              # (B, P, E)
        att1_ref,                              # (B, P, ADIM)  encoder_att(feature)
        h0_ref, c0_ref, C0_ref,                # (B, HDIM) initial state
        w_dec_ref, b_dec_ref,                  # (HDIM, ADIM), (1, ADIM)
        w_full_ref,                            # (1, ADIM)  full_att weight
        w_gw_ref, w_ga_ref, w_gh_ref, b_g_ref,  # gate weights, (in, 5*GPAD)
        w_mc_ref, w_mC_ref, b_mlp_ref,         # mlp split weights
        w_fc_ref, b_fc_ref,                    # (HDIM, PRED_PAD), (1, PRED_PAD)
        sel_ref,                               # (P, PRED_PAD) alpha lane placer
        out_ref):                              # (T, B, PRED_PAD)
    tsteps = words_ref.shape[0]

    h = h0_ref[...]
    c = c0_ref[...]
    Cm = C0_ref[...]

    # Static (fully unrolled) time loop; per-step data are tiny so live
    # ranges stay small. Weight refs are read at point of use (short ranges).
    for t in range(tsteps):
        word = words_ref[t]                                          # (B, EMBED)

        # ---- Attention: att1 is precomputed & time-invariant ---------------
        att2 = (jnp.dot(h, w_dec_ref[...],
                        preferred_element_type=jnp.float32)
                + b_dec_ref[...])                                    # (B, A)
        att_act = jnp.maximum(att1_ref[...] + att2[:, None, :], 0.0)  # ReLU
        att = jnp.sum(att_act * w_full_ref[...][None, :, :], axis=-1)  # (B, P)
        # full_att bias omitted: softmax over dim=1 is shift-invariant.
        att_max = jnp.max(att, axis=1, keepdims=True)
        att_exp = jnp.exp(att - att_max)
        alpha = att_exp / jnp.sum(att_exp, axis=1, keepdims=True)    # (B, P)
        awe = jnp.sum(feat_ref[...] * alpha[:, :, None], axis=1)     # (B, E)

        # NOTE: PyTorch computes gate = sigmoid(f_beta(h)) but feeds the
        # UNGATED attention_weighted_feature to the LSTM
        # (x = cat(word, attention_weighted_feature)), so f_beta is dead code
        # for the forward outputs and is omitted here (verified vs. source).

        # ---- MS-LSTM cell: three accumulated matmuls into 5 lane-aligned
        #      128-wide gate groups ordered [i, f, o, g1, g2] ----------------
        gates = (jnp.dot(word, w_gw_ref[...],
                         preferred_element_type=jnp.float32)
                 + jnp.dot(awe, w_ga_ref[...],
                           preferred_element_type=jnp.float32)
                 + jnp.dot(h, w_gh_ref[...],
                           preferred_element_type=jnp.float32)
                 + b_g_ref[...])                                     # (B, 5*GPAD)
        i_g = jax.nn.sigmoid(gates[:, 0 * GPAD:0 * GPAD + HDIM])
        f_g = jax.nn.sigmoid(gates[:, 1 * GPAD:1 * GPAD + HDIM])
        o_g = jax.nn.sigmoid(gates[:, 2 * GPAD:2 * GPAD + HDIM])
        g1 = jnp.tanh(gates[:, 3 * GPAD:3 * GPAD + HDIM])
        g2 = jnp.tanh(gates[:, 4 * GPAD:4 * GPAD + HDIM])
        new_c = f_g * c + i_g * g1
        new_C = f_g * Cm + i_g * g2
        mlp_out = (jnp.dot(new_c, w_mc_ref[...],
                           preferred_element_type=jnp.float32)
                   + jnp.dot(new_C, w_mC_ref[...],
                             preferred_element_type=jnp.float32)
                   + b_mlp_ref[...])                                 # (B, H)
        new_h = o_g * jnp.tanh(mlp_out)

        # ---- vocab projection + alpha packed into the same 128-lane slab ---
        # TODO(synk): training-mode nn.Dropout(p=0.5) is not modeled (eval).
        packed = (jnp.dot(new_h, w_fc_ref[...],
                          preferred_element_type=jnp.float32)
                  + jnp.dot(alpha, sel_ref[...],
                            preferred_element_type=jnp.float32)
                  + b_fc_ref[...])                                   # (B, 128)

        # ---- masked lane-dense store: rows with sent_len <= t stay zero ----
        active = sent_len_ref[...] > t                               # (B, 1)
        out_ref[t] = jnp.where(active, packed, 0.0)

        h, c, Cm = new_h, new_c, new_C


def _full(shape):
    """BlockSpec covering the whole array (constant index map, grid=(1,))."""
    nd = len(shape)
    return pl.BlockSpec(shape, lambda i, _nd=nd: (0,) * _nd)


def _decoder_call(sent_len, words_tm, info, att1, h0, c0, C0, p):
    bsz = info.shape[0]
    tsteps = words_tm.shape[0]

    in_specs = [
        _full((bsz, 1)),                                    # sent_len
        _full((tsteps, bsz, EMBED)),                        # words (time-major)
        _full((bsz, P, E)),                                 # info features
        _full((bsz, P, ADIM)),                              # precomputed att1
        _full((bsz, HDIM)), _full((bsz, HDIM)), _full((bsz, HDIM)),  # h0,c0,C0
        _full((HDIM, ADIM)), _full((1, ADIM)),              # decoder_att
        _full((1, ADIM)),                                   # full_att weight
        _full((EMBED, 5 * GPAD)), _full((E, 5 * GPAD)),     # gate weights
        _full((HDIM, 5 * GPAD)), _full((1, 5 * GPAD)),
        _full((HDIM, HDIM)), _full((HDIM, HDIM)), _full((1, HDIM)),  # mlp
        _full((HDIM, PRED_PAD)), _full((1, PRED_PAD)),      # fc (padded)
        _full((P, PRED_PAD)),                               # alpha selector
    ]
    out_specs = pl.BlockSpec((tsteps, bsz, PRED_PAD), lambda i: (0, 0, 0))
    out_shape = jax.ShapeDtypeStruct((tsteps, bsz, PRED_PAD), jnp.float32)

    per_step_flops = 2 * bsz * (HDIM * ADIM + P * ADIM
                                + (EMBED + E + HDIM) * 5 * GPAD
                                + 2 * HDIM * HDIM
                                + (HDIM + P) * PRED_PAD)
    cost = pl.CostEstimate(
        flops=int(tsteps * per_step_flops),
        transcendentals=int(tsteps * bsz * (P + 5 * HDIM + HDIM)),
        bytes_accessed=int(4 * ((EMBED + E + HDIM + 1) * 5 * GPAD
                                + HDIM * ADIM + 2 * HDIM * HDIM
                                + (HDIM + P + 1) * PRED_PAD
                                + bsz * (2 * P * E + P * ADIM + 3 * HDIM + 1)
                                + tsteps * bsz * (EMBED + PRED_PAD))),
    )

    return pl.pallas_call(
        _decoder_kernel,
        out_shape=out_shape,
        grid=(1,),
        in_specs=in_specs,
        out_specs=out_specs,
        compiler_params=pltpu.CompilerParams(
            dimension_semantics=("arbitrary",)),
        cost_estimate=cost,
    )(sent_len, words_tm, info, att1, h0, c0, C0,
      p['w_dec'], p['b_dec'], p['w_full'],
      p['w_gate_word'], p['w_gate_awe'], p['w_gate_h'], p['b_gate'],
      p['w_mlp_c'], p['w_mlp_C'], p['b_mlp'],
      p['w_fc_pad'], p['b_fc_pad'], p['sel_alpha'])


# ---------------------------------------------------------------------------
# Parameters (deterministic, PyTorch-style init scales)
# ---------------------------------------------------------------------------
def _uniform(key, shape, scale):
    return jax.random.uniform(key, shape, jnp.float32,
                              minval=-scale, maxval=scale)


def _pad_gate_groups(w):
    """(rows, 5*HDIM) -> (rows, 5*GPAD): each gate in its own 128-lane group."""
    rows = w.shape[0]
    out = jnp.zeros((rows, 5 * GPAD), jnp.float32)
    for k in range(5):
        out = out.at[:, k * GPAD:k * GPAD + HDIM].set(
            w[:, k * HDIM:(k + 1) * HDIM])
    return out


def init_params(key):
    keys = jax.random.split(key, 20)
    it = iter(keys)
    s_info = 1.0 / math.sqrt(P * E)
    s_rel = 1.0 / math.sqrt(R)
    s_e = 1.0 / math.sqrt(E)
    s_h = 1.0 / math.sqrt(HDIM)
    s_mlp = 1.0 / math.sqrt(2 * HDIM)
    p = {}
    p['embedding'] = _uniform(next(it), (VOCAB, EMBED), 0.1)
    # init-state linears (applied in the XLA wrapper, hoisted out of the kernel)
    p['w_init_h'] = _uniform(next(it), (P * E, HDIM), s_info)
    p['b_init_h'] = _uniform(next(it), (1, HDIM), s_info)
    p['w_init_c'] = _uniform(next(it), (P * E, HDIM), s_info)
    p['b_init_c'] = _uniform(next(it), (1, HDIM), s_info)
    p['w_init_C'] = _uniform(next(it), (R, HDIM), s_rel)
    p['b_init_C'] = _uniform(next(it), (1, HDIM), s_rel)
    # attention (encoder_att applied in wrapper; decoder_att/full_att in-kernel)
    p['w_enc'] = _uniform(next(it), (E, ADIM), s_e)
    p['b_enc'] = _uniform(next(it), (1, ADIM), s_e)
    p['w_dec'] = _uniform(next(it), (HDIM, ADIM), s_h)
    p['b_dec'] = _uniform(next(it), (1, ADIM), s_h)
    p['w_full'] = _uniform(next(it), (1, ADIM), 1.0 / math.sqrt(ADIM))
    # full_att bias omitted: it is a per-row constant shift and softmax(dim=1)
    # is shift-invariant, so it cannot affect alpha (the only consumer).
    # MS-LSTM cell: raw fused weight, rows ordered [word | awe | h], gate
    # columns ordered [i, f, o, g1, g2]; then split per input and lane-padded.
    XDIM = EMBED + E + HDIM
    w_lstm = _uniform(next(it), (XDIM, 5 * HDIM), s_h)
    b_lstm = _uniform(next(it), (1, 5 * HDIM), s_h)
    p['w_gate_word'] = _pad_gate_groups(w_lstm[:EMBED])
    p['w_gate_awe'] = _pad_gate_groups(w_lstm[EMBED:EMBED + E])
    p['w_gate_h'] = _pad_gate_groups(w_lstm[EMBED + E:])
    p['b_gate'] = _pad_gate_groups(b_lstm)
    # mlp: (2H, H) weight split into the new_c / new_C row blocks
    w_mlp = _uniform(next(it), (2 * HDIM, HDIM), s_mlp)
    p['w_mlp_c'] = w_mlp[:HDIM]
    p['w_mlp_C'] = w_mlp[HDIM:]
    p['b_mlp'] = _uniform(next(it), (1, HDIM), s_mlp)
    # output head (fc): weight U(-0.1, 0.1), bias 0 as in init_weights();
    # padded to 128 output lanes (extra columns zero) for lane-dense stores.
    w_fc = _uniform(next(it), (HDIM, VOCAB), 0.1)
    p['w_fc_pad'] = jnp.pad(w_fc, ((0, 0), (0, PRED_PAD - VOCAB)))
    p['b_fc_pad'] = jnp.zeros((1, PRED_PAD), jnp.float32)
    # alpha lane-placement matrix: puts alpha into lanes [ALPHA_OFF, +P)
    sel = jnp.zeros((P, PRED_PAD), jnp.float32)
    p['sel_alpha'] = sel.at[:, ALPHA_OFF:ALPHA_OFF + P].set(
        jnp.eye(P, dtype=jnp.float32))
    return p


# ---------------------------------------------------------------------------
# Decoder.forward
# ---------------------------------------------------------------------------
def decoder_forward(params, info, relation, captions, captions_lens):
    batch = captions.shape[0]
    info = info.reshape(batch, -1, E)              # (B, P, E)
    relation = relation.reshape(batch, -1)         # (B, R)

    lens = captions_lens[:, 0]                     # squeeze(1)
    # NOTE: argsort(-lens) is stable; torch.sort(descending=True) may break
    # ties differently (only matters when caption lengths are equal).
    sort_index = jnp.argsort(-lens)
    lens = lens[sort_index]
    captions = captions[sort_index]
    info = info[sort_index]
    relation = relation[sort_index]

    # Static loop extent TMAX-1 (no host sync); per-sample lengths are passed
    # to the kernel and stores are masked there, so rows past a sample's
    # length (and columns past the true max length) are exact zeros.
    # TODO(synk): PyTorch sizes predictions/alphas to the data-dependent
    # max(sent_len); here the static upper bound TMAX-1 is used instead.
    sent_len = (lens - 1).astype(jnp.int32)[:, None]           # (B, 1)

    words = params['embedding'][captions]                      # (B, TMAX, EMBED)
    words_tm = jnp.transpose(words[:, :T_STEPS, :], (1, 0, 2))  # (T, B, EMBED)
    info_flat = info.reshape(batch, -1)                        # (B, P*E)

    # One-time work hoisted into XLA: initial state + time-invariant att1.
    h0 = info_flat @ params['w_init_h'] + params['b_init_h']
    c0 = info_flat @ params['w_init_c'] + params['b_init_c']
    C0 = relation @ params['w_init_C'] + params['b_init_C']
    att1 = (jnp.einsum('bpe,ea->bpa', info, params['w_enc'])
            + params['b_enc'])                                 # (B, P, A)

    out_tm = _decoder_call(sent_len, words_tm, info, att1, h0, c0, C0, params)

    out_bt = jnp.transpose(out_tm, (1, 0, 2))                  # (B, T, 128)
    predictions = out_bt[:, :, :VOCAB]
    alphas = out_bt[:, :, ALPHA_OFF:ALPHA_OFF + P]
    return predictions, alphas, sort_index


# ---------------------------------------------------------------------------
if __name__ == "__main__":
    key = jax.random.PRNGKey(0)
    kp, kinfo, krel, kcap = jax.random.split(key, 4)

    params = init_params(kp)
    info = jax.random.normal(kinfo, (B, IH, IW, E), jnp.float32)
    relation = jax.random.normal(krel, (B, RH, RW), jnp.float32)
    captions = jax.random.randint(kcap, (B, TMAX), 0, VOCAB, dtype=jnp.int32)
    captions_lens = jnp.array([[5], [8]], dtype=jnp.int32)

    fwd = jax.jit(decoder_forward)
    preds, alphas, sort_index = fwd(params, info, relation, captions,
                                    captions_lens)
    jax.block_until_ready((preds, alphas, sort_index))

    assert preds.shape == (B, T_STEPS, VOCAB)
    assert alphas.shape == (B, T_STEPS, P)
    print("KERNEL_OK")
</pallas_src>

<mosaic_0001>
module attributes {stable_mosaic.version = 11 : i64} {
  func.func @_decoder_kernel(%arg0: i32, %arg1: memref<2x1xi32, #tpu.memory_space<vmem>>, %arg2: memref<7x2x16xf32, #tpu.memory_space<vmem>>, %arg3: memref<2x16x32xf32, #tpu.memory_space<vmem>>, %arg4: memref<2x16x32xf32, #tpu.memory_space<vmem>>, %arg5: memref<2x32xf32, #tpu.memory_space<vmem>>, %arg6: memref<2x32xf32, #tpu.memory_space<vmem>>, %arg7: memref<2x32xf32, #tpu.memory_space<vmem>>, %arg8: memref<32x32xf32, #tpu.memory_space<vmem>>, %arg9: memref<1x32xf32, #tpu.memory_space<vmem>>, %arg10: memref<1x32xf32, #tpu.memory_space<vmem>>, %arg11: memref<16x640xf32, #tpu.memory_space<vmem>>, %arg12: memref<32x640xf32, #tpu.memory_space<vmem>>, %arg13: memref<32x640xf32, #tpu.memory_space<vmem>>, %arg14: memref<1x640xf32, #tpu.memory_space<vmem>>, %arg15: memref<32x32xf32, #tpu.memory_space<vmem>>, %arg16: memref<32x32xf32, #tpu.memory_space<vmem>>, %arg17: memref<1x32xf32, #tpu.memory_space<vmem>>, %arg18: memref<32x128xf32, #tpu.memory_space<vmem>>, %arg19: memref<1x128xf32, #tpu.memory_space<vmem>>, %arg20: memref<16x128xf32, #tpu.memory_space<vmem>>, %arg21: memref<7x2x128xf32, #tpu.memory_space<vmem>>) attributes {dimension_semantics = [#tpu.dimension_semantics<arbitrary>], iteration_bounds = array<i64: 1>, scalar_prefetch = 0 : i64, scratch_operands = 0 : i64, tpu.core_type = #tpu.core_type<tc>, window_params = [{pipeline_mode = #tpu.pipeline_mode<synchronous>, transform_indices = @transform_0, window_bounds = array<i64: 2, 1>}, {pipeline_mode = #tpu.pipeline_mode<synchronous>, transform_indices = @transform_1, window_bounds = array<i64: 7, 2, 16>}, {pipeline_mode = #tpu.pipeline_mode<synchronous>, transform_indices = @transform_2, window_bounds = array<i64: 2, 16, 32>}, {pipeline_mode = #tpu.pipeline_mode<synchronous>, transform_indices = @transform_3, window_bounds = array<i64: 2, 16, 32>}, {pipeline_mode = #tpu.pipeline_mode<synchronous>, transform_indices = @transform_4, window_bounds = array<i64: 2, 32>}, {pipeline_mode = #tpu.pipeline_mode<synchronous>, transform_indices = @transform_5, window_bounds = array<i64: 2, 32>}, {pipeline_mode = #tpu.pipeline_mode<synchronous>, transform_indices = @transform_6, window_bounds = array<i64: 2, 32>}, {pipeline_mode = #tpu.pipeline_mode<synchronous>, transform_indices = @transform_7, window_bounds = array<i64: 32, 32>}, {pipeline_mode = #tpu.pipeline_mode<synchronous>, transform_indices = @transform_8, window_bounds = array<i64: 1, 32>}, {pipeline_mode = #tpu.pipeline_mode<synchronous>, transform_indices = @transform_9, window_bounds = array<i64: 1, 32>}, {pipeline_mode = #tpu.pipeline_mode<synchronous>, transform_indices = @transform_10, window_bounds = array<i64: 16, 640>}, {pipeline_mode = #tpu.pipeline_mode<synchronous>, transform_indices = @transform_11, window_bounds = array<i64: 32, 640>}, {pipeline_mode = #tpu.pipeline_mode<synchronous>, transform_indices = @transform_12, window_bounds = array<i64: 32, 640>}, {pipeline_mode = #tpu.pipeline_mode<synchronous>, transform_indices = @transform_13, window_bounds = array<i64: 1, 640>}, {pipeline_mode = #tpu.pipeline_mode<synchronous>, transform_indices = @transform_14, window_bounds = array<i64: 32, 32>}, {pipeline_mode = #tpu.pipeline_mode<synchronous>, transform_indices = @transform_15, window_bounds = array<i64: 32, 32>}, {pipeline_mode = #tpu.pipeline_mode<synchronous>, transform_indices = @transform_16, window_bounds = array<i64: 1, 32>}, {pipeline_mode = #tpu.pipeline_mode<synchronous>, transform_indices = @transform_17, window_bounds = array<i64: 32, 128>}, {pipeline_mode = #tpu.pipeline_mode<synchronous>, transform_indices = @transform_18, window_bounds = array<i64: 1, 128>}, {pipeline_mode = #tpu.pipeline_mode<synchronous>, transform_indices = @transform_19, window_bounds = array<i64: 16, 128>}, {pipeline_mode = #tpu.pipeline_mode<synchronous>, transform_indices = @transform_20, window_bounds = array<i64: 7, 2, 128>}]} {
    %c0 = arith.constant 0 : index
    %c0_0 = arith.constant 0 : index
    %0 = vector.load %arg5[%c0, %c0_0] : memref<2x32xf32, #tpu.memory_space<vmem>>, vector<2x32xf32>
    %c0_1 = arith.constant 0 : index
    %c0_2 = arith.constant 0 : index
    %1 = vector.load %arg6[%c0_1, %c0_2] : memref<2x32xf32, #tpu.memory_space<vmem>>, vector<2x32xf32>
    %c0_3 = arith.constant 0 : index
    %c0_4 = arith.constant 0 : index
    %2 = vector.load %arg7[%c0_3, %c0_4] : memref<2x32xf32, #tpu.memory_space<vmem>>, vector<2x32xf32>
    %c0_5 = arith.constant 0 : index
    %c0_6 = arith.constant 0 : index
    %c0_7 = arith.constant 0 : index
    %3 = vector.load %arg2[%c0_5, %c0_6, %c0_7] : memref<7x2x16xf32, #tpu.memory_space<vmem>>, vector<1x2x16xf32>
    %4 = vector.shape_cast %3 : vector<1x2x16xf32> to vector<2x16xf32>
    %c0_8 = arith.constant 0 : index
    %c0_9 = arith.constant 0 : index
    %5 = vector.load %arg8[%c0_8, %c0_9] : memref<32x32xf32, #tpu.memory_space<vmem>>, vector<32x32xf32>
    %cst = arith.constant dense<0.000000e+00> : vector<2x32xf32>
    %6 = tpu.matmul %0, %5, %cst {dimension_numbers = #tpu.dot_dimension_numbers<[1], [0], [0], [1], [0, 0, 1, 1], [], []>} : vector<2x32xf32>, vector<32x32xf32>, vector<2x32xf32> -> vector<2x32xf32>
    %c0_10 = arith.constant 0 : index
    %c0_11 = arith.constant 0 : index
    %7 = vector.load %arg9[%c0_10, %c0_11] : memref<1x32xf32, #tpu.memory_space<vmem>>, vector<1x32xf32>
    %8 = vector.broadcast %7 : vector<1x32xf32> to vector<2x32xf32>
    %9 = arith.addf %6, %8 : vector<2x32xf32>
    %c0_12 = arith.constant 0 : index
    %c0_13 = arith.constant 0 : index
    %c0_14 = arith.constant 0 : index
    %10 = vector.load %arg4[%c0_12, %c0_13, %c0_14] : memref<2x16x32xf32, #tpu.memory_space<vmem>>, vector<2x16x32xf32>
    %11 = vector.shape_cast %9 : vector<2x32xf32> to vector<2x1x32xf32>
    %12 = vector.broadcast %11 : vector<2x1x32xf32> to vector<2x16x32xf32>
    %13 = arith.addf %10, %12 : vector<2x16x32xf32>
    %cst_15 = arith.constant 0.000000e+00 : f32
    %14 = vector.broadcast %cst_15 : f32 to vector<2x16x32xf32>
    %15 = arith.maximumf %13, %14 : vector<2x16x32xf32>
    %c0_16 = arith.constant 0 : index
    %c0_17 = arith.constant 0 : index
    %16 = vector.load %arg10[%c0_16, %c0_17] : memref<1x32xf32, #tpu.memory_space<vmem>>, vector<1x32xf32>
    %17 = vector.shape_cast %16 : vector<1x32xf32> to vector<1x1x32xf32>
    %18 = vector.broadcast %17 : vector<1x1x32xf32> to vector<2x16x32xf32>
    %19 = arith.mulf %15, %18 : vector<2x16x32xf32>
    %cst_18 = arith.constant dense<0.000000e+00> : vector<2x16xf32>
    %20 = vector.multi_reduction <add>, %19, %cst_18 [2] : vector<2x16x32xf32> to vector<2x16xf32>
    %cst_19 = arith.constant dense<0xFF800000> : vector<2xf32>
    %21 = vector.multi_reduction <maximumf>, %20, %cst_19 [1] : vector<2x16xf32> to vector<2xf32>
    %22 = vector.shape_cast %21 : vector<2xf32> to vector<2x1xf32>
    %23 = vector.broadcast %22 : vector<2x1xf32> to vector<2x16xf32>
    %24 = arith.subf %20, %23 : vector<2x16xf32>
    %25 = math.exp %24 : vector<2x16xf32>
    %cst_20 = arith.constant dense<0.000000e+00> : vector<2xf32>
    %26 = vector.multi_reduction <add>, %25, %cst_20 [1] : vector<2x16xf32> to vector<2xf32>
    %27 = vector.shape_cast %26 : vector<2xf32> to vector<2x1xf32>
    %28 = vector.broadcast %27 : vector<2x1xf32> to vector<2x16xf32>
    %29 = arith.divf %25, %28 : vector<2x16xf32>
    %c0_21 = arith.constant 0 : index
    %c0_22 = arith.constant 0 : index
    %c0_23 = arith.constant 0 : index
    %30 = vector.load %arg3[%c0_21, %c0_22, %c0_23] : memref<2x16x32xf32, #tpu.memory_space<vmem>>, vector<2x16x32xf32>
    %31 = vector.shape_cast %29 : vector<2x16xf32> to vector<2x16x1xf32>
    %32 = vector.broadcast %31 : vector<2x16x1xf32> to vector<2x16x32xf32>
    %33 = arith.mulf %30, %32 : vector<2x16x32xf32>
    %cst_24 = arith.constant dense<0.000000e+00> : vector<2x32xf32>
    %34 = vector.multi_reduction <add>, %33, %cst_24 [1] : vector<2x16x32xf32> to vector<2x32xf32>
    %c0_25 = arith.constant 0 : index
    %c0_26 = arith.constant 0 : index
    %35 = vector.load %arg11[%c0_25, %c0_26] : memref<16x640xf32, #tpu.memory_space<vmem>>, vector<16x640xf32>
    %cst_27 = arith.constant dense<0.000000e+00> : vector<2x640xf32>
    %36 = tpu.matmul %4, %35, %cst_27 {dimension_numbers = #tpu.dot_dimension_numbers<[1], [0], [0], [1], [0, 0, 1, 1], [], []>} : vector<2x16xf32>, vector<16x640xf32>, vector<2x640xf32> -> vector<2x640xf32>
    %c0_28 = arith.constant 0 : index
    %c0_29 = arith.constant 0 : index
    %37 = vector.load %arg12[%c0_28, %c0_29] : memref<32x640xf32, #tpu.memory_space<vmem>>, vector<32x640xf32>
    %cst_30 = arith.constant dense<0.000000e+00> : vector<2x640xf32>
    %38 = tpu.matmul %34, %37, %cst_30 {dimension_numbers = #tpu.dot_dimension_numbers<[1], [0], [0], [1], [0, 0, 1, 1], [], []>} : vector<2x32xf32>, vector<32x640xf32>, vector<2x640xf32> -> vector<2x640xf32>
    %39 = arith.addf %36, %38 : vector<2x640xf32>
    %c0_31 = arith.constant 0 : index
    %c0_32 = arith.constant 0 : index
    %40 = vector.load %arg13[%c0_31, %c0_32] : memref<32x640xf32, #tpu.memory_space<vmem>>, vector<32x640xf32>
    %cst_33 = arith.constant dense<0.000000e+00> : vector<2x640xf32>
    %41 = tpu.matmul %0, %40, %cst_33 {dimension_numbers = #tpu.dot_dimension_numbers<[1], [0], [0], [1], [0, 0, 1, 1], [], []>} : vector<2x32xf32>, vector<32x640xf32>, vector<2x640xf32> -> vector<2x640xf32>
    %42 = arith.addf %39, %41 : vector<2x640xf32>
    %c0_34 = arith.constant 0 : index
    %c0_35 = arith.constant 0 : index
    %43 = vector.load %arg14[%c0_34, %c0_35] : memref<1x640xf32, #tpu.memory_space<vmem>>, vector<1x640xf32>
    %44 = vector.broadcast %43 : vector<1x640xf32> to vector<2x640xf32>
    %45 = arith.addf %42, %44 : vector<2x640xf32>
    %46 = vector.extract_strided_slice %45 {offsets = [0, 0], sizes = [2, 32], strides = [1, 1]} : vector<2x640xf32> to vector<2x32xf32>
    %47 = arith.negf %46 : vector<2x32xf32>
    %48 = math.exp %47 : vector<2x32xf32>
    %cst_36 = arith.constant 1.000000e+00 : f32
    %49 = vector.broadcast %cst_36 : f32 to vector<2x32xf32>
    %50 = arith.addf %49, %48 : vector<2x32xf32>
    %51 = arith.divf %49, %50 : vector<2x32xf32>
    %52 = vector.extract_strided_slice %45 {offsets = [0, 128], sizes = [2, 32], strides = [1, 1]} : vector<2x640xf32> to vector<2x32xf32>
    %53 = arith.negf %52 : vector<2x32xf32>
    %54 = math.exp %53 : vector<2x32xf32>
    %cst_37 = arith.constant 1.000000e+00 : f32
    %55 = vector.broadcast %cst_37 : f32 to vector<2x32xf32>
    %56 = arith.addf %55, %54 : vector<2x32xf32>
    %57 = arith.divf %55, %56 : vector<2x32xf32>
    %58 = vector.extract_strided_slice %45 {offsets = [0, 256], sizes = [2, 32], strides = [1, 1]} : vector<2x640xf32> to vector<2x32xf32>
    %59 = arith.negf %58 : vector<2x32xf32>
    %60 = math.exp %59 : vector<2x32xf32>
    %cst_38 = arith.constant 1.000000e+00 : f32
    %61 = vector.broadcast %cst_38 : f32 to vector<2x32xf32>
    %62 = arith.addf %61, %60 : vector<2x32xf32>
    %63 = arith.divf %61, %62 : vector<2x32xf32>
    %64 = vector.extract_strided_slice %45 {offsets = [0, 384], sizes = [2, 32], strides = [1, 1]} : vector<2x640xf32> to vector<2x32xf32>
    %65 = math.tanh %64 : vector<2x32xf32>
    %66 = vector.extract_strided_slice %45 {offsets = [0, 512], sizes = [2, 32], strides = [1, 1]} : vector<2x640xf32> to vector<2x32xf32>
    %67 = math.tanh %66 : vector<2x32xf32>
    %68 = arith.mulf %57, %1 : vector<2x32xf32>
    %69 = arith.mulf %51, %65 : vector<2x32xf32>
    %70 = arith.addf %68, %69 : vector<2x32xf32>
    %71 = arith.mulf %57, %2 : vector<2x32xf32>
    %72 = arith.mulf %51, %67 : vector<2x32xf32>
    %73 = arith.addf %71, %72 : vector<2x32xf32>
    %c0_39 = arith.constant 0 : index
    %c0_40 = arith.constant 0 : index
    %74 = vector.load %arg15[%c0_39, %c0_40] : memref<32x32xf32, #tpu.memory_space<vmem>>, vector<32x32xf32>
    %cst_41 = arith.constant dense<0.000000e+00> : vector<2x32xf32>
    %75 = tpu.matmul %70, %74, %cst_41 {dimension_numbers = #tpu.dot_dimension_numbers<[1], [0], [0], [1], [0, 0, 1, 1], [], []>} : vector<2x32xf32>, vector<32x32xf32>, vector<2x32xf32> -> vector<2x32xf32>
    %c0_42 = arith.constant 0 : index
    %c0_43 = arith.constant 0 : index
    %76 = vector.load %arg16[%c0_42, %c0_43] : memref<32x32xf32, #tpu.memory_space<vmem>>, vector<32x32xf32>
    %cst_44 = arith.constant dense<0.000000e+00> : vector<2x32xf32>
    %77 = tpu.matmul %73, %76, %cst_44 {dimension_numbers = #tpu.dot_dimension_numbers<[1], [0], [0], [1], [0, 0, 1, 1], [], []>} : vector<2x32xf32>, vector<32x32xf32>, vector<2x32xf32> -> vector<2x32xf32>
    %78 = arith.addf %75, %77 : vector<2x32xf32>
    %c0_45 = arith.constant 0 : index
    %c0_46 = arith.constant 0 : index
    %79 = vector.load %arg17[%c0_45, %c0_46] : memref<1x32xf32, #tpu.memory_space<vmem>>, vector<1x32xf32>
    %80 = vector.broadcast %79 : vector<1x32xf32> to vector<2x32xf32>
    %81 = arith.addf %78, %80 : vector<2x32xf32>
    %82 = math.tanh %81 : vector<2x32xf32>
    %83 = arith.mulf %63, %82 : vector<2x32xf32>
    %c0_47 = arith.constant 0 : index
    %c0_48 = arith.constant 0 : index
    %84 = vector.load %arg18[%c0_47, %c0_48] : memref<32x128xf32, #tpu.memory_space<vmem>>, vector<32x128xf32>
    %cst_49 = arith.constant dense<0.000000e+00> : vector<2x128xf32>
    %85 = tpu.matmul %83, %84, %cst_49 {dimension_numbers = #tpu.dot_dimension_numbers<[1], [0], [0], [1], [0, 0, 1, 1], [], []>} : vector<2x32xf32>, vector<32x128xf32>, vector<2x128xf32> -> vector<2x128xf32>
    %c0_50 = arith.constant 0 : index
    %c0_51 = arith.constant 0 : index
    %86 = vector.load %arg20[%c0_50, %c0_51] : memref<16x128xf32, #tpu.memory_space<vmem>>, vector<16x128xf32>
    %cst_52 = arith.constant dense<0.000000e+00> : vector<2x128xf32>
    %87 = tpu.matmul %29, %86, %cst_52 {dimension_numbers = #tpu.dot_dimension_numbers<[1], [0], [0], [1], [0, 0, 1, 1], [], []>} : vector<2x16xf32>, vector<16x128xf32>, vector<2x128xf32> -> vector<2x128xf32>
    %88 = arith.addf %85, %87 : vector<2x128xf32>
    %c0_53 = arith.constant 0 : index
    %c0_54 = arith.constant 0 : index
    %89 = vector.load %arg19[%c0_53, %c0_54] : memref<1x128xf32, #tpu.memory_space<vmem>>, vector<1x128xf32>
    %90 = vector.broadcast %89 : vector<1x128xf32> to vector<2x128xf32>
    %91 = arith.addf %88, %90 : vector<2x128xf32>
    %c0_55 = arith.constant 0 : index
    %c0_56 = arith.constant 0 : index
    %92 = vector.load %arg1[%c0_55, %c0_56] : memref<2x1xi32, #tpu.memory_space<vmem>>, vector<2x1xi32>
    %c0_i32 = arith.constant 0 : i32
    %93 = vector.broadcast %c0_i32 : i32 to vector<2x1xi32>
    %94 = arith.cmpi sgt, %92, %93 : vector<2x1xi32>
    %cst_57 = arith.constant 0.000000e+00 : f32
    %95 = vector.shape_cast %94 : vector<2x1xi1> to vector<2x1xi1>
    %96 = vector.broadcast %95 : vector<2x1xi1> to vector<2x128xi1>
    %97 = vector.broadcast %cst_57 : f32 to vector<2x128xf32>
    %98 = arith.select %96, %91, %97 : vector<2x128xi1>, vector<2x128xf32>
    %c0_58 = arith.constant 0 : index
    %c0_59 = arith.constant 0 : index
    %c0_60 = arith.constant 0 : index
    %99 = vector.load %arg21[%c0_58, %c0_59, %c0_60] : memref<7x2x128xf32, #tpu.memory_space<vmem>>, vector<1x2x128xf32>
    %100 = vector.shape_cast %99 : vector<1x2x128xf32> to vector<2x128xf32>
    %101 = vector.shape_cast %98 : vector<2x128xf32> to vector<1x2x128xf32>
    tpu.vector_store %arg21[%c0_58, %c0_59, %c0_60], %101 {strides = array<i32>} : memref<7x2x128xf32, #tpu.memory_space<vmem>>, vector<1x2x128xf32>,
    %c1 = arith.constant 1 : index
    %c0_61 = arith.constant 0 : index
    %c0_62 = arith.constant 0 : index
    %102 = vector.load %arg2[%c1, %c0_61, %c0_62] : memref<7x2x16xf32, #tpu.memory_space<vmem>>, vector<1x2x16xf32>
    %103 = vector.shape_cast %102 : vector<1x2x16xf32> to vector<2x16xf32>
    %c0_63 = arith.constant 0 : index
    %c0_64 = arith.constant 0 : index
    %104 = vector.load %arg8[%c0_63, %c0_64] : memref<32x32xf32, #tpu.memory_space<vmem>>, vector<32x32xf32>
    %cst_65 = arith.constant dense<0.000000e+00> : vector<2x32xf32>
    %105 = tpu.matmul %83, %104, %cst_65 {dimension_numbers = #tpu.dot_dimension_numbers<[1], [0], [0], [1], [0, 0, 1, 1], [], []>} : vector<2x32xf32>, vector<32x32xf32>, vector<2x32xf32> -> vector<2x32xf32>
    %c0_66 = arith.constant 0 : index
    %c0_67 = arith.constant 0 : index
    %106 = vector.load %arg9[%c0_66, %c0_67] : memref<1x32xf32, #tpu.memory_space<vmem>>, vector<1x32xf32>
    %107 = vector.broadcast %106 : vector<1x32xf32> to vector<2x32xf32>
    %108 = arith.addf %105, %107 : vector<2x32xf32>
    %c0_68 = arith.constant 0 : index
    %c0_69 = arith.constant 0 : index
    %c0_70 = arith.constant 0 : index
    %109 = vector.load %arg4[%c0_68, %c0_69, %c0_70] : memref<2x16x32xf32, #tpu.memory_space<vmem>>, vector<2x16x32xf32>
    %110 = vector.shape_cast %108 : vector<2x32xf32> to vector<2x1x32xf32>
    %111 = vector.broadcast %110 : vector<2x1x32xf32> to vector<2x16x32xf32>
    %112 = arith.addf %109, %111 : vector<2x16x32xf32>
    %cst_71 = arith.constant 0.000000e+00 : f32
    %113 = vector.broadcast %cst_71 : f32 to vector<2x16x32xf32>
    %114 = arith.maximumf %112, %113 : vector<2x16x32xf32>
    %c0_72 = arith.constant 0 : index
    %c0_73 = arith.constant 0 : index
    %115 = vector.load %arg10[%c0_72, %c0_73] : memref<1x32xf32, #tpu.memory_space<vmem>>, vector<1x32xf32>
    %116 = vector.shape_cast %115 : vector<1x32xf32> to vector<1x1x32xf32>
    %117 = vector.broadcast %116 : vector<1x1x32xf32> to vector<2x16x32xf32>
    %118 = arith.mulf %114, %117 : vector<2x16x32xf32>
    %cst_74 = arith.constant dense<0.000000e+00> : vector<2x16xf32>
    %119 = vector.multi_reduction <add>, %118, %cst_74 [2] : vector<2x16x32xf32> to vector<2x16xf32>
    %cst_75 = arith.constant dense<0xFF800000> : vector<2xf32>
    %120 = vector.multi_reduction <maximumf>, %119, %cst_75 [1] : vector<2x16xf32> to vector<2xf32>
    %121 = vector.shape_cast %120 : vector<2xf32> to vector<2x1xf32>
    %122 = vector.broadcast %121 : vector<2x1xf32> to vector<2x16xf32>
    %123 = arith.subf %119, %122 : vector<2x16xf32>
    %124 = math.exp %123 : vector<2x16xf32>
    %cst_76 = arith.constant dense<0.000000e+00> : vector<2xf32>
    %125 = vector.multi_reduction <add>, %124, %cst_76 [1] : vector<2x16xf32> to vector<2xf32>
    %126 = vector.shape_cast %125 : vector<2xf32> to vector<2x1xf32>
    %127 = vector.broadcast %126 : vector<2x1xf32> to vector<2x16xf32>
    %128 = arith.divf %124, %127 : vector<2x16xf32>
    %c0_77 = arith.constant 0 : index
    %c0_78 = arith.constant 0 : index
    %c0_79 = arith.constant 0 : index
    %129 = vector.load %arg3[%c0_77, %c0_78, %c0_79] : memref<2x16x32xf32, #tpu.memory_space<vmem>>, vector<2x16x32xf32>
    %130 = vector.shape_cast %128 : vector<2x16xf32> to vector<2x16x1xf32>
    %131 = vector.broadcast %130 : vector<2x16x1xf32> to vector<2x16x32xf32>
    %132 = arith.mulf %129, %131 : vector<2x16x32xf32>
    %cst_80 = arith.constant dense<0.000000e+00> : vector<2x32xf32>
    %133 = vector.multi_reduction <add>, %132, %cst_80 [1] : vector<2x16x32xf32> to vector<2x32xf32>
    %c0_81 = arith.constant 0 : index
    %c0_82 = arith.constant 0 : index
    %134 = vector.load %arg11[%c0_81, %c0_82] : memref<16x640xf32, #tpu.memory_space<vmem>>, vector<16x640xf32>
    %cst_83 = arith.constant dense<0.000000e+00> : vector<2x640xf32>
    %135 = tpu.matmul %103, %134, %cst_83 {dimension_numbers = #tpu.dot_dimension_numbers<[1], [0], [0], [1], [0, 0, 1, 1], [], []>} : vector<2x16xf32>, vector<16x640xf32>, vector<2x640xf32> -> vector<2x640xf32>
    %c0_84 = arith.constant 0 : index
    %c0_85 = arith.constant 0 : index
    %136 = vector.load %arg12[%c0_84, %c0_85] : memref<32x640xf32, #tpu.memory_space<vmem>>, vector<32x640xf32>
    %cst_86 = arith.constant dense<0.000000e+00> : vector<2x640xf32>
    %137 = tpu.matmul %133, %136, %cst_86 {dimension_numbers = #tpu.dot_dimension_numbers<[1], [0], [0], [1], [0, 0, 1, 1], [], []>} : vector<2x32xf32>, vector<32x640xf32>, vector<2x640xf32> -> vector<2x640xf32>
    %138 = arith.addf %135, %137 : vector<2x640xf32>
    %c0_87 = arith.constant 0 : index
    %c0_88 = arith.constant 0 : index
    %139 = vector.load %arg13[%c0_87, %c0_88] : memref<32x640xf32, #tpu.memory_space<vmem>>, vector<32x640xf32>
    %cst_89 = arith.constant dense<0.000000e+00> : vector<2x640xf32>
    %140 = tpu.matmul %83, %139, %cst_89 {dimension_numbers = #tpu.dot_dimension_numbers<[1], [0], [0], [1], [0, 0, 1, 1], [], []>} : vector<2x32xf32>, vector<32x640xf32>, vector<2x640xf32> -> vector<2x640xf32>
    %141 = arith.addf %138, %140 : vector<2x640xf32>
    %c0_90 = arith.constant 0 : index
    %c0_91 = arith.constant 0 : index
    %142 = vector.load %arg14[%c0_90, %c0_91] : memref<1x640xf32, #tpu.memory_space<vmem>>, vector<1x640xf32>
    %143 = vector.broadcast %142 : vector<1x640xf32> to vector<2x640xf32>
    %144 = arith.addf %141, %143 : vector<2x640xf32>
    %145 = vector.extract_strided_slice %144 {offsets = [0, 0], sizes = [2, 32], strides = [1, 1]} : vector<2x640xf32> to vector<2x32xf32>
    %146 = arith.negf %145 : vector<2x32xf32>
    %147 = math.exp %146 : vector<2x32xf32>
    %cst_92 = arith.constant 1.000000e+00 : f32
    %148 = vector.broadcast %cst_92 : f32 to vector<2x32xf32>
    %149 = arith.addf %148, %147 : vector<2x32xf32>
    %150 = arith.divf %148, %149 : vector<2x32xf32>
    %151 = vector.extract_strided_slice %144 {offsets = [0, 128], sizes = [2, 32], strides = [1, 1]} : vector<2x640xf32> to vector<2x32xf32>
    %152 = arith.negf %151 : vector<2x32xf32>
    %153 = math.exp %152 : vector<2x32xf32>
    %cst_93 = arith.constant 1.000000e+00 : f32
    %154 = vector.broadcast %cst_93 : f32 to vector<2x32xf32>
    %155 = arith.addf %154, %153 : vector<2x32xf32>
    %156 = arith.divf %154, %155 : vector<2x32xf32>
    %157 = vector.extract_strided_slice %144 {offsets = [0, 256], sizes = [2, 32], strides = [1, 1]} : vector<2x640xf32> to vector<2x32xf32>
    %158 = arith.negf %157 : vector<2x32xf32>
    %159 = math.exp %158 : vector<2x32xf32>
    %cst_94 = arith.constant 1.000000e+00 : f32
    %160 = vector.broadcast %cst_94 : f32 to vector<2x32xf32>
    %161 = arith.addf %160, %159 : vector<2x32xf32>
    %162 = arith.divf %160, %161 : vector<2x32xf32>
    %163 = vector.extract_strided_slice %144 {offsets = [0, 384], sizes = [2, 32], strides = [1, 1]} : vector<2x640xf32> to vector<2x32xf32>
    %164 = math.tanh %163 : vector<2x32xf32>
    %165 = vector.extract_strided_slice %144 {offsets = [0, 512], sizes = [2, 32], strides = [1, 1]} : vector<2x640xf32> to vector<2x32xf32>
    %166 = math.tanh %165 : vector<2x32xf32>
    %167 = arith.mulf %156, %70 : vector<2x32xf32>
    %168 = arith.mulf %150, %164 : vector<2x32xf32>
    %169 = arith.addf %167, %168 : vector<2x32xf32>
    %170 = arith.mulf %156, %73 : vector<2x32xf32>
    %171 = arith.mulf %150, %166 : vector<2x32xf32>
    %172 = arith.addf %170, %171 : vector<2x32xf32>
    %c0_95 = arith.constant 0 : index
    %c0_96 = arith.constant 0 : index
    %173 = vector.load %arg15[%c0_95, %c0_96] : memref<32x32xf32, #tpu.memory_space<vmem>>, vector<32x32xf32>
    %cst_97 = arith.constant dense<0.000000e+00> : vector<2x32xf32>
    %174 = tpu.matmul %169, %173, %cst_97 {dimension_numbers = #tpu.dot_dimension_numbers<[1], [0], [0], [1], [0, 0, 1, 1], [], []>} : vector<2x32xf32>, vector<32x32xf32>, vector<2x32xf32> -> vector<2x32xf32>
    %c0_98 = arith.constant 0 : index
    %c0_99 = arith.constant 0 : index
    %175 = vector.load %arg16[%c0_98, %c0_99] : memref<32x32xf32, #tpu.memory_space<vmem>>, vector<32x32xf32>
    %cst_100 = arith.constant dense<0.000000e+00> : vector<2x32xf32>
    %176 = tpu.matmul %172, %175, %cst_100 {dimension_numbers = #tpu.dot_dimension_numbers<[1], [0], [0], [1], [0, 0, 1, 1], [], []>} : vector<2x32xf32>, vector<32x32xf32>, vector<2x32xf32> -> vector<2x32xf32>
    %177 = arith.addf %174, %176 : vector<2x32xf32>
    %c0_101 = arith.constant 0 : index
    %c0_102 = arith.constant 0 : index
    %178 = vector.load %arg17[%c0_101, %c0_102] : memref<1x32xf32, #tpu.memory_space<vmem>>, vector<1x32xf32>
    %179 = vector.broadcast %178 : vector<1x32xf32> to vector<2x32xf32>
    %180 = arith.addf %177, %179 : vector<2x32xf32>
    %181 = math.tanh %180 : vector<2x32xf32>
    %182 = arith.mulf %162, %181 : vector<2x32xf32>
    %c0_103 = arith.constant 0 : index
    %c0_104 = arith.constant 0 : index
    %183 = vector.load %arg18[%c0_103, %c0_104] : memref<32x128xf32, #tpu.memory_space<vmem>>, vector<32x128xf32>
    %cst_105 = arith.constant dense<0.000000e+00> : vector<2x128xf32>
    %184 = tpu.matmul %182, %183, %cst_105 {dimension_numbers = #tpu.dot_dimension_numbers<[1], [0], [0], [1], [0, 0, 1, 1], [], []>} : vector<2x32xf32>, vector<32x128xf32>, vector<2x128xf32> -> vector<2x128xf32>
    %c0_106 = arith.constant 0 : index
    %c0_107 = arith.constant 0 : index
    %185 = vector.load %arg20[%c0_106, %c0_107] : memref<16x128xf32, #tpu.memory_space<vmem>>, vector<16x128xf32>
    %cst_108 = arith.constant dense<0.000000e+00> : vector<2x128xf32>
    %186 = tpu.matmul %128, %185, %cst_108 {dimension_numbers = #tpu.dot_dimension_numbers<[1], [0], [0], [1], [0, 0, 1, 1], [], []>} : vector<2x16xf32>, vector<16x128xf32>, vector<2x128xf32> -> vector<2x128xf32>
    %187 = arith.addf %184, %186 : vector<2x128xf32>
    %c0_109 = arith.constant 0 : index
    %c0_110 = arith.constant 0 : index
    %188 = vector.load %arg19[%c0_109, %c0_110] : memref<1x128xf32, #tpu.memory_space<vmem>>, vector<1x128xf32>
    %189 = vector.broadcast %188 : vector<1x128xf32> to vector<2x128xf32>
    %190 = arith.addf %187, %189 : vector<2x128xf32>
    %c0_111 = arith.constant 0 : index
    %c0_112 = arith.constant 0 : index
    %191 = vector.load %arg1[%c0_111, %c0_112] : memref<2x1xi32, #tpu.memory_space<vmem>>, vector<2x1xi32>
    %c1_i32 = arith.constant 1 : i32
    %192 = vector.broadcast %c1_i32 : i32 to vector<2x1xi32>
    %193 = arith.cmpi sgt, %191, %192 : vector<2x1xi32>
    %cst_113 = arith.constant 0.000000e+00 : f32
    %194 = vector.shape_cast %193 : vector<2x1xi1> to vector<2x1xi1>
    %195 = vector.broadcast %194 : vector<2x1xi1> to vector<2x128xi1>
    %196 = vector.broadcast %cst_113 : f32 to vector<2x128xf32>
    %197 = arith.select %195, %190, %196 : vector<2x128xi1>, vector<2x128xf32>
    %c1_114 = arith.constant 1 : index
    %c0_115 = arith.constant 0 : index
    %c0_116 = arith.constant 0 : index
    %198 = vector.load %arg21[%c1_114, %c0_115, %c0_116] : memref<7x2x128xf32, #tpu.memory_space<vmem>>, vector<1x2x128xf32>
    %199 = vector.shape_cast %198 : vector<1x2x128xf32> to vector<2x128xf32>
    %200 = vector.shape_cast %197 : vector<2x128xf32> to vector<1x2x128xf32>
    tpu.vector_store %arg21[%c1_114, %c0_115, %c0_116], %200 {strides = array<i32>} : memref<7x2x128xf32, #tpu.memory_space<vmem>>, vector<1x2x128xf32>,
    %c2 = arith.constant 2 : index
    %c0_117 = arith.constant 0 : index
    %c0_118 = arith.constant 0 : index
    %201 = vector.load %arg2[%c2, %c0_117, %c0_118] : memref<7x2x16xf32, #tpu.memory_space<vmem>>, vector<1x2x16xf32>
    %202 = vector.shape_cast %201 : vector<1x2x16xf32> to vector<2x16xf32>
    %c0_119 = arith.constant 0 : index
    %c0_120 = arith.constant 0 : index
    %203 = vector.load %arg8[%c0_119, %c0_120] : memref<32x32xf32, #tpu.memory_space<vmem>>, vector<32x32xf32>
    %cst_121 = arith.constant dense<0.000000e+00> : vector<2x32xf32>
    %204 = tpu.matmul %182, %203, %cst_121 {dimension_numbers = #tpu.dot_dimension_numbers<[1], [0], [0], [1], [0, 0, 1, 1], [], []>} : vector<2x32xf32>, vector<32x32xf32>, vector<2x32xf32> -> vector<2x32xf32>
    %c0_122 = arith.constant 0 : index
    %c0_123 = arith.constant 0 : index
    %205 = vector.load %arg9[%c0_122, %c0_123] : memref<1x32xf32, #tpu.memory_space<vmem>>, vector<1x32xf32>
    %206 = vector.broadcast %205 : vector<1x32xf32> to vector<2x32xf32>
    %207 = arith.addf %204, %206 : vector<2x32xf32>
    %c0_124 = arith.constant 0 : index
    %c0_125 = arith.constant 0 : index
    %c0_126 = arith.constant 0 : index
    %208 = vector.load %arg4[%c0_124, %c0_125, %c0_126] : memref<2x16x32xf32, #tpu.memory_space<vmem>>, vector<2x16x32xf32>
    %209 = vector.shape_cast %207 : vector<2x32xf32> to vector<2x1x32xf32>
    %210 = vector.broadcast %209 : vector<2x1x32xf32> to vector<2x16x32xf32>
    %211 = arith.addf %208, %210 : vector<2x16x32xf32>
    %cst_127 = arith.constant 0.000000e+00 : f32
    %212 = vector.broadcast %cst_127 : f32 to vector<2x16x32xf32>
    %213 = arith.maximumf %211, %212 : vector<2x16x32xf32>
    %c0_128 = arith.constant 0 : index
    %c0_129 = arith.constant 0 : index
    %214 = vector.load %arg10[%c0_128, %c0_129] : memref<1x32xf32, #tpu.memory_space<vmem>>, vector<1x32xf32>
    %215 = vector.shape_cast %214 : vector<1x32xf32> to vector<1x1x32xf32>
    %216 = vector.broadcast %215 : vector<1x1x32xf32> to vector<2x16x32xf32>
    %217 = arith.mulf %213, %216 : vector<2x16x32xf32>
    %cst_130 = arith.constant dense<0.000000e+00> : vector<2x16xf32>
    %218 = vector.multi_reduction <add>, %217, %cst_130 [2] : vector<2x16x32xf32> to vector<2x16xf32>
    %cst_131 = arith.constant dense<0xFF800000> : vector<2xf32>
    %219 = vector.multi_reduction <maximumf>, %218, %cst_131 [1] : vector<2x16xf32> to vector<2xf32>
    %220 = vector.shape_cast %219 : vector<2xf32> to vector<2x1xf32>
    %221 = vector.broadcast %220 : vector<2x1xf32> to vector<2x16xf32>
    %222 = arith.subf %218, %221 : vector<2x16xf32>
    %223 = math.exp %222 : vector<2x16xf32>
    %cst_132 = arith.constant dense<0.000000e+00> : vector<2xf32>
    %224 = vector.multi_reduction <add>, %223, %cst_132 [1] : vector<2x16xf32> to vector<2xf32>
    %225 = vector.shape_cast %224 : vector<2xf32> to vector<2x1xf32>
    %226 = vector.broadcast %225 : vector<2x1xf32> to vector<2x16xf32>
    %227 = arith.divf %223, %226 : vector<2x16xf32>
    %c0_133 = arith.constant 0 : index
    %c0_134 = arith.constant 0 : index
    %c0_135 = arith.constant 0 : index
    %228 = vector.load %arg3[%c0_133, %c0_134, %c0_135] : memref<2x16x32xf32, #tpu.memory_space<vmem>>, vector<2x16x32xf32>
    %229 = vector.shape_cast %227 : vector<2x16xf32> to vector<2x16x1xf32>
    %230 = vector.broadcast %229 : vector<2x16x1xf32> to vector<2x16x32xf32>
    %231 = arith.mulf %228, %230 : vector<2x16x32xf32>
    %cst_136 = arith.constant dense<0.000000e+00> : vector<2x32xf32>
    %232 = vector.multi_reduction <add>, %231, %cst_136 [1] : vector<2x16x32xf32> to vector<2x32xf32>
    %c0_137 = arith.constant 0 : index
    %c0_138 = arith.constant 0 : index
    %233 = vector.load %arg11[%c0_137, %c0_138] : memref<16x640xf32, #tpu.memory_space<vmem>>, vector<16x640xf32>
    %cst_139 = arith.constant dense<0.000000e+00> : vector<2x640xf32>
    %234 = tpu.matmul %202, %233, %cst_139 {dimension_numbers = #tpu.dot_dimension_numbers<[1], [0], [0], [1], [0, 0, 1, 1], [], []>} : vector<2x16xf32>, vector<16x640xf32>, vector<2x640xf32> -> vector<2x640xf32>
    %c0_140 = arith.constant 0 : index
    %c0_141 = arith.constant 0 : index
    %235 = vector.load %arg12[%c0_140, %c0_141] : memref<32x640xf32, #tpu.memory_space<vmem>>, vector<32x640xf32>
    %cst_142 = arith.constant dense<0.000000e+00> : vector<2x640xf32>
    %236 = tpu.matmul %232, %235, %cst_142 {dimension_numbers = #tpu.dot_dimension_numbers<[1], [0], [0], [1], [0, 0, 1, 1], [], []>} : vector<2x32xf32>, vector<32x640xf32>, vector<2x640xf32> -> vector<2x640xf32>
    %237 = arith.addf %234, %236 : vector<2x640xf32>
    %c0_143 = arith.constant 0 : index
    %c0_144 = arith.constant 0 : index
    %238 = vector.load %arg13[%c0_143, %c0_144] : memref<32x640xf32, #tpu.memory_space<vmem>>, vector<32x640xf32>
    %cst_145 = arith.constant dense<0.000000e+00> : vector<2x640xf32>
    %239 = tpu.matmul %182, %238, %cst_145 {dimension_numbers = #tpu.dot_dimension_numbers<[1], [0], [0], [1], [0, 0, 1, 1], [], []>} : vector<2x32xf32>, vector<32x640xf32>, vector<2x640xf32> -> vector<2x640xf32>
    %240 = arith.addf %237, %239 : vector<2x640xf32>
    %c0_146 = arith.constant 0 : index
    %c0_147 = arith.constant 0 : index
    %241 = vector.load %arg14[%c0_146, %c0_147] : memref<1x640xf32, #tpu.memory_space<vmem>>, vector<1x640xf32>
    %242 = vector.broadcast %241 : vector<1x640xf32> to vector<2x640xf32>
    %243 = arith.addf %240, %242 : vector<2x640xf32>
    %244 = vector.extract_strided_slice %243 {offsets = [0, 0], sizes = [2, 32], strides = [1, 1]} : vector<2x640xf32> to vector<2x32xf32>
    %245 = arith.negf %244 : vector<2x32xf32>
    %246 = math.exp %245 : vector<2x32xf32>
    %cst_148 = arith.constant 1.000000e+00 : f32
    %247 = vector.broadcast %cst_148 : f32 to vector<2x32xf32>
    %248 = arith.addf %247, %246 : vector<2x32xf32>
    %249 = arith.divf %247, %248 : vector<2x32xf32>
    %250 = vector.extract_strided_slice %243 {offsets = [0, 128], sizes = [2, 32], strides = [1, 1]} : vector<2x640xf32> to vector<2x32xf32>
    %251 = arith.negf %250 : vector<2x32xf32>
    %252 = math.exp %251 : vector<2x32xf32>
    %cst_149 = arith.constant 1.000000e+00 : f32
    %253 = vector.broadcast %cst_149 : f32 to vector<2x32xf32>
    %254 = arith.addf %253, %252 : vector<2x32xf32>
    %255 = arith.divf %253, %254 : vector<2x32xf32>
    %256 = vector.extract_strided_slice %243 {offsets = [0, 256], sizes = [2, 32], strides = [1, 1]} : vector<2x640xf32> to vector<2x32xf32>
    %257 = arith.negf %256 : vector<2x32xf32>
    %258 = math.exp %257 : vector<2x32xf32>
    %cst_150 = arith.constant 1.000000e+00 : f32
    %259 = vector.broadcast %cst_150 : f32 to vector<2x32xf32>
    %260 = arith.addf %259, %258 : vector<2x32xf32>
    %261 = arith.divf %259, %260 : vector<2x32xf32>
    %262 = vector.extract_strided_slice %243 {offsets = [0, 384], sizes = [2, 32], strides = [1, 1]} : vector<2x640xf32> to vector<2x32xf32>
    %263 = math.tanh %262 : vector<2x32xf32>
    %264 = vector.extract_strided_slice %243 {offsets = [0, 512], sizes = [2, 32], strides = [1, 1]} : vector<2x640xf32> to vector<2x32xf32>
    %265 = math.tanh %264 : vector<2x32xf32>
    %266 = arith.mulf %255, %169 : vector<2x32xf32>
    %267 = arith.mulf %249, %263 : vector<2x32xf32>
    %268 = arith.addf %266, %267 : vector<2x32xf32>
    %269 = arith.mulf %255, %172 : vector<2x32xf32>
    %270 = arith.mulf %249, %265 : vector<2x32xf32>
    %271 = arith.addf %269, %270 : vector<2x32xf32>
    %c0_151 = arith.constant 0 : index
    %c0_152 = arith.constant 0 : index
    %272 = vector.load %arg15[%c0_151, %c0_152] : memref<32x32xf32, #tpu.memory_space<vmem>>, vector<32x32xf32>
    %cst_153 = arith.constant dense<0.000000e+00> : vector<2x32xf32>
    %273 = tpu.matmul %268, %272, %cst_153 {dimension_numbers = #tpu.dot_dimension_numbers<[1], [0], [0], [1], [0, 0, 1, 1], [], []>} : vector<2x32xf32>, vector<32x32xf32>, vector<2x32xf32> -> vector<2x32xf32>
    %c0_154 = arith.constant 0 : index
    %c0_155 = arith.constant 0 : index
    %274 = vector.load %arg16[%c0_154, %c0_155] : memref<32x32xf32, #tpu.memory_space<vmem>>, vector<32x32xf32>
    %cst_156 = arith.constant dense<0.000000e+00> : vector<2x32xf32>
    %275 = tpu.matmul %271, %274, %cst_156 {dimension_numbers = #tpu.dot_dimension_numbers<[1], [0], [0], [1], [0, 0, 1, 1], [], []>} : vector<2x32xf32>, vector<32x32xf32>, vector<2x32xf32> -> vector<2x32xf32>
    %276 = arith.addf %273, %275 : vector<2x32xf32>
    %c0_157 = arith.constant 0 : index
    %c0_158 = arith.constant 0 : index
    %277 = vector.load %arg17[%c0_157, %c0_158] : memref<1x32xf32, #tpu.memory_space<vmem>>, vector<1x32xf32>
    %278 = vector.broadcast %277 : vector<1x32xf32> to vector<2x32xf32>
    %279 = arith.addf %276, %278 : vector<2x32xf32>
    %280 = math.tanh %279 : vector<2x32xf32>
    %281 = arith.mulf %261, %280 : vector<2x32xf32>
    %c0_159 = arith.constant 0 : index
    %c0_160 = arith.constant 0 : index
    %282 = vector.load %arg18[%c0_159, %c0_160] : memref<32x128xf32, #tpu.memory_space<vmem>>, vector<32x128xf32>
    %cst_161 = arith.constant dense<0.000000e+00> : vector<2x128xf32>
    %283 = tpu.matmul %281, %282, %cst_161 {dimension_numbers = #tpu.dot_dimension_numbers<[1], [0], [0], [1], [0, 0, 1, 1], [], []>} : vector<2x32xf32>, vector<32x128xf32>, vector<2x128xf32> -> vector<2x128xf32>
    %c0_162 = arith.constant 0 : index
    %c0_163 = arith.constant 0 : index
    %284 = vector.load %arg20[%c0_162, %c0_163] : memref<16x128xf32, #tpu.memory_space<vmem>>, vector<16x128xf32>
    %cst_164 = arith.constant dense<0.000000e+00> : vector<2x128xf32>
    %285 = tpu.matmul %227, %284, %cst_164 {dimension_numbers = #tpu.dot_dimension_numbers<[1], [0], [0], [1], [0, 0, 1, 1], [], []>} : vector<2x16xf32>, vector<16x128xf32>, vector<2x128xf32> -> vector<2x128xf32>
    %286 = arith.addf %283, %285 : vector<2x128xf32>
    %c0_165 = arith.constant 0 : index
    %c0_166 = arith.constant 0 : index
    %287 = vector.load %arg19[%c0_165, %c0_166] : memref<1x128xf32, #tpu.memory_space<vmem>>, vector<1x128xf32>
    %288 = vector.broadcast %287 : vector<1x128xf32> to vector<2x128xf32>
    %289 = arith.addf %286, %288 : vector<2x128xf32>
    %c0_167 = arith.constant 0 : index
    %c0_168 = arith.constant 0 : index
    %290 = vector.load %arg1[%c0_167, %c0_168] : memref<2x1xi32, #tpu.memory_space<vmem>>, vector<2x1xi32>
    %c2_i32 = arith.constant 2 : i32
    %291 = vector.broadcast %c2_i32 : i32 to vector<2x1xi32>
    %292 = arith.cmpi sgt, %290, %291 : vector<2x1xi32>
    %cst_169 = arith.constant 0.000000e+00 : f32
    %293 = vector.shape_cast %292 : vector<2x1xi1> to vector<2x1xi1>
    %294 = vector.broadcast %293 : vector<2x1xi1> to vector<2x128xi1>
    %295 = vector.broadcast %cst_169 : f32 to vector<2x128xf32>
    %296 = arith.select %294, %289, %295 : vector<2x128xi1>, vector<2x128xf32>
    %c2_170 = arith.constant 2 : index
    %c0_171 = arith.constant 0 : index
    %c0_172 = arith.constant 0 : index
    %297 = vector.load %arg21[%c2_170, %c0_171, %c0_172] : memref<7x2x128xf32, #tpu.memory_space<vmem>>, vector<1x2x128xf32>
    %298 = vector.shape_cast %297 : vector<1x2x128xf32> to vector<2x128xf32>
    %299 = vector.shape_cast %296 : vector<2x128xf32> to vector<1x2x128xf32>
    tpu.vector_store %arg21[%c2_170, %c0_171, %c0_172], %299 {strides = array<i32>} : memref<7x2x128xf32, #tpu.memory_space<vmem>>, vector<1x2x128xf32>,
    %c3 = arith.constant 3 : index
    %c0_173 = arith.constant 0 : index
    %c0_174 = arith.constant 0 : index
    %300 = vector.load %arg2[%c3, %c0_173, %c0_174] : memref<7x2x16xf32, #tpu.memory_space<vmem>>, vector<1x2x16xf32>
    %301 = vector.shape_cast %300 : vector<1x2x16xf32> to vector<2x16xf32>
    %c0_175 = arith.constant 0 : index
    %c0_176 = arith.constant 0 : index
    %302 = vector.load %arg8[%c0_175, %c0_176] : memref<32x32xf32, #tpu.memory_space<vmem>>, vector<32x32xf32>
    %cst_177 = arith.constant dense<0.000000e+00> : vector<2x32xf32>
    %303 = tpu.matmul %281, %302, %cst_177 {dimension_numbers = #tpu.dot_dimension_numbers<[1], [0], [0], [1], [0, 0, 1, 1], [], []>} : vector<2x32xf32>, vector<32x32xf32>, vector<2x32xf32> -> vector<2x32xf32>
    %c0_178 = arith.constant 0 : index
    %c0_179 = arith.constant 0 : index
    %304 = vector.load %arg9[%c0_178, %c0_179] : memref<1x32xf32, #tpu.memory_space<vmem>>, vector<1x32xf32>
    %305 = vector.broadcast %304 : vector<1x32xf32> to vector<2x32xf32>
    %306 = arith.addf %303, %305 : vector<2x32xf32>
    %c0_180 = arith.constant 0 : index
    %c0_181 = arith.constant 0 : index
    %c0_182 = arith.constant 0 : index
    %307 = vector.load %arg4[%c0_180, %c0_181, %c0_182] : memref<2x16x32xf32, #tpu.memory_space<vmem>>, vector<2x16x32xf32>
    %308 = vector.shape_cast %306 : vector<2x32xf32> to vector<2x1x32xf32>
    %309 = vector.broadcast %308 : vector<2x1x32xf32> to vector<2x16x32xf32>
    %310 = arith.addf %307, %309 : vector<2x16x32xf32>
    %cst_183 = arith.constant 0.000000e+00 : f32
    %311 = vector.broadcast %cst_183 : f32 to vector<2x16x32xf32>
    %312 = arith.maximumf %310, %311 : vector<2x16x32xf32>
    %c0_184 = arith.constant 0 : index
    %c0_185 = arith.constant 0 : index
    %313 = vector.load %arg10[%c0_184, %c0_185] : memref<1x32xf32, #tpu.memory_space<vmem>>, vector<1x32xf32>
    %314 = vector.shape_cast %313 : vector<1x32xf32> to vector<1x1x32xf32>
    %315 = vector.broadcast %314 : vector<1x1x32xf32> to vector<2x16x32xf32>
    %316 = arith.mulf %312, %315 : vector<2x16x32xf32>
    %cst_186 = arith.constant dense<0.000000e+00> : vector<2x16xf32>
    %317 = vector.multi_reduction <add>, %316, %cst_186 [2] : vector<2x16x32xf32> to vector<2x16xf32>
    %cst_187 = arith.constant dense<0xFF800000> : vector<2xf32>
    %318 = vector.multi_reduction <maximumf>, %317, %cst_187 [1] : vector<2x16xf32> to vector<2xf32>
    %319 = vector.shape_cast %318 : vector<2xf32> to vector<2x1xf32>
    %320 = vector.broadcast %319 : vector<2x1xf32> to vector<2x16xf32>
    %321 = arith.subf %317, %320 : vector<2x16xf32>
    %322 = math.exp %321 : vector<2x16xf32>
    %cst_188 = arith.constant dense<0.000000e+00> : vector<2xf32>
    %323 = vector.multi_reduction <add>, %322, %cst_188 [1] : vector<2x16xf32> to vector<2xf32>
    %324 = vector.shape_cast %323 : vector<2xf32> to vector<2x1xf32>
    %325 = vector.broadcast %324 : vector<2x1xf32> to vector<2x16xf32>
    %326 = arith.divf %322, %325 : vector<2x16xf32>
    %c0_189 = arith.constant 0 : index
    %c0_190 = arith.constant 0 : index
    %c0_191 = arith.constant 0 : index
    %327 = vector.load %arg3[%c0_189, %c0_190, %c0_191] : memref<2x16x32xf32, #tpu.memory_space<vmem>>, vector<2x16x32xf32>
    %328 = vector.shape_cast %326 : vector<2x16xf32> to vector<2x16x1xf32>
    %329 = vector.broadcast %328 : vector<2x16x1xf32> to vector<2x16x32xf32>
    %330 = arith.mulf %327, %329 : vector<2x16x32xf32>
    %cst_192 = arith.constant dense<0.000000e+00> : vector<2x32xf32>
    %331 = vector.multi_reduction <add>, %330, %cst_192 [1] : vector<2x16x32xf32> to vector<2x32xf32>
    %c0_193 = arith.constant 0 : index
    %c0_194 = arith.constant 0 : index
    %332 = vector.load %arg11[%c0_193, %c0_194] : memref<16x640xf32, #tpu.memory_space<vmem>>, vector<16x640xf32>
    %cst_195 = arith.constant dense<0.000000e+00> : vector<2x640xf32>
    %333 = tpu.matmul %301, %332, %cst_195 {dimension_numbers = #tpu.dot_dimension_numbers<[1], [0], [0], [1], [0, 0, 1, 1], [], []>} : vector<2x16xf32>, vector<16x640xf32>, vector<2x640xf32> -> vector<2x640xf32>
    %c0_196 = arith.constant 0 : index
    %c0_197 = arith.constant 0 : index
    %334 = vector.load %arg12[%c0_196, %c0_197] : memref<32x640xf32, #tpu.memory_space<vmem>>, vector<32x640xf32>
    %cst_198 = arith.constant dense<0.000000e+00> : vector<2x640xf32>
    %335 = tpu.matmul %331, %334, %cst_198 {dimension_numbers = #tpu.dot_dimension_numbers<[1], [0], [0], [1], [0, 0, 1, 1], [], []>} : vector<2x32xf32>, vector<32x640xf32>, vector<2x640xf32> -> vector<2x640xf32>
    %336 = arith.addf %333, %335 : vector<2x640xf32>
    %c0_199 = arith.constant 0 : index
    %c0_200 = arith.constant 0 : index
    %337 = vector.load %arg13[%c0_199, %c0_200] : memref<32x640xf32, #tpu.memory_space<vmem>>, vector<32x640xf32>
    %cst_201 = arith.constant dense<0.000000e+00> : vector<2x640xf32>
    %338 = tpu.matmul %281, %337, %cst_201 {dimension_numbers = #tpu.dot_dimension_numbers<[1], [0], [0], [1], [0, 0, 1, 1], [], []>} : vector<2x32xf32>, vector<32x640xf32>, vector<2x640xf32> -> vector<2x640xf32>
    %339 = arith.addf %336, %338 : vector<2x640xf32>
    %c0_202 = arith.constant 0 : index
    %c0_203 = arith.constant 0 : index
    %340 = vector.load %arg14[%c0_202, %c0_203] : memref<1x640xf32, #tpu.memory_space<vmem>>, vector<1x640xf32>
    %341 = vector.broadcast %340 : vector<1x640xf32> to vector<2x640xf32>
    %342 = arith.addf %339, %341 : vector<2x640xf32>
    %343 = vector.extract_strided_slice %342 {offsets = [0, 0], sizes = [2, 32], strides = [1, 1]} : vector<2x640xf32> to vector<2x32xf32>
    %344 = arith.negf %343 : vector<2x32xf32>
    %345 = math.exp %344 : vector<2x32xf32>
    %cst_204 = arith.constant 1.000000e+00 : f32
    %346 = vector.broadcast %cst_204 : f32 to vector<2x32xf32>
    %347 = arith.addf %346, %345 : vector<2x32xf32>
    %348 = arith.divf %346, %347 : vector<2x32xf32>
    %349 = vector.extract_strided_slice %342 {offsets = [0, 128], sizes = [2, 32], strides = [1, 1]} : vector<2x640xf32> to vector<2x32xf32>
    %350 = arith.negf %349 : vector<2x32xf32>
    %351 = math.exp %350 : vector<2x32xf32>
    %cst_205 = arith.constant 1.000000e+00 : f32
    %352 = vector.broadcast %cst_205 : f32 to vector<2x32xf32>
    %353 = arith.addf %352, %351 : vector<2x32xf32>
    %354 = arith.divf %352, %353 : vector<2x32xf32>
    %355 = vector.extract_strided_slice %342 {offsets = [0, 256], sizes = [2, 32], strides = [1, 1]} : vector<2x640xf32> to vector<2x32xf32>
    %356 = arith.negf %355 : vector<2x32xf32>
    %357 = math.exp %356 : vector<2x32xf32>
    %cst_206 = arith.constant 1.000000e+00 : f32
    %358 = vector.broadcast %cst_206 : f32 to vector<2x32xf32>
    %359 = arith.addf %358, %357 : vector<2x32xf32>
    %360 = arith.divf %358, %359 : vector<2x32xf32>
    %361 = vector.extract_strided_slice %342 {offsets = [0, 384], sizes = [2, 32], strides = [1, 1]} : vector<2x640xf32> to vector<2x32xf32>
    %362 = math.tanh %361 : vector<2x32xf32>
    %363 = vector.extract_strided_slice %342 {offsets = [0, 512], sizes = [2, 32], strides = [1, 1]} : vector<2x640xf32> to vector<2x32xf32>
    %364 = math.tanh %363 : vector<2x32xf32>
    %365 = arith.mulf %354, %268 : vector<2x32xf32>
    %366 = arith.mulf %348, %362 : vector<2x32xf32>
    %367 = arith.addf %365, %366 : vector<2x32xf32>
    %368 = arith.mulf %354, %271 : vector<2x32xf32>
    %369 = arith.mulf %348, %364 : vector<2x32xf32>
    %370 = arith.addf %368, %369 : vector<2x32xf32>
    %c0_207 = arith.constant 0 : index
    %c0_208 = arith.constant 0 : index
    %371 = vector.load %arg15[%c0_207, %c0_208] : memref<32x32xf32, #tpu.memory_space<vmem>>, vector<32x32xf32>
    %cst_209 = arith.constant dense<0.000000e+00> : vector<2x32xf32>
    %372 = tpu.matmul %367, %371, %cst_209 {dimension_numbers = #tpu.dot_dimension_numbers<[1], [0], [0], [1], [0, 0, 1, 1], [], []>} : vector<2x32xf32>, vector<32x32xf32>, vector<2x32xf32> -> vector<2x32xf32>
    %c0_210 = arith.constant 0 : index
    %c0_211 = arith.constant 0 : index
    %373 = vector.load %arg16[%c0_210, %c0_211] : memref<32x32xf32, #tpu.memory_space<vmem>>, vector<32x32xf32>
    %cst_212 = arith.constant dense<0.000000e+00> : vector<2x32xf32>
    %374 = tpu.matmul %370, %373, %cst_212 {dimension_numbers = #tpu.dot_dimension_numbers<[1], [0], [0], [1], [0, 0, 1, 1], [], []>} : vector<2x32xf32>, vector<32x32xf32>, vector<2x32xf32> -> vector<2x32xf32>
    %375 = arith.addf %372, %374 : vector<2x32xf32>
    %c0_213 = arith.constant 0 : index
    %c0_214 = arith.constant 0 : index
    %376 = vector.load %arg17[%c0_213, %c0_214] : memref<1x32xf32, #tpu.memory_space<vmem>>, vector<1x32xf32>
    %377 = vector.broadcast %376 : vector<1x32xf32> to vector<2x32xf32>
    %378 = arith.addf %375, %377 : vector<2x32xf32>
    %379 = math.tanh %378 : vector<2x32xf32>
    %380 = arith.mulf %360, %379 : vector<2x32xf32>
    %c0_215 = arith.constant 0 : index
    %c0_216 = arith.constant 0 : index
    %381 = vector.load %arg18[%c0_215, %c0_216] : memref<32x128xf32, #tpu.memory_space<vmem>>, vector<32x128xf32>
    %cst_217 = arith.constant dense<0.000000e+00> : vector<2x128xf32>
    %382 = tpu.matmul %380, %381, %cst_217 {dimension_numbers = #tpu.dot_dimension_numbers<[1], [0], [0], [1], [0, 0, 1, 1], [], []>} : vector<2x32xf32>, vector<32x128xf32>, vector<2x128xf32> -> vector<2x128xf32>
    %c0_218 = arith.constant 0 : index
    %c0_219 = arith.constant 0 : index
    %383 = vector.load %arg20[%c0_218, %c0_219] : memref<16x128xf32, #tpu.memory_space<vmem>>, vector<16x128xf32>
    %cst_220 = arith.constant dense<0.000000e+00> : vector<2x128xf32>
    %384 = tpu.matmul %326, %383, %cst_220 {dimension_numbers = #tpu.dot_dimension_numbers<[1], [0], [0], [1], [0, 0, 1, 1], [], []>} : vector<2x16xf32>, vector<16x128xf32>, vector<2x128xf32> -> vector<2x128xf32>
    %385 = arith.addf %382, %384 : vector<2x128xf32>
    %c0_221 = arith.constant 0 : index
    %c0_222 = arith.constant 0 : index
    %386 = vector.load %arg19[%c0_221, %c0_222] : memref<1x128xf32, #tpu.memory_space<vmem>>, vector<1x128xf32>
    %387 = vector.broadcast %386 : vector<1x128xf32> to vector<2x128xf32>
    %388 = arith.addf %385, %387 : vector<2x128xf32>
    %c0_223 = arith.constant 0 : index
    %c0_224 = arith.constant 0 : index
    %389 = vector.load %arg1[%c0_223, %c0_224] : memref<2x1xi32, #tpu.memory_space<vmem>>, vector<2x1xi32>
    %c3_i32 = arith.constant 3 : i32
    %390 = vector.broadcast %c3_i32 : i32 to vector<2x1xi32>
    %391 = arith.cmpi sgt, %389, %390 : vector<2x1xi32>
    %cst_225 = arith.constant 0.000000e+00 : f32
    %392 = vector.shape_cast %391 : vector<2x1xi1> to vector<2x1xi1>
    %393 = vector.broadcast %392 : vector<2x1xi1> to vector<2x128xi1>
    %394 = vector.broadcast %cst_225 : f32 to vector<2x128xf32>
    %395 = arith.select %393, %388, %394 : vector<2x128xi1>, vector<2x128xf32>
    %c3_226 = arith.constant 3 : index
    %c0_227 = arith.constant 0 : index
    %c0_228 = arith.constant 0 : index
    %396 = vector.load %arg21[%c3_226, %c0_227, %c0_228] : memref<7x2x128xf32, #tpu.memory_space<vmem>>, vector<1x2x128xf32>
    %397 = vector.shape_cast %396 : vector<1x2x128xf32> to vector<2x128xf32>
    %398 = vector.shape_cast %395 : vector<2x128xf32> to vector<1x2x128xf32>
    tpu.vector_store %arg21[%c3_226, %c0_227, %c0_228], %398 {strides = array<i32>} : memref<7x2x128xf32, #tpu.memory_space<vmem>>, vector<1x2x128xf32>,
    %c4 = arith.constant 4 : index
    %c0_229 = arith.constant 0 : index
    %c0_230 = arith.constant 0 : index
    %399 = vector.load %arg2[%c4, %c0_229, %c0_230] : memref<7x2x16xf32, #tpu.memory_space<vmem>>, vector<1x2x16xf32>
    %400 = vector.shape_cast %399 : vector<1x2x16xf32> to vector<2x16xf32>
    %c0_231 = arith.constant 0 : index
    %c0_232 = arith.constant 0 : index
    %401 = vector.load %arg8[%c0_231, %c0_232] : memref<32x32xf32, #tpu.memory_space<vmem>>, vector<32x32xf32>
    %cst_233 = arith.constant dense<0.000000e+00> : vector<2x32xf32>
    %402 = tpu.matmul %380, %401, %cst_233 {dimension_numbers = #tpu.dot_dimension_numbers<[1], [0], [0], [1], [0, 0, 1, 1], [], []>} : vector<2x32xf32>, vector<32x32xf32>, vector<2x32xf32> -> vector<2x32xf32>
    %c0_234 = arith.constant 0 : index
    %c0_235 = arith.constant 0 : index
    %403 = vector.load %arg9[%c0_234, %c0_235] : memref<1x32xf32, #tpu.memory_space<vmem>>, vector<1x32xf32>
    %404 = vector.broadcast %403 : vector<1x32xf32> to vector<2x32xf32>
    %405 = arith.addf %402, %404 : vector<2x32xf32>
    %c0_236 = arith.constant 0 : index
    %c0_237 = arith.constant 0 : index
    %c0_238 = arith.constant 0 : index
    %406 = vector.load %arg4[%c0_236, %c0_237, %c0_238] : memref<2x16x32xf32, #tpu.memory_space<vmem>>, vector<2x16x32xf32>
    %407 = vector.shape_cast %405 : vector<2x32xf32> to vector<2x1x32xf32>
    %408 = vector.broadcast %407 : vector<2x1x32xf32> to vector<2x16x32xf32>
    %409 = arith.addf %406, %408 : vector<2x16x32xf32>
    %cst_239 = arith.constant 0.000000e+00 : f32
    %410 = vector.broadcast %cst_239 : f32 to vector<2x16x32xf32>
    %411 = arith.maximumf %409, %410 : vector<2x16x32xf32>
    %c0_240 = arith.constant 0 : index
    %c0_241 = arith.constant 0 : index
    %412 = vector.load %arg10[%c0_240, %c0_241] : memref<1x32xf32, #tpu.memory_space<vmem>>, vector<1x32xf32>
    %413 = vector.shape_cast %412 : vector<1x32xf32> to vector<1x1x32xf32>
    %414 = vector.broadcast %413 : vector<1x1x32xf32> to vector<2x16x32xf32>
    %415 = arith.mulf %411, %414 : vector<2x16x32xf32>
    %cst_242 = arith.constant dense<0.000000e+00> : vector<2x16xf32>
    %416 = vector.multi_reduction <add>, %415, %cst_242 [2] : vector<2x16x32xf32> to vector<2x16xf32>
    %cst_243 = arith.constant dense<0xFF800000> : vector<2xf32>
    %417 = vector.multi_reduction <maximumf>, %416, %cst_243 [1] : vector<2x16xf32> to vector<2xf32>
    %418 = vector.shape_cast %417 : vector<2xf32> to vector<2x1xf32>
    %419 = vector.broadcast %418 : vector<2x1xf32> to vector<2x16xf32>
    %420 = arith.subf %416, %419 : vector<2x16xf32>
    %421 = math.exp %420 : vector<2x16xf32>
    %cst_244 = arith.constant dense<0.000000e+00> : vector<2xf32>
    %422 = vector.multi_reduction <add>, %421, %cst_244 [1] : vector<2x16xf32> to vector<2xf32>
    %423 = vector.shape_cast %422 : vector<2xf32> to vector<2x1xf32>
    %424 = vector.broadcast %423 : vector<2x1xf32> to vector<2x16xf32>
    %425 = arith.divf %421, %424 : vector<2x16xf32>
    %c0_245 = arith.constant 0 : index
    %c0_246 = arith.constant 0 : index
    %c0_247 = arith.constant 0 : index
    %426 = vector.load %arg3[%c0_245, %c0_246, %c0_247] : memref<2x16x32xf32, #tpu.memory_space<vmem>>, vector<2x16x32xf32>
    %427 = vector.shape_cast %425 : vector<2x16xf32> to vector<2x16x1xf32>
    %428 = vector.broadcast %427 : vector<2x16x1xf32> to vector<2x16x32xf32>
    %429 = arith.mulf %426, %428 : vector<2x16x32xf32>
    %cst_248 = arith.constant dense<0.000000e+00> : vector<2x32xf32>
    %430 = vector.multi_reduction <add>, %429, %cst_248 [1] : vector<2x16x32xf32> to vector<2x32xf32>
    %c0_249 = arith.constant 0 : index
    %c0_250 = arith.constant 0 : index
    %431 = vector.load %arg11[%c0_249, %c0_250] : memref<16x640xf32, #tpu.memory_space<vmem>>, vector<16x640xf32>
    %cst_251 = arith.constant dense<0.000000e+00> : vector<2x640xf32>
    %432 = tpu.matmul %400, %431, %cst_251 {dimension_numbers = #tpu.dot_dimension_numbers<[1], [0], [0], [1], [0, 0, 1, 1], [], []>} : vector<2x16xf32>, vector<16x640xf32>, vector<2x640xf32> -> vector<2x640xf32>
    %c0_252 = arith.constant 0 : index
    %c0_253 = arith.constant 0 : index
    %433 = vector.load %arg12[%c0_252, %c0_253] : memref<32x640xf32, #tpu.memory_space<vmem>>, vector<32x640xf32>
    %cst_254 = arith.constant dense<0.000000e+00> : vector<2x640xf32>
    %434 = tpu.matmul %430, %433, %cst_254 {dimension_numbers = #tpu.dot_dimension_numbers<[1], [0], [0], [1], [0, 0, 1, 1], [], []>} : vector<2x32xf32>, vector<32x640xf32>, vector<2x640xf32> -> vector<2x640xf32>
    %435 = arith.addf %432, %434 : vector<2x640xf32>
    %c0_255 = arith.constant 0 : index
    %c0_256 = arith.constant 0 : index
    %436 = vector.load %arg13[%c0_255, %c0_256] : memref<32x640xf32, #tpu.memory_space<vmem>>, vector<32x640xf32>
    %cst_257 = arith.constant dense<0.000000e+00> : vector<2x640xf32>
    %437 = tpu.matmul %380, %436, %cst_257 {dimension_numbers = #tpu.dot_dimension_numbers<[1], [0], [0], [1], [0, 0, 1, 1], [], []>} : vector<2x32xf32>, vector<32x640xf32>, vector<2x640xf32> -> vector<2x640xf32>
    %438 = arith.addf %435, %437 : vector<2x640xf32>
    %c0_258 = arith.constant 0 : index
    %c0_259 = arith.constant 0 : index
    %439 = vector.load %arg14[%c0_258, %c0_259] : memref<1x640xf32, #tpu.memory_space<vmem>>, vector<1x640xf32>
    %440 = vector.broadcast %439 : vector<1x640xf32> to vector<2x640xf32>
    %441 = arith.addf %438, %440 : vector<2x640xf32>
    %442 = vector.extract_strided_slice %441 {offsets = [0, 0], sizes = [2, 32], strides = [1, 1]} : vector<2x640xf32> to vector<2x32xf32>
    %443 = arith.negf %442 : vector<2x32xf32>
    %444 = math.exp %443 : vector<2x32xf32>
    %cst_260 = arith.constant 1.000000e+00 : f32
    %445 = vector.broadcast %cst_260 : f32 to vector<2x32xf32>
    %446 = arith.addf %445, %444 : vector<2x32xf32>
    %447 = arith.divf %445, %446 : vector<2x32xf32>
    %448 = vector.extract_strided_slice %441 {offsets = [0, 128], sizes = [2, 32], strides = [1, 1]} : vector<2x640xf32> to vector<2x32xf32>
    %449 = arith.negf %448 : vector<2x32xf32>
    %450 = math.exp %449 : vector<2x32xf32>
    %cst_261 = arith.constant 1.000000e+00 : f32
    %451 = vector.broadcast %cst_261 : f32 to vector<2x32xf32>
    %452 = arith.addf %451, %450 : vector<2x32xf32>
    %453 = arith.divf %451, %452 : vector<2x32xf32>
    %454 = vector.extract_strided_slice %441 {offsets = [0, 256], sizes = [2, 32], strides = [1, 1]} : vector<2x640xf32> to vector<2x32xf32>
    %455 = arith.negf %454 : vector<2x32xf32>
    %456 = math.exp %455 : vector<2x32xf32>
    %cst_262 = arith.constant 1.000000e+00 : f32
    %457 = vector.broadcast %cst_262 : f32 to vector<2x32xf32>
    %458 = arith.addf %457, %456 : vector<2x32xf32>
    %459 = arith.divf %457, %458 : vector<2x32xf32>
    %460 = vector.extract_strided_slice %441 {offsets = [0, 384], sizes = [2, 32], strides = [1, 1]} : vector<2x640xf32> to vector<2x32xf32>
    %461 = math.tanh %460 : vector<2x32xf32>
    %462 = vector.extract_strided_slice %441 {offsets = [0, 512], sizes = [2, 32], strides = [1, 1]} : vector<2x640xf32> to vector<2x32xf32>
    %463 = math.tanh %462 : vector<2x32xf32>
    %464 = arith.mulf %453, %367 : vector<2x32xf32>
    %465 = arith.mulf %447, %461 : vector<2x32xf32>
    %466 = arith.addf %464, %465 : vector<2x32xf32>
    %467 = arith.mulf %453, %370 : vector<2x32xf32>
    %468 = arith.mulf %447, %463 : vector<2x32xf32>
    %469 = arith.addf %467, %468 : vector<2x32xf32>
    %c0_263 = arith.constant 0 : index
    %c0_264 = arith.constant 0 : index
    %470 = vector.load %arg15[%c0_263, %c0_264] : memref<32x32xf32, #tpu.memory_space<vmem>>, vector<32x32xf32>
    %cst_265 = arith.constant dense<0.000000e+00> : vector<2x32xf32>
    %471 = tpu.matmul %466, %470, %cst_265 {dimension_numbers = #tpu.dot_dimension_numbers<[1], [0], [0], [1], [0, 0, 1, 1], [], []>} : vector<2x32xf32>, vector<32x32xf32>, vector<2x32xf32> -> vector<2x32xf32>
    %c0_266 = arith.constant 0 : index
    %c0_267 = arith.constant 0 : index
    %472 = vector.load %arg16[%c0_266, %c0_267] : memref<32x32xf32, #tpu.memory_space<vmem>>, vector<32x32xf32>
    %cst_268 = arith.constant dense<0.000000e+00> : vector<2x32xf32>
    %473 = tpu.matmul %469, %472, %cst_268 {dimension_numbers = #tpu.dot_dimension_numbers<[1], [0], [0], [1], [0, 0, 1, 1], [], []>} : vector<2x32xf32>, vector<32x32xf32>, vector<2x32xf32> -> vector<2x32xf32>
    %474 = arith.addf %471, %473 : vector<2x32xf32>
    %c0_269 = arith.constant 0 : index
    %c0_270 = arith.constant 0 : index
    %475 = vector.load %arg17[%c0_269, %c0_270] : memref<1x32xf32, #tpu.memory_space<vmem>>, vector<1x32xf32>
    %476 = vector.broadcast %475 : vector<1x32xf32> to vector<2x32xf32>
    %477 = arith.addf %474, %476 : vector<2x32xf32>
    %478 = math.tanh %477 : vector<2x32xf32>
    %479 = arith.mulf %459, %478 : vector<2x32xf32>
    %c0_271 = arith.constant 0 : index
    %c0_272 = arith.constant 0 : index
    %480 = vector.load %arg18[%c0_271, %c0_272] : memref<32x128xf32, #tpu.memory_space<vmem>>, vector<32x128xf32>
    %cst_273 = arith.constant dense<0.000000e+00> : vector<2x128xf32>
    %481 = tpu.matmul %479, %480, %cst_273 {dimension_numbers = #tpu.dot_dimension_numbers<[1], [0], [0], [1], [0, 0, 1, 1], [], []>} : vector<2x32xf32>, vector<32x128xf32>, vector<2x128xf32> -> vector<2x128xf32>
    %c0_274 = arith.constant 0 : index
    %c0_275 = arith.constant 0 : index
    %482 = vector.load %arg20[%c0_274, %c0_275] : memref<16x128xf32, #tpu.memory_space<vmem>>, vector<16x128xf32>
    %cst_276 = arith.constant dense<0.000000e+00> : vector<2x128xf32>
    %483 = tpu.matmul %425, %482, %cst_276 {dimension_numbers = #tpu.dot_dimension_numbers<[1], [0], [0], [1], [0, 0, 1, 1], [], []>} : vector<2x16xf32>, vector<16x128xf32>, vector<2x128xf32> -> vector<2x128xf32>
    %484 = arith.addf %481, %483 : vector<2x128xf32>
    %c0_277 = arith.constant 0 : index
    %c0_278 = arith.constant 0 : index
    %485 = vector.load %arg19[%c0_277, %c0_278] : memref<1x128xf32, #tpu.memory_space<vmem>>, vector<1x128xf32>
    %486 = vector.broadcast %485 : vector<1x128xf32> to vector<2x128xf32>
    %487 = arith.addf %484, %486 : vector<2x128xf32>
    %c0_279 = arith.constant 0 : index
    %c0_280 = arith.constant 0 : index
    %488 = vector.load %arg1[%c0_279, %c0_280] : memref<2x1xi32, #tpu.memory_space<vmem>>, vector<2x1xi32>
    %c4_i32 = arith.constant 4 : i32
    %489 = vector.broadcast %c4_i32 : i32 to vector<2x1xi32>
    %490 = arith.cmpi sgt, %488, %489 : vector<2x1xi32>
    %cst_281 = arith.constant 0.000000e+00 : f32
    %491 = vector.shape_cast %490 : vector<2x1xi1> to vector<2x1xi1>
    %492 = vector.broadcast %491 : vector<2x1xi1> to vector<2x128xi1>
    %493 = vector.broadcast %cst_281 : f32 to vector<2x128xf32>
    %494 = arith.select %492, %487, %493 : vector<2x128xi1>, vector<2x128xf32>
    %c4_282 = arith.constant 4 : index
    %c0_283 = arith.constant 0 : index
    %c0_284 = arith.constant 0 : index
    %495 = vector.load %arg21[%c4_282, %c0_283, %c0_284] : memref<7x2x128xf32, #tpu.memory_space<vmem>>, vector<1x2x128xf32>
    %496 = vector.shape_cast %495 : vector<1x2x128xf32> to vector<2x128xf32>
    %497 = vector.shape_cast %494 : vector<2x128xf32> to vector<1x2x128xf32>
    tpu.vector_store %arg21[%c4_282, %c0_283, %c0_284], %497 {strides = array<i32>} : memref<7x2x128xf32, #tpu.memory_space<vmem>>, vector<1x2x128xf32>,
    %c5 = arith.constant 5 : index
    %c0_285 = arith.constant 0 : index
    %c0_286 = arith.constant 0 : index
    %498 = vector.load %arg2[%c5, %c0_285, %c0_286] : memref<7x2x16xf32, #tpu.memory_space<vmem>>, vector<1x2x16xf32>
    %499 = vector.shape_cast %498 : vector<1x2x16xf32> to vector<2x16xf32>
    %c0_287 = arith.constant 0 : index
    %c0_288 = arith.constant 0 : index
    %500 = vector.load %arg8[%c0_287, %c0_288] : memref<32x32xf32, #tpu.memory_space<vmem>>, vector<32x32xf32>
    %cst_289 = arith.constant dense<0.000000e+00> : vector<2x32xf32>
    %501 = tpu.matmul %479, %500, %cst_289 {dimension_numbers = #tpu.dot_dimension_numbers<[1], [0], [0], [1], [0, 0, 1, 1], [], []>} : vector<2x32xf32>, vector<32x32xf32>, vector<2x32xf32> -> vector<2x32xf32>
    %c0_290 = arith.constant 0 : index
    %c0_291 = arith.constant 0 : index
    %502 = vector.load %arg9[%c0_290, %c0_291] : memref<1x32xf32, #tpu.memory_space<vmem>>, vector<1x32xf32>
    %503 = vector.broadcast %502 : vector<1x32xf32> to vector<2x32xf32>
    %504 = arith.addf %501, %503 : vector<2x32xf32>
    %c0_292 = arith.constant 0 : index
    %c0_293 = arith.constant 0 : index
    %c0_294 = arith.constant 0 : index
    %505 = vector.load %arg4[%c0_292, %c0_293, %c0_294] : memref<2x16x32xf32, #tpu.memory_space<vmem>>, vector<2x16x32xf32>
    %506 = vector.shape_cast %504 : vector<2x32xf32> to vector<2x1x32xf32>
    %507 = vector.broadcast %506 : vector<2x1x32xf32> to vector<2x16x32xf32>
    %508 = arith.addf %505, %507 : vector<2x16x32xf32>
    %cst_295 = arith.constant 0.000000e+00 : f32
    %509 = vector.broadcast %cst_295 : f32 to vector<2x16x32xf32>
    %510 = arith.maximumf %508, %509 : vector<2x16x32xf32>
    %c0_296 = arith.constant 0 : index
    %c0_297 = arith.constant 0 : index
    %511 = vector.load %arg10[%c0_296, %c0_297] : memref<1x32xf32, #tpu.memory_space<vmem>>, vector<1x32xf32>
    %512 = vector.shape_cast %511 : vector<1x32xf32> to vector<1x1x32xf32>
    %513 = vector.broadcast %512 : vector<1x1x32xf32> to vector<2x16x32xf32>
    %514 = arith.mulf %510, %513 : vector<2x16x32xf32>
    %cst_298 = arith.constant dense<0.000000e+00> : vector<2x16xf32>
    %515 = vector.multi_reduction <add>, %514, %cst_298 [2] : vector<2x16x32xf32> to vector<2x16xf32>
    %cst_299 = arith.constant dense<0xFF800000> : vector<2xf32>
    %516 = vector.multi_reduction <maximumf>, %515, %cst_299 [1] : vector<2x16xf32> to vector<2xf32>
    %517 = vector.shape_cast %516 : vector<2xf32> to vector<2x1xf32>
    %518 = vector.broadcast %517 : vector<2x1xf32> to vector<2x16xf32>
    %519 = arith.subf %515, %518 : vector<2x16xf32>
    %520 = math.exp %519 : vector<2x16xf32>
    %cst_300 = arith.constant dense<0.000000e+00> : vector<2xf32>
    %521 = vector.multi_reduction <add>, %520, %cst_300 [1] : vector<2x16xf32> to vector<2xf32>
    %522 = vector.shape_cast %521 : vector<2xf32> to vector<2x1xf32>
    %523 = vector.broadcast %522 : vector<2x1xf32> to vector<2x16xf32>
    %524 = arith.divf %520, %523 : vector<2x16xf32>
    %c0_301 = arith.constant 0 : index
    %c0_302 = arith.constant 0 : index
    %c0_303 = arith.constant 0 : index
    %525 = vector.load %arg3[%c0_301, %c0_302, %c0_303] : memref<2x16x32xf32, #tpu.memory_space<vmem>>, vector<2x16x32xf32>
    %526 = vector.shape_cast %524 : vector<2x16xf32> to vector<2x16x1xf32>
    %527 = vector.broadcast %526 : vector<2x16x1xf32> to vector<2x16x32xf32>
    %528 = arith.mulf %525, %527 : vector<2x16x32xf32>
    %cst_304 = arith.constant dense<0.000000e+00> : vector<2x32xf32>
    %529 = vector.multi_reduction <add>, %528, %cst_304 [1] : vector<2x16x32xf32> to vector<2x32xf32>
    %c0_305 = arith.constant 0 : index
    %c0_306 = arith.constant 0 : index
    %530 = vector.load %arg11[%c0_305, %c0_306] : memref<16x640xf32, #tpu.memory_space<vmem>>, vector<16x640xf32>
    %cst_307 = arith.constant dense<0.000000e+00> : vector<2x640xf32>
    %531 = tpu.matmul %499, %530, %cst_307 {dimension_numbers = #tpu.dot_dimension_numbers<[1], [0], [0], [1], [0, 0, 1, 1], [], []>} : vector<2x16xf32>, vector<16x640xf32>, vector<2x640xf32> -> vector<2x640xf32>
    %c0_308 = arith.constant 0 : index
    %c0_309 = arith.constant 0 : index
    %532 = vector.load %arg12[%c0_308, %c0_309] : memref<32x640xf32, #tpu.memory_space<vmem>>, vector<32x640xf32>
    %cst_310 = arith.constant dense<0.000000e+00> : vector<2x640xf32>
    %533 = tpu.matmul %529, %532, %cst_310 {dimension_numbers = #tpu.dot_dimension_numbers<[1], [0], [0], [1], [0, 0, 1, 1], [], []>} : vector<2x32xf32>, vector<32x640xf32>, vector<2x640xf32> -> vector<2x640xf32>
    %534 = arith.addf %531, %533 : vector<2x640xf32>
    %c0_311 = arith.constant 0 : index
    %c0_312 = arith.constant 0 : index
    %535 = vector.load %arg13[%c0_311, %c0_312] : memref<32x640xf32, #tpu.memory_space<vmem>>, vector<32x640xf32>
    %cst_313 = arith.constant dense<0.000000e+00> : vector<2x640xf32>
    %536 = tpu.matmul %479, %535, %cst_313 {dimension_numbers = #tpu.dot_dimension_numbers<[1], [0], [0], [1], [0, 0, 1, 1], [], []>} : vector<2x32xf32>, vector<32x640xf32>, vector<2x640xf32> -> vector<2x640xf32>
    %537 = arith.addf %534, %536 : vector<2x640xf32>
    %c0_314 = arith.constant 0 : index
    %c0_315 = arith.constant 0 : index
    %538 = vector.load %arg14[%c0_314, %c0_315] : memref<1x640xf32, #tpu.memory_space<vmem>>, vector<1x640xf32>
    %539 = vector.broadcast %538 : vector<1x640xf32> to vector<2x640xf32>
    %540 = arith.addf %537, %539 : vector<2x640xf32>
    %541 = vector.extract_strided_slice %540 {offsets = [0, 0], sizes = [2, 32], strides = [1, 1]} : vector<2x640xf32> to vector<2x32xf32>
    %542 = arith.negf %541 : vector<2x32xf32>
    %543 = math.exp %542 : vector<2x32xf32>
    %cst_316 = arith.constant 1.000000e+00 : f32
    %544 = vector.broadcast %cst_316 : f32 to vector<2x32xf32>
    %545 = arith.addf %544, %543 : vector<2x32xf32>
    %546 = arith.divf %544, %545 : vector<2x32xf32>
    %547 = vector.extract_strided_slice %540 {offsets = [0, 128], sizes = [2, 32], strides = [1, 1]} : vector<2x640xf32> to vector<2x32xf32>
    %548 = arith.negf %547 : vector<2x32xf32>
    %549 = math.exp %548 : vector<2x32xf32>
    %cst_317 = arith.constant 1.000000e+00 : f32
    %550 = vector.broadcast %cst_317 : f32 to vector<2x32xf32>
    %551 = arith.addf %550, %549 : vector<2x32xf32>
    %552 = arith.divf %550, %551 : vector<2x32xf32>
    %553 = vector.extract_strided_slice %540 {offsets = [0, 256], sizes = [2, 32], strides = [1, 1]} : vector<2x640xf32> to vector<2x32xf32>
    %554 = arith.negf %553 : vector<2x32xf32>
    %555 = math.exp %554 : vector<2x32xf32>
    %cst_318 = arith.constant 1.000000e+00 : f32
    %556 = vector.broadcast %cst_318 : f32 to vector<2x32xf32>
    %557 = arith.addf %556, %555 : vector<2x32xf32>
    %558 = arith.divf %556, %557 : vector<2x32xf32>
    %559 = vector.extract_strided_slice %540 {offsets = [0, 384], sizes = [2, 32], strides = [1, 1]} : vector<2x640xf32> to vector<2x32xf32>
    %560 = math.tanh %559 : vector<2x32xf32>
    %561 = vector.extract_strided_slice %540 {offsets = [0, 512], sizes = [2, 32], strides = [1, 1]} : vector<2x640xf32> to vector<2x32xf32>
    %562 = math.tanh %561 : vector<2x32xf32>
    %563 = arith.mulf %552, %466 : vector<2x32xf32>
    %564 = arith.mulf %546, %560 : vector<2x32xf32>
    %565 = arith.addf %563, %564 : vector<2x32xf32>
    %566 = arith.mulf %552, %469 : vector<2x32xf32>
    %567 = arith.mulf %546, %562 : vector<2x32xf32>
    %568 = arith.addf %566, %567 : vector<2x32xf32>
    %c0_319 = arith.constant 0 : index
    %c0_320 = arith.constant 0 : index
    %569 = vector.load %arg15[%c0_319, %c0_320] : memref<32x32xf32, #tpu.memory_space<vmem>>, vector<32x32xf32>
    %cst_321 = arith.constant dense<0.000000e+00> : vector<2x32xf32>
    %570 = tpu.matmul %565, %569, %cst_321 {dimension_numbers = #tpu.dot_dimension_numbers<[1], [0], [0], [1], [0, 0, 1, 1], [], []>} : vector<2x32xf32>, vector<32x32xf32>, vector<2x32xf32> -> vector<2x32xf32>
    %c0_322 = arith.constant 0 : index
    %c0_323 = arith.constant 0 : index
    %571 = vector.load %arg16[%c0_322, %c0_323] : memref<32x32xf32, #tpu.memory_space<vmem>>, vector<32x32xf32>
    %cst_324 = arith.constant dense<0.000000e+00> : vector<2x32xf32>
    %572 = tpu.matmul %568, %571, %cst_324 {dimension_numbers = #tpu.dot_dimension_numbers<[1], [0], [0], [1], [0, 0, 1, 1], [], []>} : vector<2x32xf32>, vector<32x32xf32>, vector<2x32xf32> -> vector<2x32xf32>
    %573 = arith.addf %570, %572 : vector<2x32xf32>
    %c0_325 = arith.constant 0 : index
    %c0_326 = arith.constant 0 : index
    %574 = vector.load %arg17[%c0_325, %c0_326] : memref<1x32xf32, #tpu.memory_space<vmem>>, vector<1x32xf32>
    %575 = vector.broadcast %574 : vector<1x32xf32> to vector<2x32xf32>
    %576 = arith.addf %573, %575 : vector<2x32xf32>
    %577 = math.tanh %576 : vector<2x32xf32>
    %578 = arith.mulf %558, %577 : vector<2x32xf32>
    %c0_327 = arith.constant 0 : index
    %c0_328 = arith.constant 0 : index
    %579 = vector.load %arg18[%c0_327, %c0_328] : memref<32x128xf32, #tpu.memory_space<vmem>>, vector<32x128xf32>
    %cst_329 = arith.constant dense<0.000000e+00> : vector<2x128xf32>
    %580 = tpu.matmul %578, %579, %cst_329 {dimension_numbers = #tpu.dot_dimension_numbers<[1], [0], [0], [1], [0, 0, 1, 1], [], []>} : vector<2x32xf32>, vector<32x128xf32>, vector<2x128xf32> -> vector<2x128xf32>
    %c0_330 = arith.constant 0 : index
    %c0_331 = arith.constant 0 : index
    %581 = vector.load %arg20[%c0_330, %c0_331] : memref<16x128xf32, #tpu.memory_space<vmem>>, vector<16x128xf32>
    %cst_332 = arith.constant dense<0.000000e+00> : vector<2x128xf32>
    %582 = tpu.matmul %524, %581, %cst_332 {dimension_numbers = #tpu.dot_dimension_numbers<[1], [0], [0], [1], [0, 0, 1, 1], [], []>} : vector<2x16xf32>, vector<16x128xf32>, vector<2x128xf32> -> vector<2x128xf32>
    %583 = arith.addf %580, %582 : vector<2x128xf32>
    %c0_333 = arith.constant 0 : index
    %c0_334 = arith.constant 0 : index
    %584 = vector.load %arg19[%c0_333, %c0_334] : memref<1x128xf32, #tpu.memory_space<vmem>>, vector<1x128xf32>
    %585 = vector.broadcast %584 : vector<1x128xf32> to vector<2x128xf32>
    %586 = arith.addf %583, %585 : vector<2x128xf32>
    %c0_335 = arith.constant 0 : index
    %c0_336 = arith.constant 0 : index
    %587 = vector.load %arg1[%c0_335, %c0_336] : memref<2x1xi32, #tpu.memory_space<vmem>>, vector<2x1xi32>
    %c5_i32 = arith.constant 5 : i32
    %588 = vector.broadcast %c5_i32 : i32 to vector<2x1xi32>
    %589 = arith.cmpi sgt, %587, %588 : vector<2x1xi32>
    %cst_337 = arith.constant 0.000000e+00 : f32
    %590 = vector.shape_cast %589 : vector<2x1xi1> to vector<2x1xi1>
    %591 = vector.broadcast %590 : vector<2x1xi1> to vector<2x128xi1>
    %592 = vector.broadcast %cst_337 : f32 to vector<2x128xf32>
    %593 = arith.select %591, %586, %592 : vector<2x128xi1>, vector<2x128xf32>
    %c5_338 = arith.constant 5 : index
    %c0_339 = arith.constant 0 : index
    %c0_340 = arith.constant 0 : index
    %594 = vector.load %arg21[%c5_338, %c0_339, %c0_340] : memref<7x2x128xf32, #tpu.memory_space<vmem>>, vector<1x2x128xf32>
    %595 = vector.shape_cast %594 : vector<1x2x128xf32> to vector<2x128xf32>
    %596 = vector.shape_cast %593 : vector<2x128xf32> to vector<1x2x128xf32>
    tpu.vector_store %arg21[%c5_338, %c0_339, %c0_340], %596 {strides = array<i32>} : memref<7x2x128xf32, #tpu.memory_space<vmem>>, vector<1x2x128xf32>,
    %c6 = arith.constant 6 : index
    %c0_341 = arith.constant 0 : index
    %c0_342 = arith.constant 0 : index
    %597 = vector.load %arg2[%c6, %c0_341, %c0_342] : memref<7x2x16xf32, #tpu.memory_space<vmem>>, vector<1x2x16xf32>
    %598 = vector.shape_cast %597 : vector<1x2x16xf32> to vector<2x16xf32>
    %c0_343 = arith.constant 0 : index
    %c0_344 = arith.constant 0 : index
    %599 = vector.load %arg8[%c0_343, %c0_344] : memref<32x32xf32, #tpu.memory_space<vmem>>, vector<32x32xf32>
    %cst_345 = arith.constant dense<0.000000e+00> : vector<2x32xf32>
    %600 = tpu.matmul %578, %599, %cst_345 {dimension_numbers = #tpu.dot_dimension_numbers<[1], [0], [0], [1], [0, 0, 1, 1], [], []>} : vector<2x32xf32>, vector<32x32xf32>, vector<2x32xf32> -> vector<2x32xf32>
    %c0_346 = arith.constant 0 : index
    %c0_347 = arith.constant 0 : index
    %601 = vector.load %arg9[%c0_346, %c0_347] : memref<1x32xf32, #tpu.memory_space<vmem>>, vector<1x32xf32>
    %602 = vector.broadcast %601 : vector<1x32xf32> to vector<2x32xf32>
    %603 = arith.addf %600, %602 : vector<2x32xf32>
    %c0_348 = arith.constant 0 : index
    %c0_349 = arith.constant 0 : index
    %c0_350 = arith.constant 0 : index
    %604 = vector.load %arg4[%c0_348, %c0_349, %c0_350] : memref<2x16x32xf32, #tpu.memory_space<vmem>>, vector<2x16x32xf32>
    %605 = vector.shape_cast %603 : vector<2x32xf32> to vector<2x1x32xf32>
    %606 = vector.broadcast %605 : vector<2x1x32xf32> to vector<2x16x32xf32>
    %607 = arith.addf %604, %606 : vector<2x16x32xf32>
    %cst_351 = arith.constant 0.000000e+00 : f32
    %608 = vector.broadcast %cst_351 : f32 to vector<2x16x32xf32>
    %609 = arith.maximumf %607, %608 : vector<2x16x32xf32>
    %c0_352 = arith.constant 0 : index
    %c0_353 = arith.constant 0 : index
    %610 = vector.load %arg10[%c0_352, %c0_353] : memref<1x32xf32, #tpu.memory_space<vmem>>, vector<1x32xf32>
    %611 = vector.shape_cast %610 : vector<1x32xf32> to vector<1x1x32xf32>
    %612 = vector.broadcast %611 : vector<1x1x32xf32> to vector<2x16x32xf32>
    %613 = arith.mulf %609, %612 : vector<2x16x32xf32>
    %cst_354 = arith.constant dense<0.000000e+00> : vector<2x16xf32>
    %614 = vector.multi_reduction <add>, %613, %cst_354 [2] : vector<2x16x32xf32> to vector<2x16xf32>
    %cst_355 = arith.constant dense<0xFF800000> : vector<2xf32>
    %615 = vector.multi_reduction <maximumf>, %614, %cst_355 [1] : vector<2x16xf32> to vector<2xf32>
    %616 = vector.shape_cast %615 : vector<2xf32> to vector<2x1xf32>
    %617 = vector.broadcast %616 : vector<2x1xf32> to vector<2x16xf32>
    %618 = arith.subf %614, %617 : vector<2x16xf32>
    %619 = math.exp %618 : vector<2x16xf32>
    %cst_356 = arith.constant dense<0.000000e+00> : vector<2xf32>
    %620 = vector.multi_reduction <add>, %619, %cst_356 [1] : vector<2x16xf32> to vector<2xf32>
    %621 = vector.shape_cast %620 : vector<2xf32> to vector<2x1xf32>
    %622 = vector.broadcast %621 : vector<2x1xf32> to vector<2x16xf32>
    %623 = arith.divf %619, %622 : vector<2x16xf32>
    %c0_357 = arith.constant 0 : index
    %c0_358 = arith.constant 0 : index
    %c0_359 = arith.constant 0 : index
    %624 = vector.load %arg3[%c0_357, %c0_358, %c0_359] : memref<2x16x32xf32, #tpu.memory_space<vmem>>, vector<2x16x32xf32>
    %625 = vector.shape_cast %623 : vector<2x16xf32> to vector<2x16x1xf32>
    %626 = vector.broadcast %625 : vector<2x16x1xf32> to vector<2x16x32xf32>
    %627 = arith.mulf %624, %626 : vector<2x16x32xf32>
    %cst_360 = arith.constant dense<0.000000e+00> : vector<2x32xf32>
    %628 = vector.multi_reduction <add>, %627, %cst_360 [1] : vector<2x16x32xf32> to vector<2x32xf32>
    %c0_361 = arith.constant 0 : index
    %c0_362 = arith.constant 0 : index
    %629 = vector.load %arg11[%c0_361, %c0_362] : memref<16x640xf32, #tpu.memory_space<vmem>>, vector<16x640xf32>
    %cst_363 = arith.constant dense<0.000000e+00> : vector<2x640xf32>
    %630 = tpu.matmul %598, %629, %cst_363 {dimension_numbers = #tpu.dot_dimension_numbers<[1], [0], [0], [1], [0, 0, 1, 1], [], []>} : vector<2x16xf32>, vector<16x640xf32>, vector<2x640xf32> -> vector<2x640xf32>
    %c0_364 = arith.constant 0 : index
    %c0_365 = arith.constant 0 : index
    %631 = vector.load %arg12[%c0_364, %c0_365] : memref<32x640xf32, #tpu.memory_space<vmem>>, vector<32x640xf32>
    %cst_366 = arith.constant dense<0.000000e+00> : vector<2x640xf32>
    %632 = tpu.matmul %628, %631, %cst_366 {dimension_numbers = #tpu.dot_dimension_numbers<[1], [0], [0], [1], [0, 0, 1, 1], [], []>} : vector<2x32xf32>, vector<32x640xf32>, vector<2x640xf32> -> vector<2x640xf32>
    %633 = arith.addf %630, %632 : vector<2x640xf32>
    %c0_367 = arith.constant 0 : index
    %c0_368 = arith.constant 0 : index
    %634 = vector.load %arg13[%c0_367, %c0_368] : memref<32x640xf32, #tpu.memory_space<vmem>>, vector<32x640xf32>
    %cst_369 = arith.constant dense<0.000000e+00> : vector<2x640xf32>
    %635 = tpu.matmul %578, %634, %cst_369 {dimension_numbers = #tpu.dot_dimension_numbers<[1], [0], [0], [1], [0, 0, 1, 1], [], []>} : vector<2x32xf32>, vector<32x640xf32>, vector<2x640xf32> -> vector<2x640xf32>
    %636 = arith.addf %633, %635 : vector<2x640xf32>
    %c0_370 = arith.constant 0 : index
    %c0_371 = arith.constant 0 : index
    %637 = vector.load %arg14[%c0_370, %c0_371] : memref<1x640xf32, #tpu.memory_space<vmem>>, vector<1x640xf32>
    %638 = vector.broadcast %637 : vector<1x640xf32> to vector<2x640xf32>
    %639 = arith.addf %636, %638 : vector<2x640xf32>
    %640 = vector.extract_strided_slice %639 {offsets = [0, 0], sizes = [2, 32], strides = [1, 1]} : vector<2x640xf32> to vector<2x32xf32>
    %641 = arith.negf %640 : vector<2x32xf32>
    %642 = math.exp %641 : vector<2x32xf32>
    %cst_372 = arith.constant 1.000000e+00 : f32
    %643 = vector.broadcast %cst_372 : f32 to vector<2x32xf32>
    %644 = arith.addf %643, %642 : vector<2x32xf32>
    %645 = arith.divf %643, %644 : vector<2x32xf32>
    %646 = vector.extract_strided_slice %639 {offsets = [0, 128], sizes = [2, 32], strides = [1, 1]} : vector<2x640xf32> to vector<2x32xf32>
    %647 = arith.negf %646 : vector<2x32xf32>
    %648 = math.exp %647 : vector<2x32xf32>
    %cst_373 = arith.constant 1.000000e+00 : f32
    %649 = vector.broadcast %cst_373 : f32 to vector<2x32xf32>
    %650 = arith.addf %649, %648 : vector<2x32xf32>
    %651 = arith.divf %649, %650 : vector<2x32xf32>
    %652 = vector.extract_strided_slice %639 {offsets = [0, 256], sizes = [2, 32], strides = [1, 1]} : vector<2x640xf32> to vector<2x32xf32>
    %653 = arith.negf %652 : vector<2x32xf32>
    %654 = math.exp %653 : vector<2x32xf32>
    %cst_374 = arith.constant 1.000000e+00 : f32
    %655 = vector.broadcast %cst_374 : f32 to vector<2x32xf32>
    %656 = arith.addf %655, %654 : vector<2x32xf32>
    %657 = arith.divf %655, %656 : vector<2x32xf32>
    %658 = vector.extract_strided_slice %639 {offsets = [0, 384], sizes = [2, 32], strides = [1, 1]} : vector<2x640xf32> to vector<2x32xf32>
    %659 = math.tanh %658 : vector<2x32xf32>
    %660 = vector.extract_strided_slice %639 {offsets = [0, 512], sizes = [2, 32], strides = [1, 1]} : vector<2x640xf32> to vector<2x32xf32>
    %661 = math.tanh %660 : vector<2x32xf32>
    %662 = arith.mulf %651, %565 : vector<2x32xf32>
    %663 = arith.mulf %645, %659 : vector<2x32xf32>
    %664 = arith.addf %662, %663 : vector<2x32xf32>
    %665 = arith.mulf %651, %568 : vector<2x32xf32>
    %666 = arith.mulf %645, %661 : vector<2x32xf32>
    %667 = arith.addf %665, %666 : vector<2x32xf32>
    %c0_375 = arith.constant 0 : index
    %c0_376 = arith.constant 0 : index
    %668 = vector.load %arg15[%c0_375, %c0_376] : memref<32x32xf32, #tpu.memory_space<vmem>>, vector<32x32xf32>
    %cst_377 = arith.constant dense<0.000000e+00> : vector<2x32xf32>
    %669 = tpu.matmul %664, %668, %cst_377 {dimension_numbers = #tpu.dot_dimension_numbers<[1], [0], [0], [1], [0, 0, 1, 1], [], []>} : vector<2x32xf32>, vector<32x32xf32>, vector<2x32xf32> -> vector<2x32xf32>
    %c0_378 = arith.constant 0 : index
    %c0_379 = arith.constant 0 : index
    %670 = vector.load %arg16[%c0_378, %c0_379] : memref<32x32xf32, #tpu.memory_space<vmem>>, vector<32x32xf32>
    %cst_380 = arith.constant dense<0.000000e+00> : vector<2x32xf32>
    %671 = tpu.matmul %667, %670, %cst_380 {dimension_numbers = #tpu.dot_dimension_numbers<[1], [0], [0], [1], [0, 0, 1, 1], [], []>} : vector<2x32xf32>, vector<32x32xf32>, vector<2x32xf32> -> vector<2x32xf32>
    %672 = arith.addf %669, %671 : vector<2x32xf32>
    %c0_381 = arith.constant 0 : index
    %c0_382 = arith.constant 0 : index
    %673 = vector.load %arg17[%c0_381, %c0_382] : memref<1x32xf32, #tpu.memory_space<vmem>>, vector<1x32xf32>
    %674 = vector.broadcast %673 : vector<1x32xf32> to vector<2x32xf32>
    %675 = arith.addf %672, %674 : vector<2x32xf32>
    %676 = math.tanh %675 : vector<2x32xf32>
    %677 = arith.mulf %657, %676 : vector<2x32xf32>
    %c0_383 = arith.constant 0 : index
    %c0_384 = arith.constant 0 : index
    %678 = vector.load %arg18[%c0_383, %c0_384] : memref<32x128xf32, #tpu.memory_space<vmem>>, vector<32x128xf32>
    %cst_385 = arith.constant dense<0.000000e+00> : vector<2x128xf32>
    %679 = tpu.matmul %677, %678, %cst_385 {dimension_numbers = #tpu.dot_dimension_numbers<[1], [0], [0], [1], [0, 0, 1, 1], [], []>} : vector<2x32xf32>, vector<32x128xf32>, vector<2x128xf32> -> vector<2x128xf32>
    %c0_386 = arith.constant 0 : index
    %c0_387 = arith.constant 0 : index
    %680 = vector.load %arg20[%c0_386, %c0_387] : memref<16x128xf32, #tpu.memory_space<vmem>>, vector<16x128xf32>
    %cst_388 = arith.constant dense<0.000000e+00> : vector<2x128xf32>
    %681 = tpu.matmul %623, %680, %cst_388 {dimension_numbers = #tpu.dot_dimension_numbers<[1], [0], [0], [1], [0, 0, 1, 1], [], []>} : vector<2x16xf32>, vector<16x128xf32>, vector<2x128xf32> -> vector<2x128xf32>
    %682 = arith.addf %679, %681 : vector<2x128xf32>
    %c0_389 = arith.constant 0 : index
    %c0_390 = arith.constant 0 : index
    %683 = vector.load %arg19[%c0_389, %c0_390] : memref<1x128xf32, #tpu.memory_space<vmem>>, vector<1x128xf32>
    %684 = vector.broadcast %683 : vector<1x128xf32> to vector<2x128xf32>
    %685 = arith.addf %682, %684 : vector<2x128xf32>
    %c0_391 = arith.constant 0 : index
    %c0_392 = arith.constant 0 : index
    %686 = vector.load %arg1[%c0_391, %c0_392] : memref<2x1xi32, #tpu.memory_space<vmem>>, vector<2x1xi32>
    %c6_i32 = arith.constant 6 : i32
    %687 = vector.broadcast %c6_i32 : i32 to vector<2x1xi32>
    %688 = arith.cmpi sgt, %686, %687 : vector<2x1xi32>
    %cst_393 = arith.constant 0.000000e+00 : f32
    %689 = vector.shape_cast %688 : vector<2x1xi1> to vector<2x1xi1>
    %690 = vector.broadcast %689 : vector<2x1xi1> to vector<2x128xi1>
    %691 = vector.broadcast %cst_393 : f32 to vector<2x128xf32>
    %692 = arith.select %690, %685, %691 : vector<2x128xi1>, vector<2x128xf32>
    %c6_394 = arith.constant 6 : index
    %c0_395 = arith.constant 0 : index
    %c0_396 = arith.constant 0 : index
    %693 = vector.load %arg21[%c6_394, %c0_395, %c0_396] : memref<7x2x128xf32, #tpu.memory_space<vmem>>, vector<1x2x128xf32>
    %694 = vector.shape_cast %693 : vector<1x2x128xf32> to vector<2x128xf32>
    %695 = vector.shape_cast %692 : vector<2x128xf32> to vector<1x2x128xf32>
    tpu.vector_store %arg21[%c6_394, %c0_395, %c0_396], %695 {strides = array<i32>} : memref<7x2x128xf32, #tpu.memory_space<vmem>>, vector<1x2x128xf32>,
    return
  }
  func.func @transform_0(%arg0: i32) -> (i32, i32) {
    %c0_i32 = arith.constant 0 : i32
    %c0_i32_0 = arith.constant 0 : i32
    %c0_i32_1 = arith.constant 0 : i32
    return %c0_i32, %c0_i32_0 : i32, i32
  }
  func.func @transform_1(%arg0: i32) -> (i32, i32, i32) {
    %c0_i32 = arith.constant 0 : i32
    %c0_i32_0 = arith.constant 0 : i32
    %c0_i32_1 = arith.constant 0 : i32
    %c0_i32_2 = arith.constant 0 : i32
    return %c0_i32, %c0_i32_0, %c0_i32_1 : i32, i32, i32
  }
  func.func @transform_2(%arg0: i32) -> (i32, i32, i32) {
    %c0_i32 = arith.constant 0 : i32
    %c0_i32_0 = arith.constant 0 : i32
    %c0_i32_1 = arith.constant 0 : i32
    %c0_i32_2 = arith.constant 0 : i32
    return %c0_i32, %c0_i32_0, %c0_i32_1 : i32, i32, i32
  }
  func.func @transform_3(%arg0: i32) -> (i32, i32, i32) {
    %c0_i32 = arith.constant 0 : i32
    %c0_i32_0 = arith.constant 0 : i32
    %c0_i32_1 = arith.constant 0 : i32
    %c0_i32_2 = arith.constant 0 : i32
    return %c0_i32, %c0_i32_0, %c0_i32_1 : i32, i32, i32
  }
  func.func @transform_4(%arg0: i32) -> (i32, i32) {
    %c0_i32 = arith.constant 0 : i32
    %c0_i32_0 = arith.constant 0 : i32
    %c0_i32_1 = arith.constant 0 : i32
    return %c0_i32, %c0_i32_0 : i32, i32
  }
  func.func @transform_5(%arg0: i32) -> (i32, i32) {
    %c0_i32 = arith.constant 0 : i32
    %c0_i32_0 = arith.constant 0 : i32
    %c0_i32_1 = arith.constant 0 : i32
    return %c0_i32, %c0_i32_0 : i32, i32
  }
  func.func @transform_6(%arg0: i32) -> (i32, i32) {
    %c0_i32 = arith.constant 0 : i32
    %c0_i32_0 = arith.constant 0 : i32
    %c0_i32_1 = arith.constant 0 : i32
    return %c0_i32, %c0_i32_0 : i32, i32
  }
  func.func @transform_7(%arg0: i32) -> (i32, i32) {
    %c0_i32 = arith.constant 0 : i32
    %c0_i32_0 = arith.constant 0 : i32
    %c0_i32_1 = arith.constant 0 : i32
    return %c0_i32, %c0_i32_0 : i32, i32
  }
  func.func @transform_8(%arg0: i32) -> (i32, i32) {
    %c0_i32 = arith.constant 0 : i32
    %c0_i32_0 = arith.constant 0 : i32
    %c0_i32_1 = arith.constant 0 : i32
    return %c0_i32, %c0_i32_0 : i32, i32
  }
  func.func @transform_9(%arg0: i32) -> (i32, i32) {
    %c0_i32 = arith.constant 0 : i32
    %c0_i32_0 = arith.constant 0 : i32
    %c0_i32_1 = arith.constant 0 : i32
    return %c0_i32, %c0_i32_0 : i32, i32
  }
  func.func @transform_10(%arg0: i32) -> (i32, i32) {
    %c0_i32 = arith.constant 0 : i32
    %c0_i32_0 = arith.constant 0 : i32
    %c0_i32_1 = arith.constant 0 : i32
    return %c0_i32, %c0_i32_0 : i32, i32
  }
  func.func @transform_11(%arg0: i32) -> (i32, i32) {
    %c0_i32 = arith.constant 0 : i32
    %c0_i32_0 = arith.constant 0 : i32
    %c0_i32_1 = arith.constant 0 : i32
    return %c0_i32, %c0_i32_0 : i32, i32
  }
  func.func @transform_12(%arg0: i32) -> (i32, i32) {
    %c0_i32 = arith.constant 0 : i32
    %c0_i32_0 = arith.constant 0 : i32
    %c0_i32_1 = arith.constant 0 : i32
    return %c0_i32, %c0_i32_0 : i32, i32
  }
  func.func @transform_13(%arg0: i32) -> (i32, i32) {
    %c0_i32 = arith.constant 0 : i32
    %c0_i32_0 = arith.constant 0 : i32
    %c0_i32_1 = arith.constant 0 : i32
    return %c0_i32, %c0_i32_0 : i32, i32
  }
  func.func @transform_14(%arg0: i32) -> (i32, i32) {
    %c0_i32 = arith.constant 0 : i32
    %c0_i32_0 = arith.constant 0 : i32
    %c0_i32_1 = arith.constant 0 : i32
    return %c0_i32, %c0_i32_0 : i32, i32
  }
  func.func @transform_15(%arg0: i32) -> (i32, i32) {
    %c0_i32 = arith.constant 0 : i32
    %c0_i32_0 = arith.constant 0 : i32
    %c0_i32_1 = arith.constant 0 : i32
    return %c0_i32, %c0_i32_0 : i32, i32
  }
  func.func @transform_16(%arg0: i32) -> (i32, i32) {
    %c0_i32 = arith.constant 0 : i32
    %c0_i32_0 = arith.constant 0 : i32
    %c0_i32_1 = arith.constant 0 : i32
    return %c0_i32, %c0_i32_0 : i32, i32
  }
  func.func @transform_17(%arg0: i32) -> (i32, i32) {
    %c0_i32 = arith.constant 0 : i32
    %c0_i32_0 = arith.constant 0 : i32
    %c0_i32_1 = arith.constant 0 : i32
    return %c0_i32, %c0_i32_0 : i32, i32
  }
  func.func @transform_18(%arg0: i32) -> (i32, i32) {
    %c0_i32 = arith.constant 0 : i32
    %c0_i32_0 = arith.constant 0 : i32
    %c0_i32_1 = arith.constant 0 : i32
    return %c0_i32, %c0_i32_0 : i32, i32
  }
  func.func @transform_19(%arg0: i32) -> (i32, i32) {
    %c0_i32 = arith.constant 0 : i32
    %c0_i32_0 = arith.constant 0 : i32
    %c0_i32_1 = arith.constant 0 : i32
    return %c0_i32, %c0_i32_0 : i32, i32
  }
  func.func @transform_20(%arg0: i32) -> (i32, i32, i32) {
    %c0_i32 = arith.constant 0 : i32
    %c0_i32_0 = arith.constant 0 : i32
    %c0_i32_1 = arith.constant 0 : i32
    %c0_i32_2 = arith.constant 0 : i32
    return %c0_i32, %c0_i32_0, %c0_i32_1 : i32, i32, i32
  }
}

</mosaic_0001>

<bundles_post_ra>
// kernel: decoder_forward.1
= control target key start
LH: loop header
LB: loop body
LE: loop exit
PB: predicated region body
PF: predicated region fallthrough
CT: control target
= control target key end

     0   :  { %v14380_v0 = vmov 0.0|0.0   ;;  %vm11784_vm0 = vmmov 0   ;;  %v14382_v4 = vmov 0.0   ;;  %vm80_vm1 = vcmask 261120   ;;  %s14353_s7 = inlined_call_operand.vmem [shape: f32[32,32], index: 7, kind: input, shape index: {}]   ;;  %s14354_s4 = inlined_call_operand.vmem [shape: f32[2,32], index: 4, kind: input, shape index: {}]   ;;  %s14355_s8 = inlined_call_operand.vmem [shape: f32[1,32], index: 8, kind: input, shape index: {}]   ;;  %s14356_s3 = inlined_call_operand.vmem [shape: f32[2,16,32], index: 3, kind: input, shape index: {}]   ;;  %s14357_s9 = inlined_call_operand.vmem [shape: f32[1,32], index: 9, kind: input, shape index: {}]   ;;  %s14358_s11 = inlined_call_operand.vmem [shape: f32[32,640], index: 11, kind: input, shape index: {}]   ;;  %s14359_s2 = inlined_call_operand.vmem [shape: f32[2,16,32], index: 2, kind: input, shape index: {}]   ;;  %s14360_s10 = inlined_call_operand.vmem [shape: f32[16,640], index: 10, kind: input, shape index: {}]   ;;  %s14361_s12 = inlined_call_operand.vmem [shape: f32[32,640], index: 12, kind: input, shape index: {}]   ;;  %s14362_s1 = inlined_call_operand.vmem [shape: f32[7,2,16], index: 1, kind: input, shape index: {}]   ;;  %s14363_s15 = inlined_call_operand.vmem [shape: f32[32,32], index: 15, kind: input, shape index: {}]   ;;  %s14364_s14 = inlined_call_operand.vmem [shape: f32[32,32], index: 14, kind: input, shape index: {}]   ;;  %s14365_s13 = inlined_call_operand.vmem [shape: f32[1,640], index: 13, kind: input, shape index: {}]   ;;  %s14366_s6 = inlined_call_operand.vmem [shape: f32[2,32], index: 6, kind: input, shape index: {}]   ;;  %s14367_s5 = inlined_call_operand.vmem [shape: f32[2,32], index: 5, kind: input, shape index: {}]   ;;  %s14368_s19 = inlined_call_operand.vmem [shape: f32[16,128], index: 19, kind: input, shape index: {}]   ;;  %s14369_s17 = inlined_call_operand.vmem [shape: f32[32,128], index: 17, kind: input, shape index: {}]   ;;  %s14370_s16 = inlined_call_operand.vmem [shape: f32[1,32], index: 16, kind: input, shape index: {}]   ;;  %s14371_s0 = inlined_call_operand.vmem [shape: s32[2,1], index: 0, kind: input, shape index: {}]   ;;  %s14372_s18 = inlined_call_operand.vmem [shape: f32[1,128], index: 18, kind: input, shape index: {}]   ;;  %s14373_s20 = inlined_call_operand.vmem [shape: f32[7,2,128], index: 20, kind: output, shape index: {}]  }
   0x1   :  { %14418 = sst [smem:[#allocation19_spill]] %s14353_s7  ;;  %10936 = vmatprep.subr.bf16.mxu0 %v14380_v0  ;;  %10384 = vmatprep.mubr.msk.f32.mxu0 %vm11784_vm0, %v14382_v4  ;;  %v11786_v9 = vmov 1966171168   ;;  %v162_v11 = vlaneseq  ;;  %vm237_vm2 = vcmask 130112   ;;  %vm248_vm3 = vcmask 1041409  }
   0x2   :  { %14419 = sst [smem:[#allocation20_spill]] %s14354_s4  ;;  %s14423_s23 = sld [smem:[#allocation19_spill]]  ;;  %479 = vmatprep.mubr.f32.mxu1 %v14382_v4  ;;  %v160_v10 = vunpack.c.l.s4 %v11786_v9  ;;  %vm251_vm4 = vcmask 123904   ;;  %v14378_v63 = vmov 0   ;;  %vm627_vm5 = vcmask 130048  }
   0x3   :  { %14420 = sst [smem:[#allocation21_spill]] %s14355_s8  ;;  %s14424_s29 = sld [smem:[#allocation20_spill]]  ;;  %v11924_v13 = vshrl.u32 %v162_v11, 7  ;;  %v227_v47 = vand.u32 127, %v162_v11  ;;  %11572 = vset.pattern.permute.xlu0 %v14378_v63  ;;  %11571 = vset.pattern.permute.xlu1 %v14378_v63 }
   0x4   :  { %14421 = sst [smem:[#allocation22_spill]] %s14356_s3  ;;  %v161_v12 = vunpack.c.0.s8 %v160_v10  ;;  %s14425_s21 = sld [smem:[#allocation21_spill]] }
   0x5   :  { %14422 = sst [smem:[#allocation23_spill]] %s14357_s9  ;;  %v11937_v20 = vsub.s32 0, %v11924_v13  ;;  %s14426_s24 = sld [smem:[#allocation22_spill]]  ;;  %v232_v48 = vadd.s32 4294967288, %v227_v47  ;;  %v11984_v52 = vsub.s32 %v227_v47, %v11924_v13 }
   0x6   :  { %v11932_v15 = vsub.s32 %v161_v12, %v11924_v13  ;;  %s14427_s30 = sld [smem:[#allocation23_spill]] }
   0x7   :  { %v11981_v50 = vsub.s32 %v232_v48, %v11924_v13 }
   0x8   :  { %v69_v1 = vld [vmem:[%s14423_s23] sm:$0xff]  ;;  %v70_v2 = vld [vmem:[%s14423_s23 + $0x8] sm:$0xff]  ;;  %v71_v3 = vld [vmem:[%s14423_s23 + $0x10] sm:$0xff] }
   0x9   :  { %v11905_v5 = vpack.c.bf16 %v70_v2, %v69_v1  ;;  %v72_v6 = vld [vmem:[%s14423_s23 + $0x18] sm:$0xff]  ;;  %v11919_v8 = vld [vmem:[%s14424_s29] sm:$0x3]  ;;  %v11997_v1 = vsub.s32 1, %v11924_v13 }
   0xa   :  { %v11912_v7 = vpack.c.bf16 %v72_v6, %v71_v3  ;;  %v11929_v14 = vld [vmem:[%s14425_s21] ss:$0 sm:$0xff] }
   0xb   :  { %10938 = vmatpush3.bf16.msra.mxu0 %v11905_v5  ;;  %v11943_v23 = vld [vmem:[%s14426_s24] sm:$0xff]  ;;  %v11948_v24 = vld [vmem:[%s14426_s24 + $0x8] sm:$0xff]  ;;  %v11955_v27 = vld [vmem:[%s14426_s24 + $0x10] sm:$0xff] }
   0xc   :  { %10939 = vmatprep.subr.bf16.mxu0 %v14380_v0  ;;  %v11960_v28 = vld [vmem:[%s14426_s24 + $0x18] sm:$0xff]  ;;  %v11968_v32 = vld [vmem:[%s14427_s30] ss:$0 sm:$0xff] }
   0xf   :  { %10941 = vmatpush3.bf16.msra.mxu0 %v11912_v7 }
  0x12   :  { %10385 = vmatmul.mubr.msk.f32.vlgmr.msra.gmra.mrb[0].mxu0 %vm80_vm1, %v11919_v8 }
  0x13   :  { %550 = vmatprep.mubr.f32.mxu0 %v14382_v4 }
  0xe5   :  { %v150_v16 = vpop.f32.mrb[0].mxu0 }
  0xe6   :  { %v151_v17 = vadd.f32 %v11929_v14, %v150_v16  ;;  %v10386_v18 = vpop.f32.mrb[1].mxu0 }
  0xe8   :  { %v165_v19 = vrot.slane %v151_v17, %v11932_v15 }
  0xea   :  { %v166_v21 = vcombine.high %v165_v19, %v165_v19  ;;  %v173_v22 = vrot.slane %v165_v19, %v11932_v15 }
  0xec   :  { %v180_v25 = vrot.slane %v166_v21, %v11932_v15  ;;  %v184_v26 = vrot.slane %v173_v22, %v11937_v20 }
  0xee   :  { %v191_v29 = vadd.f32 %v184_v26, %v11943_v23  ;;  %v188_v30 = vrot.slane %v180_v25, %v11937_v20  ;;  %v192_v31 = vadd.f32 %v184_v26, %v11948_v24 }
  0xf0   :  { %v195_v33 = vmax.f32 %v191_v29, 0.0  ;;  %v193_v34 = vadd.f32 %v188_v30, %v11955_v27  ;;  %v196_v35 = vmax.f32 %v192_v31, 0.0  ;;  %v194_v36 = vadd.f32 %v188_v30, %v11960_v28 }
  0xf2   :  { %v206_v37 = vmul.f32 %v11968_v32, %v195_v33  ;;  %v197_v38 = vmax.f32 %v193_v34, 0.0  ;;  %v198_v39 = vmax.f32 %v194_v36, 0.0  ;;  %v207_v42 = vmul.f32 %v11968_v32, %v196_v35 }
  0xf4   :  { %v210_v40 = vsel %vm80_vm1, %v206_v37, 0.0  ;;  %v208_v41 = vmul.f32 %v11968_v32, %v197_v38  ;;  %v209_v44 = vmul.f32 %v11968_v32, %v198_v39  ;;  %v213_v45 = vsel %vm80_vm1, %v207_v42, 0.0 }
  0xf5   :  { %211 = vadd.xlane.f32.xlu0 %v210_v40 }
  0xf6   :  { %v216_v43 = vsel %vm80_vm1, %v208_v41, 0.0  ;;  %v219_v46 = vsel %vm80_vm1, %v209_v44, 0.0 }
  0xf7   :  { %217 = vadd.xlane.f32.xlu1 %v216_v43 }
  0xf9   :  { %214 = vadd.xlane.f32.xlu0 %v213_v45 }
  0xfb   :  { %220 = vadd.xlane.f32.xlu1 %v219_v46 }
 0x182   :  { %v212_v49 = vpop.xlane.xlu0 %211 }
 0x183   :  { %v231_v56 = vrot.slane %v212_v49, %v11984_v52 }
 0x184   :  { %v218_v51 = vpop.xlane.xlu1 %217 }
 0x185   :  { %v242_v57 = vrot.slane %v218_v51, %v11984_v52 }
 0x186   :  { %v215_v53 = vpop.xlane.xlu0 %214 }
 0x187   :  { %v236_v54 = vrot.slane %v215_v53, %v11981_v50 }
 0x188   :  { %v221_v55 = vpop.xlane.xlu1 %220 }
 0x189   :  { %v246_v58 = vrot.slane %v221_v55, %v11981_v50  ;;  %v238_v59 = vsel %vm237_vm2, %v236_v54, %v231_v56  ;;  %v396_v54 = vld [vmem:[%s14358_s11 + $0x30] sm:$0xff]  ;;  %v390_v56 = vld [vmem:[%s14358_s11] sm:$0xff] }
 0x18b   :  { %v247_v60 = vsel %vm237_vm2, %v246_v58, %v242_v57  ;;  %v395_v57 = vld [vmem:[%s14358_s11 + $0x28] sm:$0xff]  ;;  %v393_v58 = vld [vmem:[%s14358_s11 + $0x18] sm:$0xff] }
 0x18c   :  { %v249_v61 = vsel %vm248_vm3, %v247_v60, %v238_v59  ;;  %v12028_v59 = vpack.c.bf16 %v395_v57, %v390_v56  ;;  %v398_v60 = vld [vmem:[%s14358_s11 + $0x40] sm:$0xff] }
 0x18d   :  { %v252_v62 = vsel %vm251_vm4, %v249_v61, -inf  ;;  %v392_v61 = vld [vmem:[%s14358_s11 + $0x10] sm:$0xff] }
 0x18e   :  { %253 = vmax.xlane.f32.xlu0 %v252_v62  ;;  %v397_v62 = vld [vmem:[%s14358_s11 + $0x38] sm:$0xff] }
 0x21b   :  { %v254_v2 = vpop.xlane.xlu0 %253 }
 0x21c   :  { %v259_v3 = vrot.slane %v254_v2, %v11937_v20  ;;  %v263_v6 = vrot.slane %v254_v2, %v11997_v1  ;;  %v12040_v2 = vpack.c.bf16 %v398_v60, %v393_v58 }
 0x21e   :  { %v266_v9 = vsub.f32 %v212_v49, %v259_v3  ;;  %v267_v10 = vsub.f32 %v215_v53, %v259_v3  ;;  %v268_v11 = vsub.f32 %v218_v51, %v263_v6  ;;  %v269_v17 = vsub.f32 %v221_v55, %v263_v6  ;;  %v391_v53 = vld [vmem:[%s14358_s11 + $0x8] sm:$0xff]  ;;  %v401_v6 = vld [vmem:[%s14358_s11 + $0x58] sm:$0xff]  ;;  %10951 = vmatprep.subr.bf16.mxu0 %v12040_v2 }
 0x21f   :  { %v12017_v55 = vpack.c.bf16 %v396_v54, %v391_v53  ;;  %v12042_v3 = vpack.c.bf16 %v397_v62, %v392_v61 }
 0x220   :  { %v270_v12 = vmul.f32 1.442695, %v266_v9  ;;  %v272_v16 = vmul.f32 1.442695, %v267_v10  ;;  %v274_v18 = vmul.f32 1.442695, %v268_v11 }
 0x221   :  { %v276_v19 = vmul.f32 1.442695, %v269_v17  ;;  %10943 = vmatprep.subr.bf16.mxu1 %v12017_v55  ;;  %v406_v9 = vld [vmem:[%s14358_s11 + $0x80] sm:$0xff]  ;;  %v400_v10 = vld [vmem:[%s14358_s11 + $0x50] sm:$0xff]  ;;  %10953 = vmatpush1.bf16.msra.mxu0 %v12042_v3 }
 0x222   :  { %11573 = vpow2.f32 %v270_v12  ;;  %10945 = vmatpush1.bf16.msra.mxu1 %v12028_v59  ;;  %v12054_v11 = vpack.c.bf16 %v406_v9, %v401_v6  ;;  %v405_v12 = vld [vmem:[%s14358_s11 + $0x78] sm:$0xff]  ;;  %v408_v17 = vld [vmem:[%s14358_s11 + $0x90] sm:$0xff] }
 0x223   :  { %11575 = vpow2.f32 %v272_v16  ;;  %v403_v16 = vld [vmem:[%s14358_s11 + $0x68] sm:$0xff] }
 0x224   :  { %11577 = vpow2.f32 %v274_v18  ;;  %v12066_v18 = vpack.c.bf16 %v405_v12, %v400_v10  ;;  %10947 = vmatprep.subr.bf16.mxu1 %v12054_v11 }
 0x225   :  { %11579 = vpow2.f32 %v276_v19  ;;  %v12068_v19 = vpack.c.bf16 %v408_v17, %v403_v16  ;;  %v394_v16 = vld [vmem:[%s14358_s11 + $0x20] sm:$0xff]  ;;  %v399_v17 = vld [vmem:[%s14358_s11 + $0x48] sm:$0xff] }
 0x226   :  { %10949 = vmatpush1.bf16.msra.mxu1 %v12066_v18 }
 0x227   :  { %10955 = vmatprep.subr.bf16.mxu0 %v12068_v19  ;;  %10958 = vmatprep.subr.bf16.mxu1 %v14380_v0 }
 0x22c   :  { %v11574_v21 = vpop.eup %11573 }
 0x22d   :  { %v11576_v22 = vpop.eup %11575  ;;  %283 = vperm.xlu1 %11571, %v11574_v21  }
 0x22e   :  { %286 = vperm.xlu0 %11572, %v11576_v22   ;;  %v11578_v25 = vpop.eup %11577 }
 0x22f   :  { %v11580_v26 = vpop.eup %11579 }
 0x231   :  { %289 = vperm.xlu1 %11571, %v11578_v25  }
 0x235   :  { %292 = vperm.xlu1 %11571, %v11580_v26  }
 0x2ac   :  { %v284_v29 = vpop.permute.xlu1 %283 }
 0x2ad   :  { %v287_v30 = vpop.permute.xlu0 %286  ;;  %v297_v34 = vrot.slane %v284_v29, %v11984_v52  ;;  %v12088_v29 = vld [vmem:[%s14359_s2] sm:$0xff] }
 0x2ae   :  { %v301_v33 = vrot.slane %v287_v30, %v11981_v50  ;;  %v12093_v30 = vld [vmem:[%s14359_s2 + $0x8] sm:$0xff] }
 0x2b0   :  { %v290_v31 = vpop.permute.xlu1 %289  ;;  %v302_v38 = vsel %vm237_vm2, %v301_v33, %v297_v34 }
 0x2b1   :  { %v306_v36 = vrot.slane %v290_v31, %v11984_v52 }
 0x2b4   :  { %v293_v35 = vpop.permute.xlu1 %292 }
 0x2b5   :  { %v310_v37 = vrot.slane %v293_v35, %v11981_v50 }
 0x2b7   :  { %v311_v39 = vsel %vm237_vm2, %v310_v37, %v306_v36 }
 0x2b8   :  { %v312_v40 = vsel %vm248_vm3, %v311_v39, %v302_v38 }
 0x2b9   :  { %v314_v41 = vsel %vm251_vm4, %v312_v40, 0.0 }
 0x2ba   :  { %315 = vadd.xlane.f32.xlu1 %v314_v41 }
 0x347   :  { %v316_v42 = vpop.xlane.xlu1 %315 }
 0x348   :  { %v321_v43 = vrot.slane %v316_v42, %v11937_v20  ;;  %v325_v44 = vrot.slane %v316_v42, %v11997_v1  ;;  %v12105_v42 = vld [vmem:[%s14359_s2 + $0x10] sm:$0xff] }
 0x34a   :  { %11581 = vrcp.f32 %v321_v43 }
 0x34b   :  { %11583 = vrcp.f32 %v325_v44  ;;  %v12110_v44 = vld [vmem:[%s14359_s2 + $0x18] sm:$0xff] }
 0x354   :  { %v11582_v45 = vpop.eup %11581 }
 0x355   :  { %v329_v46 = vmul.f32 %v11582_v45, %v11574_v21  ;;  %v330_v47 = vmul.f32 %v11582_v45, %v11576_v22  ;;  %v11584_v48 = vpop.eup %11583  ;;  %v402_v21 = vld [vmem:[%s14358_s11 + $0x60] sm:$0xff]  ;;  %v407_v22 = vld [vmem:[%s14358_s11 + $0x88] sm:$0xff] }
 0x356   :  { %v332_v49 = vmul.f32 %v11584_v48, %v11578_v25  ;;  %v333_v51 = vmul.f32 %v11584_v48, %v11580_v26  ;;  %v12078_v25 = vpack.c.bf16 %v407_v22, %v402_v21  ;;  %v384_v21 = vld [vmem:[%s14360_s10 + $0x20] sm:$0xff]  ;;  %v389_v22 = vld [vmem:[%s14360_s10 + $0x48] sm:$0xff] }
 0x357   :  { %340 = vperm.xlu0 %11572, %v329_v46  }
 0x358   :  { %10957 = vmatpush1.bf16.msra.mxu0 %v12078_v25 }
 0x359   :  { %10972 = vmatprep.subr.bf16.mxu0 %v14380_v0 }
 0x35b   :  { %345 = vperm.xlu0 %11572, %v330_v47  }
 0x35f   :  { %350 = vperm.xlu0 %11572, %v332_v49  }
 0x363   :  { %355 = vperm.xlu0 %11572, %v333_v51  }
 0x3d6   :  { %v341_v26 = vpop.permute.xlu0 %340 }
 0x3d7   :  { %v358_v31 = vmul.f32 %v341_v26, %v12088_v29  ;;  %v1311_v34 = vrot.slane %v341_v26, %v11984_v52 }
 0x3d9   :  { %v362_v37 = vsel %vm80_vm1, %v358_v31, 0.0  ;;  %v846_v31 = vld [vmem:[%s14361_s12 + $0x18] sm:$0xff] }
 0x3da   :  { %v346_v33 = vpop.permute.xlu0 %345 }
 0x3db   :  { %v359_v35 = vmul.f32 %v346_v33, %v12093_v30  ;;  %v1315_v36 = vrot.slane %v346_v33, %v11981_v50  ;;  %v851_v33 = vld [vmem:[%s14361_s12 + $0x40] sm:$0xff] }
 0x3dd   :  { %v363_v38 = vsel %vm80_vm1, %v359_v35, 0.0  ;;  %v1316_v39 = vsel %vm237_vm2, %v1315_v36, %v1311_v34  ;;  %v12140_v36 = vpack.c.bf16 %v399_v17, %v394_v16  ;;  %v382_v17 = vld [vmem:[%s14360_s10 + $0x10] sm:$0xff] }
 0x3de   :  { %v364_v40 = vadd.f32 %v363_v38, %v362_v37  ;;  %v351_v41 = vpop.permute.xlu0 %350  ;;  %v404_v37 = vld [vmem:[%s14358_s11 + $0x70] sm:$0xff]  ;;  %v409_v38 = vld [vmem:[%s14358_s11 + $0x98] sm:$0xff] }
 0x3df   :  { %v360_v45 = vmul.f32 %v351_v41, %v12105_v42  ;;  %v1320_v48 = vrot.slane %v351_v41, %v11984_v52  ;;  %v845_v41 = vld [vmem:[%s14361_s12 + $0x10] sm:$0xff] }
 0x3e0   :  { %v365_v43 = vrot.slane %v364_v40, 4 }
 0x3e1   :  { %v371_v53 = vsel %vm80_vm1, %v360_v45, 0.0 }
 0x3e2   :  { %v366_v46 = vadd.f32 %v365_v43, %v364_v40  ;;  %v356_v47 = vpop.permute.xlu0 %355  ;;  %v381_v40 = vld [vmem:[%s14360_s10 + $0x8] sm:$0xff]  ;;  %v850_v43 = vld [vmem:[%s14361_s12 + $0x38] sm:$0xff] }
 0x3e3   :  { %v361_v49 = vmul.f32 %v356_v47, %v12110_v44  ;;  %v1324_v51 = vrot.slane %v356_v47, %v11981_v50  ;;  %v12163_v47 = vpack.c.bf16 %v851_v33, %v846_v31  ;;  %v849_v31 = vld [vmem:[%s14361_s12 + $0x30] sm:$0xff] }
 0x3e4   :  { %v367_v57 = vrot.slane %v366_v46, 2 }
 0x3e5   :  { %v372_v54 = vsel %vm80_vm1, %v361_v49, 0.0  ;;  %v1325_v56 = vsel %vm237_vm2, %v1324_v51, %v1320_v48  ;;  %v856_v48 = vld [vmem:[%s14361_s12 + $0x68] sm:$0xff]  ;;  %v861_v49 = vld [vmem:[%s14361_s12 + $0x90] sm:$0xff]  ;;  %v12174_v51 = vpack.c.bf16 %v409_v38, %v404_v37  ;;  %v854_v38 = vld [vmem:[%s14361_s12 + $0x58] sm:$0xff] }
 0x3e6   :  { %v373_v58 = vadd.f32 %v372_v54, %v371_v53  ;;  %v12120_v60 = vsel %vm248_vm3, %v1325_v56, %v1316_v39  ;;  %v368_v62 = vadd.f32 %v367_v57, %v366_v46  ;;  %v12148_v39 = vpack.c.bf16 %v389_v22, %v384_v21  ;;  %v386_v46 = vld [vmem:[%s14360_s10 + $0x30] sm:$0xff]  ;;  %v68_v53 = vld [vmem:[%s14362_s1] sm:$0x3]  ;;  %v387_v21 = vld [vmem:[%s14360_s10 + $0x38] sm:$0xff] }
 0x3e7   :  { %v12180_v54 = vpack.c.bf16 %v850_v43, %v845_v41  ;;  %v12185_v56 = vpack.c.bf16 %v386_v46, %v381_v40  ;;  %v380_v57 = vld [vmem:[%s14360_s10] sm:$0xff]  ;;  %v12237_v33 = vpack.c.bf16 %v387_v21, %v382_v17  ;;  %v848_v37 = vld [vmem:[%s14361_s12 + $0x28] sm:$0xff]  ;;  %v858_v46 = vld [vmem:[%s14361_s12 + $0x78] sm:$0xff] }
 0x3e8   :  { %v374_v61 = vrot.slane %v373_v58, 4  ;;  %v369_v12 = vrot.slane %v368_v62, 1  ;;  %v859_v40 = vld [vmem:[%s14361_s12 + $0x80] sm:$0xff] }
 0x3e9   :  { %v12264_v43 = vpack.c.bf16 %v859_v40, %v854_v38  ;;  %v1138_v17 = vld [vmem:[%s14364_s14] sm:$0xff]  ;;  %v1141_v38 = vld [vmem:[%s14364_s14 + $0x18] sm:$0xff] }
 0x3ea   :  { %v375_v6 = vadd.f32 %v374_v61, %v373_v58  ;;  %v370_v34 = vadd.f32 %v369_v12, %v368_v62  ;;  %v385_v58 = vld [vmem:[%s14360_s10 + $0x28] sm:$0xff]  ;;  %v383_v61 = vld [vmem:[%s14360_s10 + $0x18] sm:$0xff]  ;;  %v12196_v62 = vpack.c.bf16 %v861_v49, %v856_v48  ;;  %v847_v49 = vld [vmem:[%s14361_s12 + $0x20] sm:$0xff] }
 0x3eb   :  { %v12212_v12 = vpack.c.bf16 %v385_v58, %v380_v57  ;;  %v852_v57 = vld [vmem:[%s14361_s12 + $0x48] sm:$0xff] }
 0x3ec   :  { %v376_v9 = vrot.slane %v375_v6, 2  ;;  %v12287_v58 = vpack.c.bf16 %v852_v57, %v847_v49 }
 0x3ee   :  { %v377_v10 = vadd.f32 %v376_v9, %v375_v6  ;;  %v388_v6 = vld [vmem:[%s14360_s10 + $0x40] sm:$0xff]  ;;  %14429 = vst [vmem:[#allocation3_spill] sm:$0xff] %v12287_v58 }
 0x3ef   :  { %v855_v9 = vld [vmem:[%s14361_s12 + $0x60] sm:$0xff]  ;;  %v12216_v16 = vpack.c.bf16 %v388_v6, %v383_v61  ;;  %v862_v61 = vld [vmem:[%s14361_s12 + $0x98] sm:$0xff] }
 0x3f0   :  { %v378_v26 = vrot.slane %v377_v10, 1 }
 0x3f2   :  { %v379_v35 = vadd.f32 %v378_v26, %v377_v10  ;;  %v860_v10 = vld [vmem:[%s14361_s12 + $0x88] sm:$0xff] }
 0x3f3   :  { %v12225_v22 = vpack.c.bf16 %v860_v10, %v855_v9  ;;  %v844_v26 = vld [vmem:[%s14361_s12 + $0x8] sm:$0xff]  ;;  %v1142_v9 = vld [vmem:[%s14363_s15] sm:$0xff] }
 0x3f4   :  { %v412_v45 = vsel %vm248_vm3, %v379_v35, %v370_v34  ;;  %v12241_v34 = vpack.c.bf16 %v849_v31, %v844_v26  ;;  %v843_v35 = vld [vmem:[%s14361_s12] sm:$0xff]  ;;  %v1143_v10 = vld [vmem:[%s14363_s15 + $0x8] sm:$0xff]  ;;  %v1144_v26 = vld [vmem:[%s14363_s15 + $0x10] sm:$0xff] }
 0x3f5   :  { %9968 = vmatmul.mubr.msk.f32.vlgmr.msra.gmra.mrb[0].mxu1 %vm80_vm1, %v412_v45  ;;  %9969 = vmatmul.mubr.msk.f32.vlgmr.msra.gmra.mrb[2].mxu0 %vm80_vm1, %v412_v45  ;;  %14428 = vst [vmem:[#allocation2_spill] sm:$0xff] %v12225_v22  ;;  %v12259_v41 = vpack.c.bf16 %v848_v37, %v843_v35  ;;  %v12319_v21 = vpack.c.bf16 %v1143_v10, %v1142_v9  ;;  %v1145_v31 = vld [vmem:[%s14363_s15 + $0x18] sm:$0xff]  ;;  %v1140_v37 = vld [vmem:[%s14364_s14 + $0x10] sm:$0xff] }
 0x3f6   :  { %10960 = vmatpush3.bf16.msra.mxu1 %v12140_v36  ;;  %10974 = vmatpush3.bf16.msra.mxu0 %v12148_v39  ;;  %v12339_v40 = vpack.c.bf16 %v1145_v31, %v1144_v26  ;;  %v1080_v26 = vld [vmem:[%s14365_s13] sm:$0x1f] }
 0x3f7   :  { %10961 = vmatprep.subr.bf16.mxu1 %v14380_v0  ;;  %10395 = vmatprep.mubr.msk.f32.mxu1 %vm11784_vm0, %v14382_v4  ;;  %14431 = vst [vmem:[#allocation5_spill] sm:$0xff] %v12319_v21 }
 0x3f8   :  { %10402 = vmatprep.mubr.msk.f32.mxu0 %vm11784_vm0, %v14382_v4  ;;  %10984 = vmatprep.subr.bf16.mxu0 %v12163_v47  ;;  %14433 = vst [vmem:[#allocation7_spill] sm:$0xff] %v12339_v40 }
 0x3f9   :  { %10403 = vmatmul.mubr.msk.f32.vlgmr.msra.gmra.mrb[4].mxu0 %vm627_vm5, %v68_v53 }
 0x3fa   :  { %10963 = vmatpush3.bf16.msra.mxu1 %v12174_v51  ;;  %10986 = vmatpush1.bf16.msra.mxu0 %v12180_v54 }
 0x3fb   :  { %10965 = vmatprep.subr.bf16.mxu1 %v12185_v56  ;;  %10988 = vmatprep.subr.bf16.mxu0 %v12196_v62 }
 0x3fc   :  { %998 = vmatprep.mubr.f32.mxu0 %v14382_v4 }
 0x3fd   :  { %10396 = vmatmul.mubr.msk.f32.vlgmr.msra.gmra.mrb[2].mxu1 %vm80_vm1, %v412_v45  ;;  %v853_v45 = vld [vmem:[%s14361_s12 + $0x50] sm:$0xff] }
 0x3fe   :  { %10967 = vmatpush1.bf16.msra.mxu1 %v12212_v12  ;;  %695 = vmatprep.mubr.f32.mxu1 %v14382_v4  ;;  %v12276_v48 = vpack.c.bf16 %v858_v46, %v853_v45  ;;  %v12343_v45 = vpack.c.bf16 %v1141_v38, %v1140_v37 }
 0x3ff   :  { %10969 = vmatprep.subr.bf16.mxu1 %v12216_v16  ;;  %10990 = vmatpush1.bf16.msra.mxu0 %v12225_v22  ;;  %v12362_v22 = vsub.s32 3, %v11924_v13 }
 0x400   :  { %10997 = vmatprep.subr.bf16.mxu0 %v14380_v0  ;;  %14434 = vst [vmem:[#allocation8_spill] sm:$0xff] %v12343_v45 }
 0x401   :  { %9971 = vmatmul.mubr.msk.f32.vlgmr.msra.gmra.mrb[0].mxu1 %vm627_vm5, %v68_v53 }
 0x402   :  { %10971 = vmatpush1.bf16.msra.mxu1 %v12237_v33  ;;  %766 = vmatprep.mubr.f32.mxu1 %v14382_v4 }
 0x403   :  { %10976 = vmatprep.subr.bf16.mxu1 %v12241_v34  ;;  %9975 = vmatmul.mubr.msk.f32.vlgmr.msra.gmra.mrb[6].mxu0 %vm80_vm1, %v11919_v8 }
 0x404   :  { %10424 = vmatprep.mubr.msk.f32.mxu0 %vm11784_vm0, %v14382_v4  ;;  %10999 = vmatpush3.bf16.msra.mxu0 %v12319_v21 }
 0x405   :  { %9972 = vmatmul.mubr.msk.f32.vlgmr.msra.gmra.mrb[4].mxu1 %vm627_vm5, %v68_v53  ;;  %v857_v53 = vld [vmem:[%s14361_s12 + $0x70] sm:$0xff]  ;;  %11000 = vmatprep.subr.bf16.mxu0 %v14380_v0 }
 0x406   :  { %10978 = vmatpush1.bf16.msra.mxu1 %v12259_v41  ;;  %927 = vmatprep.mubr.f32.mxu1 %v14382_v4  ;;  %v12299_v6 = vpack.c.bf16 %v862_v61, %v857_v53 }
 0x407   :  { %10980 = vmatprep.subr.bf16.mxu1 %v12264_v43 }
 0x408   :  { %14430 = vst [vmem:[#allocation4_spill] sm:$0xff] %v12299_v6  ;;  %11002 = vmatpush3.bf16.msra.mxu0 %v12339_v40 }
 0x409   :  { %11009 = vmatprep.subr.bf16.mxu0 %v14380_v0 }
 0x40a   :  { %10982 = vmatpush1.bf16.msra.mxu1 %v12276_v48 }
 0x40b   :  { %10991 = vmatprep.subr.bf16.mxu1 %v14380_v0 }
 0x40d   :  { %9974 = vmatmul.mubr.msk.f32.vlgmr.msra.gmra.mrb[0].mxu1 %vm80_vm1, %v11919_v8 }
 0x40e   :  { %10993 = vmatpush3.bf16.msra.mxu1 %v12287_v58  ;;  %10413 = vmatprep.mubr.msk.f32.mxu1 %vm11784_vm0, %v14382_v4 }
 0x40f   :  { %10994 = vmatprep.subr.bf16.mxu1 %v14380_v0 }
 0x412   :  { %10996 = vmatpush3.bf16.msra.mxu1 %v12299_v6 }
 0x413   :  { %11003 = vmatprep.subr.bf16.mxu1 %v14380_v0 }
 0x415   :  { %10414 = vmatmul.mubr.msk.f32.vlgmr.msra.gmra.mrb[6].mxu1 %vm80_vm1, %v11919_v8  ;;  %v1139_v8 = vld [vmem:[%s14364_s14 + $0x8] sm:$0xff] }
 0x416   :  { %10435 = vmatprep.mubr.msk.f32.mxu1 %vm11784_vm0, %v14382_v4  ;;  %v12330_v35 = vpack.c.bf16 %v1139_v8, %v1138_v17  ;;  %v12351_v17 = vsub.s32 2, %v11924_v13 }
 0x418   :  { %14432 = vst [vmem:[#allocation6_spill] sm:$0xff] %v12330_v35  ;;  %11005 = vmatpush3.bf16.msra.mxu1 %v12330_v35  ;;  %14435 = vst [vmem:[#allocation9_spill] sm:$0xff] %v12351_v17 }
 0x419   :  { %11006 = vmatprep.subr.bf16.mxu1 %v14380_v0 }
 0x41c   :  { %11008 = vmatpush3.bf16.msra.mxu1 %v12343_v45 }
 0x41d   :  { %11018 = vmatprep.subr.bf16.mxu1 %v14380_v0  ;;  %v1093_v0 = vrot.slane %v1080_v26, %v12351_v17 }
 0x4c8   :  { %v552_v46 = vpop.f32.mrb[2].mxu0 }
 0x4c9   :  { %v554_v49 = vpop.f32.mrb[3].mxu0 }
 0x4cc   :  { %v839_v57 = vpop.f32.mrb[4].mxu0 }
 0x4cd   :  { %v10404_v53 = vpop.f32.mrb[5].mxu0 }
 0x4d0   :  { %v623_v61 = vpop.f32.mrb[2].mxu1 }
 0x4d1   :  { %v840_v9 = vadd.f32 %v839_v57, %v623_v61  ;;  %v10397_v10 = vpop.f32.mrb[3].mxu1  ;;  %v1085_v57 = vrot.slane %v1080_v26, %v11937_v20  ;;  %v1089_v61 = vrot.slane %v1080_v26, %v11997_v1 }
 0x4d6   :  { %v1000_v8 = vpop.f32.mrb[6].mxu0 }
 0x4d7   :  { %v1002_v31 = vpop.f32.mrb[7].mxu0 }
 0x4d8   :  { %v768_v37 = vpop.f32.mrb[4].mxu1 }
 0x4d9   :  { %v769_v38 = vadd.f32 %v768_v37, %v552_v46  ;;  %v770_v63 = vpop.f32.mrb[5].mxu1 }
 0x4da   :  { %v771_v4 = vadd.f32 %v770_v63, %v554_v49  ;;  %v12365_v63 = vsub.s32 4, %v11924_v13 }
 0x4db   :  { %v1077_v45 = vadd.f32 %v1000_v8, %v769_v38 }
 0x4dc   :  { %v1078_v53 = vadd.f32 %v1002_v31, %v771_v4  ;;  %v1101_v49 = vrot.slane %v1080_v26, %v12365_v63 }
 0x4dd   :  { %v12357_v35 = vadd.f32 %v1093_v0, %v1077_v45  ;;  %v1097_v0 = vrot.slane %v1080_v26, %v12362_v22 }
 0x4df   :  { %v1110_v31 = vadd.f32 %v1097_v0, %v1078_v53  ;;  %v1306_v53 = vld [vmem:[%s14368_s19] sm:$0xff] }
 0x4e0   :  { %v929_v10 = vpop.f32.mrb[0].mxu1 }
 0x4e1   :  { %v1107_v40 = vadd.f32 %v1085_v57, %v929_v10  ;;  %v931_v6 = vpop.f32.mrb[1].mxu1 }
 0x4e2   :  { %v1108_v21 = vadd.f32 %v1089_v61, %v931_v6  ;;  %v1307_v61 = vld [vmem:[%s14368_s19 + $0x8] sm:$0xff] }
 0x4e3   :  { %v9977_v58 = vmul.f32 -1.442695, %v1107_v40 }
 0x4e4   :  { %v9978_v46 = vmul.f32 -1.442695, %v1108_v21  ;;  %v67_v21 = vld [vmem:[%s14366_s6] sm:$0x3] }
 0x4e5   :  { %11585 = vpow2.f32 %v9977_v58 }
 0x4e6   :  { %11587 = vpow2.f32 %v9978_v46 }
 0x4e7   :  { %11589 = vtanh.f32 %v1110_v31 }
 0x4e8   :  { %v1071_v4 = vpop.f32.mrb[6].mxu1 }
 0x4e9   :  { %v1079_v45 = vadd.f32 %v1071_v4, %v840_v9  ;;  %v10415_v8 = vpop.f32.mrb[7].mxu1  ;;  %v66_v9 = vld [vmem:[%s14367_s5] sm:$0x3] }
 0x4eb   :  { %v1111_v37 = vadd.f32 %v1101_v49, %v1079_v45  ;;  %v12381_v49 = vpack.c.bf16 %v1307_v61, %v1306_v53 }
 0x4ed   :  { %11591 = vtanh.f32 %v1111_v37  ;;  %v14436_v37 = vmov 0.0  }
 0x4ef   :  { %v11586_v6 = vpop.eup %11585 }
 0x4f0   :  { %v11588_v40 = vpop.eup %11587  ;;  %v1115_v38 = vadd.f32 1.0, %v11586_v6  ;;  %v14437_v6 = vmov 0.0|0.0  }
 0x4f1   :  { %v1121_v57 = vadd.f32 1.0, %v11588_v40  ;;  %v11590_v13 = vpop.eup %11589  ;;  %v1302_v40 = vld [vmem:[%s14369_s17] sm:$0xff] }
 0x4f2   :  { %11593 = vrcp.f32 %v1115_v38  ;;  %v1304_v38 = vld [vmem:[%s14369_s17 + $0x10] sm:$0xff] }
 0x4f3   :  { %11595 = vrcp.f32 %v1121_v57  ;;  %v9979_v57 = vmul.f32 -1.442695, %v12357_v35 }
 0x4f5   :  { %11597 = vpow2.f32 %v9979_v57 }
 0x4f7   :  { %v11592_v58 = vpop.eup %11591 }
 0x4fc   :  { %v11594_v26 = vpop.eup %11593 }
 0x4fd   :  { %v11596_v10 = vpop.eup %11595  ;;  %v1136_v46 = vmul.f32 %v11594_v26, %v11592_v58  ;;  %v1133_v0 = vmul.f32 %v11594_v26, %v11590_v13  ;;  %v12429_v26 = vld [vmem:[%s14370_s16] ss:$0 sm:$0xff] }
 0x4fe   :  { %v1135_v4 = vmul.f32 %v11596_v10, %v67_v21  ;;  %v1132_v45 = vmul.f32 %v11596_v10, %v66_v9 }
 0x4ff   :  { %v11598_v13 = vpop.eup %11597 }
 0x500   :  { %v12383_v8 = vadd.f32 %v1136_v46, %v1135_v4  ;;  %v12385_v31 = vadd.f32 %v1133_v0, %v1132_v45  ;;  %v1127_v58 = vadd.f32 1.0, %v11598_v13 }
 0x502   :  { %10425 = vmatmul.mubr.msk.f32.vlgmr.msra.gmra.mrb[8].mxu0 %vm80_vm1, %v12383_v8  ;;  %10436 = vmatmul.mubr.msk.f32.vlgmr.msra.gmra.mrb[8].mxu1 %vm80_vm1, %v12385_v31  ;;  %11599 = vrcp.f32 %v1127_v58 }
 0x503   :  { %11011 = vmatpush3.bf16.msra.mxu0 %v12381_v49  ;;  %10442 = vmatprep.mubr.msk.f32.mxu0 %vm11784_vm0, %v14436_v37 }
 0x504   :  { %11012 = vmatprep.subr.bf16.mxu0 %v14437_v6  ;;  %11020 = vmatpush3.bf16.msra.mxu1 %v11905_v5  ;;  %v1303_v5 = vld [vmem:[%s14369_s17 + $0x8] sm:$0xff] }
 0x505   :  { %11021 = vmatprep.subr.bf16.mxu1 %v14437_v6  ;;  %10464 = vmatprep.mubr.msk.f32.mxu1 %vm11784_vm0, %v14436_v37 }
 0x506   :  { %10443 = vmatmul.mubr.msk.f32.vlgmr.msra.gmra.mrb[10].mxu0 %vm627_vm5, %v12120_v60  ;;  %v12414_v60 = vpack.c.bf16 %v1303_v5, %v1302_v40 }
 0x507   :  { %10453 = vmatprep.mubr.msk.f32.mxu0 %vm11784_vm0, %v14436_v37 }
 0x508   :  { %11023 = vmatpush3.bf16.msra.mxu1 %v11912_v7  ;;  %v1305_v7 = vld [vmem:[%s14369_s17 + $0x18] sm:$0xff]  ;;  %11014 = vmatpush3.bf16.msra.mxu0 %v12414_v60 }
 0x509   :  { %11033 = vmatprep.subr.bf16.mxu1 %v12040_v2  ;;  %v12420_v2 = vpack.c.bf16 %v1305_v7, %v1304_v38  ;;  %11015 = vmatprep.subr.bf16.mxu0 %v14437_v6 }
 0x50c   :  { %11017 = vmatpush3.bf16.msra.mxu0 %v12420_v2  ;;  %v11600_v35 = vpop.eup %11599 }
 0x50d   :  { %11025 = vmatprep.subr.bf16.mxu0 %v12017_v55 }
 0x5d5   :  { %v1215_v21 = vpop.f32.mrb[8].mxu0  ;;  %v1288_v9 = vpop.f32.mrb[8].mxu1 }
 0x5d6   :  { %v1289_v53 = vadd.f32 %v1288_v9, %v1215_v21  ;;  %v10426_v61 = vpop.f32.mrb[9].mxu0  ;;  %v10437_v10 = vpop.f32.mrb[9].mxu1 }
 0x5d8   :  { %v1299_v46 = vadd.f32 %v12429_v26, %v1289_v53 }
 0x5d9   :  { %v1395_v0 = vpop.f32.mrb[10].mxu0 }
 0x5da   :  { %11601 = vtanh.f32 %v1299_v46  ;;  %v10444_v55 = vpop.f32.mrb[11].mxu0 }
 0x5e4   :  { %v11602_v4 = vpop.eup %11601 }
 0x5e5   :  { %v12432_v45 = vmul.f32 %v11602_v4, %v11600_v35 }
 0x5e7   :  { %10454 = vmatmul.mubr.msk.f32.vlgmr.msra.gmra.mrb[12].mxu0 %vm80_vm1, %v12432_v45  ;;  %10465 = vmatmul.mubr.msk.f32.vlgmr.msra.gmra.mrb[10].mxu1 %vm80_vm1, %v12432_v45 }
 0x5e8   :  { %11027 = vmatpush1.bf16.msra.mxu0 %v12028_v59  ;;  %11035 = vmatpush1.bf16.msra.mxu1 %v12042_v3 }
 0x5e9   :  { %11029 = vmatprep.subr.bf16.mxu0 %v12054_v11  ;;  %11037 = vmatprep.subr.bf16.mxu1 %v12068_v19 }
 0x5ea   :  { %1891 = vmatprep.mubr.f32.mxu0 %v14436_v37  ;;  %1962 = vmatprep.mubr.f32.mxu1 %v14436_v37 }
 0x5ec   :  { %11031 = vmatpush1.bf16.msra.mxu0 %v12066_v18  ;;  %11039 = vmatpush1.bf16.msra.mxu1 %v12078_v25 }
 0x5ed   :  { %11040 = vmatprep.subr.bf16.mxu0 %v14437_v6  ;;  %11051 = vmatprep.subr.bf16.mxu1 %v12216_v16 }
 0x6ba   :  { %v1468_v40 = vpop.f32.mrb[12].mxu0  ;;  %v1568_v59 = vpop.f32.mrb[10].mxu1 }
 0x6bb   :  { %v12448_v5 = vadd.f32 %v1468_v40, %v1395_v0  ;;  %v1569_v3 = vadd.f32 %v11929_v14, %v1568_v59  ;;  %v10455_v11 = vpop.f32.mrb[13].mxu0  ;;  %v10466_v19 = vpop.f32.mrb[11].mxu1 }
 0x6bd   :  { %14438 = vst [vmem:[#allocation10_spill] sm:$0xff] %v12448_v5  ;;  %v1583_v38 = vrot.slane %v1569_v3, %v11932_v15 }
 0x6bf   :  { %v1584_v7 = vcombine.high %v1583_v38, %v1583_v38  ;;  %v1591_v57 = vrot.slane %v1583_v38, %v11932_v15 }
 0x6c1   :  { %v1598_v18 = vrot.slane %v1584_v7, %v11932_v15  ;;  %v1602_v25 = vrot.slane %v1591_v57, %v11937_v20 }
 0x6c3   :  { %v1610_v13 = vadd.f32 %v1602_v25, %v11948_v24  ;;  %v1609_v16 = vadd.f32 %v1602_v25, %v11943_v23  ;;  %v1606_v58 = vrot.slane %v1598_v18, %v11937_v20 }
 0x6c5   :  { %v1614_v21 = vmax.f32 %v1610_v13, 0.0  ;;  %v1613_v9 = vmax.f32 %v1609_v16, 0.0  ;;  %v1611_v14 = vadd.f32 %v1606_v58, %v11955_v27  ;;  %v1612_v53 = vadd.f32 %v1606_v58, %v11960_v28 }
 0x6c7   :  { %v1625_v61 = vmul.f32 %v11968_v32, %v1614_v21  ;;  %v1624_v10 = vmul.f32 %v11968_v32, %v1613_v9  ;;  %v1615_v46 = vmax.f32 %v1611_v14, 0.0  ;;  %v1616_v23 = vmax.f32 %v1612_v53, 0.0 }
 0x6c9   :  { %v1631_v0 = vsel %vm80_vm1, %v1625_v61, 0.0  ;;  %v1628_v55 = vsel %vm80_vm1, %v1624_v10, 0.0  ;;  %v1626_v24 = vmul.f32 %v11968_v32, %v1615_v46  ;;  %v1627_v27 = vmul.f32 %v11968_v32, %v1616_v23 }
 0x6ca   :  { %1632 = vadd.xlane.f32.xlu0 %v1631_v0  ;;  %1629 = vadd.xlane.f32.xlu1 %v1628_v55 }
 0x6cb   :  { %v1634_v35 = vsel %vm80_vm1, %v1626_v24, 0.0  ;;  %v1637_v28 = vsel %vm80_vm1, %v1627_v27, 0.0 }
 0x6ce   :  { %1635 = vadd.xlane.f32.xlu1 %v1634_v35 }
 0x6d2   :  { %1638 = vadd.xlane.f32.xlu1 %v1637_v28 }
 0x757   :  { %v1630_v4 = vpop.xlane.xlu1 %1629  ;;  %v1633_v40 = vpop.xlane.xlu0 %1632 }
 0x758   :  { %v1651_v3 = vrot.slane %v1633_v40, %v11981_v50  ;;  %v1647_v11 = vrot.slane %v1630_v4, %v11984_v52 }
 0x75a   :  { %v1652_v57 = vsel %vm237_vm2, %v1651_v3, %v1647_v11 }
 0x75b   :  { %v1636_v59 = vpop.xlane.xlu1 %1635 }
 0x75c   :  { %v1656_v38 = vrot.slane %v1636_v59, %v11984_v52 }
 0x75f   :  { %v1639_v19 = vpop.xlane.xlu1 %1638 }
 0x760   :  { %v1660_v7 = vrot.slane %v1639_v19, %v11981_v50 }
 0x762   :  { %v1661_v32 = vsel %vm237_vm2, %v1660_v7, %v1656_v38 }
 0x763   :  { %v1662_v18 = vsel %vm248_vm3, %v1661_v32, %v1652_v57 }
 0x764   :  { %v1664_v25 = vsel %vm251_vm4, %v1662_v18, -inf }
 0x765   :  { %1665 = vmax.xlane.f32.xlu1 %v1664_v25 }
 0x7f2   :  { %v1666_v13 = vpop.xlane.xlu1 %1665 }
 0x7f3   :  { %v1671_v16 = vrot.slane %v1666_v13, %v11937_v20  ;;  %v1675_v58 = vrot.slane %v1666_v13, %v11997_v1 }
 0x7f5   :  { %v1678_v21 = vsub.f32 %v1630_v4, %v1671_v16  ;;  %v1679_v9 = vsub.f32 %v1633_v40, %v1671_v16  ;;  %v1680_v14 = vsub.f32 %v1636_v59, %v1675_v58  ;;  %v1681_v10 = vsub.f32 %v1639_v19, %v1675_v58 }
 0x7f7   :  { %v1682_v53 = vmul.f32 1.442695, %v1678_v21  ;;  %v1686_v61 = vmul.f32 1.442695, %v1680_v14  ;;  %v1684_v46 = vmul.f32 1.442695, %v1679_v9 }
 0x7f8   :  { %v1688_v0 = vmul.f32 1.442695, %v1681_v10 }
 0x7f9   :  { %11603 = vpow2.f32 %v1682_v53 }
 0x7fa   :  { %11605 = vpow2.f32 %v1686_v61 }
 0x7fb   :  { %11607 = vpow2.f32 %v1684_v46 }
 0x7fc   :  { %11609 = vpow2.f32 %v1688_v0 }
 0x803   :  { %v11604_v55 = vpop.eup %11603 }
 0x804   :  { %1695 = vperm.xlu1 %11571, %v11604_v55   ;;  %v11606_v24 = vpop.eup %11605 }
 0x805   :  { %1701 = vperm.xlu0 %11572, %v11606_v24   ;;  %v11608_v23 = vpop.eup %11607 }
 0x806   :  { %v11610_v35 = vpop.eup %11609 }
 0x808   :  { %1698 = vperm.xlu1 %11571, %v11608_v23  }
 0x80c   :  { %1704 = vperm.xlu1 %11571, %v11610_v35  }
 0x883   :  { %v1696_v27 = vpop.permute.xlu1 %1695 }
 0x884   :  { %v1702_v4 = vpop.permute.xlu0 %1701  ;;  %v1709_v11 = vrot.slane %v1696_v27, %v11984_v52 }
 0x885   :  { %v1718_v3 = vrot.slane %v1702_v4, %v11984_v52 }
 0x887   :  { %v1699_v28 = vpop.permute.xlu1 %1698 }
 0x888   :  { %v1713_v40 = vrot.slane %v1699_v28, %v11981_v50 }
 0x88a   :  { %v1714_v38 = vsel %vm237_vm2, %v1713_v40, %v1709_v11 }
 0x88b   :  { %v1705_v59 = vpop.permute.xlu1 %1704 }
 0x88c   :  { %v1722_v19 = vrot.slane %v1705_v59, %v11981_v50 }
 0x88e   :  { %v1723_v7 = vsel %vm237_vm2, %v1722_v19, %v1718_v3 }
 0x88f   :  { %v1724_v57 = vsel %vm248_vm3, %v1723_v7, %v1714_v38 }
 0x890   :  { %v1726_v32 = vsel %vm251_vm4, %v1724_v57, 0.0 }
 0x891   :  { %1727 = vadd.xlane.f32.xlu1 %v1726_v32 }
 0x91e   :  { %v1728_v18 = vpop.xlane.xlu1 %1727 }
 0x91f   :  { %v1733_v25 = vrot.slane %v1728_v18, %v11937_v20  ;;  %v1737_v13 = vrot.slane %v1728_v18, %v11997_v1 }
 0x921   :  { %11611 = vrcp.f32 %v1733_v25 }
 0x922   :  { %11613 = vrcp.f32 %v1737_v13 }
 0x92b   :  { %v11612_v16 = vpop.eup %11611 }
 0x92c   :  { %v1741_v58 = vmul.f32 %v11612_v16, %v11604_v55  ;;  %v1742_v21 = vmul.f32 %v11612_v16, %v11608_v23  ;;  %v11614_v9 = vpop.eup %11613 }
 0x92d   :  { %v1744_v14 = vmul.f32 %v11614_v9, %v11606_v24  ;;  %v1745_v53 = vmul.f32 %v11614_v9, %v11610_v35 }
 0x92e   :  { %1752 = vperm.xlu0 %11572, %v1741_v58  }
 0x932   :  { %1757 = vperm.xlu0 %11572, %v1742_v21  }
 0x936   :  { %1762 = vperm.xlu0 %11572, %v1744_v14  }
 0x93a   :  { %1767 = vperm.xlu0 %11572, %v1745_v53  }
 0x9ad   :  { %v1753_v61 = vpop.permute.xlu0 %1752 }
 0x9ae   :  { %v1770_v10 = vmul.f32 %v1753_v61, %v12088_v29  ;;  %v2722_v0 = vrot.slane %v1753_v61, %v11984_v52 }
 0x9b0   :  { %v1774_v55 = vsel %vm80_vm1, %v1770_v10, 0.0  ;;  %v9986_v10 = vld [vmem:[%s14362_s1 + $0x2] sm:$0x3] }
 0x9b1   :  { %v1758_v46 = vpop.permute.xlu0 %1757 }
 0x9b2   :  { %v1771_v27 = vmul.f32 %v1758_v46, %v12093_v30  ;;  %v2726_v28 = vrot.slane %v1758_v46, %v11981_v50 }
 0x9b4   :  { %v1775_v23 = vsel %vm80_vm1, %v1771_v27, 0.0  ;;  %v2727_v4 = vsel %vm237_vm2, %v2726_v28, %v2722_v0 }
 0x9b5   :  { %v1776_v24 = vadd.f32 %v1775_v23, %v1774_v55  ;;  %v1763_v40 = vpop.permute.xlu0 %1762 }
 0x9b6   :  { %v1772_v59 = vmul.f32 %v1763_v40, %v12105_v42  ;;  %v2731_v11 = vrot.slane %v1763_v40, %v11984_v52 }
 0x9b7   :  { %v1777_v35 = vrot.slane %v1776_v24, 4 }
 0x9b8   :  { %v1783_v38 = vsel %vm80_vm1, %v1772_v59, 0.0 }
 0x9b9   :  { %v1778_v3 = vadd.f32 %v1777_v35, %v1776_v24  ;;  %v1768_v29 = vpop.permute.xlu0 %1767 }
 0x9ba   :  { %v1773_v19 = vmul.f32 %v1768_v29, %v12110_v44  ;;  %v2735_v30 = vrot.slane %v1768_v29, %v11981_v50 }
 0x9bb   :  { %v1779_v32 = vrot.slane %v1778_v3, 2 }
 0x9bc   :  { %v1784_v7 = vsel %vm80_vm1, %v1773_v19, 0.0  ;;  %v2736_v57 = vsel %vm237_vm2, %v2735_v30, %v2731_v11 }
 0x9bd   :  { %v1785_v18 = vadd.f32 %v1784_v7, %v1783_v38  ;;  %v12503_v25 = vsel %vm248_vm3, %v2736_v57, %v2727_v4  ;;  %v1780_v13 = vadd.f32 %v1779_v32, %v1778_v3 }
 0x9bf   :  { %v1786_v42 = vrot.slane %v1785_v18, 4  ;;  %v1781_v21 = vrot.slane %v1780_v13, 1 }
 0x9c1   :  { %v1787_v16 = vadd.f32 %v1786_v42, %v1785_v18  ;;  %v1782_v14 = vadd.f32 %v1781_v21, %v1780_v13 }
 0x9c3   :  { %v1788_v58 = vrot.slane %v1787_v16, 2 }
 0x9c5   :  { %v1789_v9 = vadd.f32 %v1788_v58, %v1787_v16 }
 0x9c7   :  { %v1790_v44 = vrot.slane %v1789_v9, 1 }
 0x9c9   :  { %v1791_v53 = vadd.f32 %v1790_v44, %v1789_v9 }
 0x9cb   :  { %v1824_v61 = vsel %vm248_vm3, %v1791_v53, %v1782_v14 }
 0x9cc   :  { %9990 = vmatmul.mubr.msk.f32.vlgmr.msra.gmra.mrb[14].mxu0 %vm80_vm1, %v1824_v61  ;;  %9991 = vmatmul.mubr.msk.f32.vlgmr.msra.gmra.mrb[12].mxu1 %vm80_vm1, %v1824_v61 }
 0x9cd   :  { %11042 = vmatpush3.bf16.msra.mxu0 %v12140_v36  ;;  %11053 = vmatpush1.bf16.msra.mxu1 %v12237_v33  ;;  %v14439_v36 = vld [vmem:[#allocation2_spill] sm:$0xff] }
 0x9ce   :  { %11043 = vmatprep.subr.bf16.mxu0 %v14437_v6  ;;  %10475 = vmatprep.mubr.msk.f32.mxu0 %vm11784_vm0, %v14436_v37 }
 0x9cf   :  { %2177 = vmatprep.mubr.f32.mxu1 %v14436_v37  ;;  %11054 = vmatprep.subr.bf16.mxu1 %v14437_v6 }
 0x9d1   :  { %11045 = vmatpush3.bf16.msra.mxu0 %v12174_v51  ;;  %v14442_v51 = vld [vmem:[#allocation4_spill] sm:$0xff] }
 0x9d2   :  { %11047 = vmatprep.subr.bf16.mxu0 %v12185_v56  ;;  %v14444_v56 = vld [vmem:[#allocation6_spill] sm:$0xff] }
 0x9d4   :  { %10476 = vmatmul.mubr.msk.f32.vlgmr.msra.gmra.mrb[16].mxu0 %vm80_vm1, %v1824_v61  ;;  %9994 = vmatmul.mubr.msk.f32.vlgmr.msra.gmra.mrb[12].mxu1 %vm627_vm5, %v9986_v10 }
 0x9d5   :  { %11049 = vmatpush1.bf16.msra.mxu0 %v12212_v12  ;;  %11056 = vmatpush3.bf16.msra.mxu1 %v12148_v39  ;;  %v14440_v39 = vld [vmem:[#allocation3_spill] sm:$0xff] }
 0x9d6   :  { %2106 = vmatprep.mubr.f32.mxu0 %v14436_v37  ;;  %10482 = vmatprep.mubr.msk.f32.mxu1 %vm11784_vm0, %v14436_v37 }
 0x9d7   :  { %11058 = vmatprep.subr.bf16.mxu0 %v12241_v34  ;;  %11066 = vmatprep.subr.bf16.mxu1 %v12163_v47  ;;  %v14441_v47 = vld [vmem:[#allocation5_spill] sm:$0xff] }
 0x9d8   :  { %9993 = vmatmul.mubr.msk.f32.vlgmr.msra.gmra.mrb[14].mxu0 %vm627_vm5, %v9986_v10  ;;  %10483 = vmatmul.mubr.msk.f32.vlgmr.msra.gmra.mrb[14].mxu1 %vm627_vm5, %v9986_v10 }
 0x9d9   :  { %11060 = vmatpush1.bf16.msra.mxu0 %v12259_v41  ;;  %11068 = vmatpush1.bf16.msra.mxu1 %v12180_v54  ;;  %v14443_v54 = vld [vmem:[#allocation7_spill] sm:$0xff] }
 0x9da   :  { %11062 = vmatprep.subr.bf16.mxu0 %v12264_v43  ;;  %11070 = vmatprep.subr.bf16.mxu1 %v12196_v62  ;;  %v14445_v62 = vld [vmem:[#allocation8_spill] sm:$0xff] }
 0x9db   :  { %2338 = vmatprep.mubr.f32.mxu0 %v14436_v37  ;;  %2409 = vmatprep.mubr.f32.mxu1 %v14436_v37 }
 0x9dd   :  { %11064 = vmatpush1.bf16.msra.mxu0 %v12276_v48  ;;  %11072 = vmatpush1.bf16.msra.mxu1 %v14439_v36  ;;  %v2491_v48 = vld [vmem:[%s14365_s13] sm:$0x1f] }
 0x9de   :  { %11073 = vmatprep.subr.bf16.mxu1 %v14437_v6  ;;  %11079 = vmatprep.subr.bf16.mxu0 %v14437_v6  ;;  %v2504_v46 = vrot.slane %v2491_v48, %v12351_v17  ;;  %v2500_v0 = vrot.slane %v2491_v48, %v11997_v1  ;;  %v2508_v3 = vrot.slane %v2491_v48, %v12362_v22 }
 0x9df   :  { %v2512_v19 = vrot.slane %v2491_v48, %v12365_v63 }
 0x9e0   :  { %9996 = vmatmul.mubr.msk.f32.vlgmr.msra.gmra.mrb[14].mxu0 %vm80_vm1, %v12432_v45  ;;  %9997 = vmatmul.mubr.msk.f32.vlgmr.msra.gmra.mrb[12].mxu1 %vm80_vm1, %v12432_v45 }
 0x9e1   :  { %11075 = vmatpush3.bf16.msra.mxu1 %v14440_v39  ;;  %10493 = vmatprep.mubr.msk.f32.mxu1 %vm11784_vm0, %v14436_v37 }
 0x9e2   :  { %11076 = vmatprep.subr.bf16.mxu1 %v14437_v6  ;;  %11081 = vmatpush3.bf16.msra.mxu0 %v14441_v47 }
 0x9e3   :  { %11082 = vmatprep.subr.bf16.mxu0 %v14437_v6  ;;  %10504 = vmatprep.mubr.msk.f32.mxu0 %vm11784_vm0, %v14436_v37 }
 0x9e5   :  { %11078 = vmatpush3.bf16.msra.mxu1 %v14442_v51 }
 0x9e6   :  { %11085 = vmatprep.subr.bf16.mxu1 %v14437_v6  ;;  %11084 = vmatpush3.bf16.msra.mxu0 %v14443_v54 }
 0x9e7   :  { %11091 = vmatprep.subr.bf16.mxu0 %v14437_v6 }
 0x9e8   :  { %10494 = vmatmul.mubr.msk.f32.vlgmr.msra.gmra.mrb[16].mxu1 %vm80_vm1, %v12432_v45  ;;  %v2496_v45 = vrot.slane %v2491_v48, %v11937_v20 }
 0x9e9   :  { %11087 = vmatpush3.bf16.msra.mxu1 %v14444_v56  ;;  %10515 = vmatprep.mubr.msk.f32.mxu1 %vm11784_vm0, %v14436_v37 }
 0x9ea   :  { %11088 = vmatprep.subr.bf16.mxu1 %v14437_v6 }
 0x9ed   :  { %11090 = vmatpush3.bf16.msra.mxu1 %v14445_v62 }
 0x9ee   :  { %11100 = vmatprep.subr.bf16.mxu1 %v14437_v6 }
 0xaa7   :  { %v2035_v12 = vpop.f32.mrb[16].mxu0 }
 0xaa8   :  { %v10477_v33 = vpop.f32.mrb[17].mxu0 }
 0xaab   :  { %v2250_v34 = vpop.f32.mrb[14].mxu1 }
 0xaac   :  { %v2251_v41 = vadd.f32 %v2250_v34, %v2035_v12  ;;  %v10484_v43 = vpop.f32.mrb[15].mxu1 }
 0xab3   :  { %v2340_v27 = vpop.f32.mrb[14].mxu0  ;;  %v2411_v28 = vpop.f32.mrb[12].mxu1 }
 0xab4   :  { %v2518_v55 = vadd.f32 %v2496_v45, %v2340_v27  ;;  %v2520_v23 = vadd.f32 %v2504_v46, %v2411_v28  ;;  %v2342_v4 = vpop.f32.mrb[15].mxu0  ;;  %v2413_v24 = vpop.f32.mrb[13].mxu1 }
 0xab5   :  { %v2519_v40 = vadd.f32 %v2500_v0, %v2342_v4  ;;  %v2521_v38 = vadd.f32 %v2508_v3, %v2413_v24 }
 0xab6   :  { %v9999_v35 = vmul.f32 -1.442695, %v2518_v55  ;;  %v10001_v36 = vmul.f32 -1.442695, %v2520_v23 }
 0xab7   :  { %v10000_v59 = vmul.f32 -1.442695, %v2519_v40 }
 0xab8   :  { %11615 = vpow2.f32 %v9999_v35  ;;  %v12637_v35 = vld [vmem:[%s14426_s24 + $0x8] sm:$0xff] }
 0xab9   :  { %11617 = vpow2.f32 %v10000_v59  ;;  %v12642_v59 = vld [vmem:[%s14426_s24] sm:$0xff] }
 0xaba   :  { %11619 = vtanh.f32 %v2521_v38 }
 0xabb   :  { %v2482_v29 = vpop.f32.mrb[16].mxu1 }
 0xabc   :  { %v2490_v11 = vadd.f32 %v2482_v29, %v2251_v41  ;;  %v10495_v30 = vpop.f32.mrb[17].mxu1 }
 0xabe   :  { %v2522_v7 = vadd.f32 %v2512_v19, %v2490_v11  ;;  %v12649_v11 = vld [vmem:[%s14426_s24 + $0x10] sm:$0xff]  ;;  %v12654_v19 = vld [vmem:[%s14426_s24 + $0x18] sm:$0xff] }
 0xac0   :  { %11621 = vtanh.f32 %v2522_v7 }
 0xac2   :  { %v11616_v57 = vpop.eup %11615 }
 0xac3   :  { %v2526_v32 = vadd.f32 1.0, %v11616_v57  ;;  %v11618_v18 = vpop.eup %11617  ;;  %v12662_v57 = vld [vmem:[%s14427_s30] ss:$0 sm:$0xff] }
 0xac4   :  { %v2532_v42 = vadd.f32 1.0, %v11618_v18  ;;  %v11620_v13 = vpop.eup %11619 }
 0xac5   :  { %11623 = vrcp.f32 %v2526_v32 }
 0xac6   :  { %11625 = vrcp.f32 %v2532_v42 }
 0xac7   :  { %11627 = vpow2.f32 %v10001_v36 }
 0xaca   :  { %v11622_v16 = vpop.eup %11621 }
 0xacf   :  { %v11624_v58 = vpop.eup %11623 }
 0xad0   :  { %v2544_v21 = vmul.f32 %v11624_v58, %v11620_v13  ;;  %v2547_v9 = vmul.f32 %v11624_v58, %v11622_v16  ;;  %v11626_v44 = vpop.eup %11625 }
 0xad1   :  { %v2546_v14 = vmul.f32 %v11626_v44, %v12383_v8  ;;  %v2543_v53 = vmul.f32 %v11626_v44, %v12385_v31  ;;  %v2904_v8 = vld [vmem:[%s14423_s23 + $0x8] sm:$0xff]  ;;  %v2905_v31 = vld [vmem:[%s14423_s23 + $0x10] sm:$0xff]  ;;  %v11628_v39 = vpop.eup %11627 }
 0xad2   :  { %v2538_v47 = vadd.f32 1.0, %v11628_v39 }
 0xad3   :  { %v12575_v61 = vadd.f32 %v2547_v9, %v2546_v14  ;;  %v12577_v10 = vadd.f32 %v2544_v21, %v2543_v53 }
 0xad4   :  { %11629 = vrcp.f32 %v2538_v47 }
 0xad5   :  { %10505 = vmatmul.mubr.msk.f32.vlgmr.msra.gmra.mrb[18].mxu0 %vm80_vm1, %v12575_v61  ;;  %10516 = vmatmul.mubr.msk.f32.vlgmr.msra.gmra.mrb[18].mxu1 %vm80_vm1, %v12577_v10 }
 0xad6   :  { %11093 = vmatpush3.bf16.msra.mxu0 %v12381_v49  ;;  %10522 = vmatprep.mubr.msk.f32.mxu0 %vm11784_vm0, %v14436_v37  ;;  %v2903_v49 = vld [vmem:[%s14423_s23] sm:$0xff] }
 0xad7   :  { %11094 = vmatprep.subr.bf16.mxu0 %v14437_v6  ;;  %10544 = vmatprep.mubr.msk.f32.mxu1 %vm11784_vm0, %v14436_v37 }
 0xad9   :  { %10523 = vmatmul.mubr.msk.f32.vlgmr.msra.gmra.mrb[20].mxu0 %vm627_vm5, %v12503_v25  ;;  %v2906_v25 = vld [vmem:[%s14423_s23 + $0x18] sm:$0xff] }
 0xada   :  { %11096 = vmatpush3.bf16.msra.mxu0 %v12414_v60  ;;  %10533 = vmatprep.mubr.msk.f32.mxu0 %vm11784_vm0, %v14436_v37  ;;  %v12605_v60 = vpack.c.bf16 %v2904_v8, %v2903_v49 }
 0xadb   :  { %11097 = vmatprep.subr.bf16.mxu0 %v14437_v6 }
 0xadc   :  { %11102 = vmatpush3.bf16.msra.mxu1 %v12605_v60 }
 0xadd   :  { %11103 = vmatprep.subr.bf16.mxu1 %v14437_v6 }
 0xade   :  { %11099 = vmatpush3.bf16.msra.mxu0 %v12420_v2  ;;  %v12611_v2 = vpack.c.bf16 %v2906_v25, %v2905_v31  ;;  %v11630_v43 = vpop.eup %11629 }
 0xae0   :  { %11105 = vmatpush3.bf16.msra.mxu1 %v12611_v2 }
 0xba8   :  { %v2626_v51 = vpop.f32.mrb[18].mxu0  ;;  %v2699_v54 = vpop.f32.mrb[18].mxu1 }
 0xba9   :  { %v2700_v56 = vadd.f32 %v2699_v54, %v2626_v51  ;;  %v10506_v62 = vpop.f32.mrb[19].mxu0  ;;  %v10517_v12 = vpop.f32.mrb[19].mxu1 }
 0xbab   :  { %v2710_v33 = vadd.f32 %v12429_v26, %v2700_v56  ;;  %v12627_v26 = vld [vmem:[%s14425_s21] ss:$0 sm:$0xff] }
 0xbac   :  { %v2806_v34 = vpop.f32.mrb[20].mxu0 }
 0xbad   :  { %11631 = vtanh.f32 %v2710_v33  ;;  %v10524_v41 = vpop.f32.mrb[21].mxu0 }
 0xbb7   :  { %v11632_v48 = vpop.eup %11631 }
 0xbb8   :  { %v12616_v45 = vmul.f32 %v11632_v48, %v11630_v43 }
 0xbba   :  { %10534 = vmatmul.mubr.msk.f32.vlgmr.msra.gmra.mrb[22].mxu0 %vm80_vm1, %v12616_v45  ;;  %10545 = vmatmul.mubr.msk.f32.vlgmr.msra.gmra.mrb[20].mxu1 %vm80_vm1, %v12616_v45 }
 0xbbb   :  { %3303 = vmatprep.mubr.f32.mxu0 %v14436_v37  ;;  %3374 = vmatprep.mubr.f32.mxu1 %v14436_v37 }
 0xc8d   :  { %v2879_v46 = vpop.f32.mrb[22].mxu0  ;;  %v2980_v0 = vpop.f32.mrb[20].mxu1 }
 0xc8e   :  { %v12629_v27 = vadd.f32 %v2879_v46, %v2806_v34  ;;  %v2981_v28 = vadd.f32 %v12627_v26, %v2980_v0  ;;  %v10535_v55 = vpop.f32.mrb[23].mxu0  ;;  %v10546_v23 = vpop.f32.mrb[21].mxu1 }
 0xc90   :  { %14446 = vst [vmem:[#allocation2_spill] sm:$0xff] %v12629_v27  ;;  %v2995_v4 = vrot.slane %v2981_v28, %v11932_v15 }
 0xc92   :  { %v2996_v24 = vcombine.high %v2995_v4, %v2995_v4  ;;  %v3003_v40 = vrot.slane %v2995_v4, %v11932_v15 }
 0xc94   :  { %v3010_v3 = vrot.slane %v2996_v24, %v11932_v15  ;;  %v3014_v29 = vrot.slane %v3003_v40, %v11937_v20 }
 0xc96   :  { %v3022_v30 = vadd.f32 %v3014_v29, %v12637_v35  ;;  %v3021_v38 = vadd.f32 %v3014_v29, %v12642_v59  ;;  %v3018_v7 = vrot.slane %v3010_v3, %v11937_v20 }
 0xc98   :  { %v3026_v32 = vmax.f32 %v3022_v30, 0.0  ;;  %v3025_v18 = vmax.f32 %v3021_v38, 0.0  ;;  %v3023_v42 = vadd.f32 %v3018_v7, %v12649_v11  ;;  %v3024_v13 = vadd.f32 %v3018_v7, %v12654_v19 }
 0xc9a   :  { %v3037_v16 = vmul.f32 %v12662_v57, %v3026_v32  ;;  %v3036_v58 = vmul.f32 %v12662_v57, %v3025_v18  ;;  %v3027_v21 = vmax.f32 %v3023_v42, 0.0  ;;  %v3028_v53 = vmax.f32 %v3024_v13, 0.0 }
 0xc9c   :  { %v3043_v9 = vsel %vm80_vm1, %v3037_v16, 0.0  ;;  %v3040_v44 = vsel %vm80_vm1, %v3036_v58, 0.0  ;;  %v3038_v14 = vmul.f32 %v12662_v57, %v3027_v21  ;;  %v3039_v8 = vmul.f32 %v12662_v57, %v3028_v53 }
 0xc9d   :  { %3044 = vadd.xlane.f32.xlu1 %v3043_v9  ;;  %3041 = vadd.xlane.f32.xlu0 %v3040_v44 }
 0xc9e   :  { %v3046_v49 = vsel %vm80_vm1, %v3038_v14, 0.0  ;;  %v3049_v31 = vsel %vm80_vm1, %v3039_v8, 0.0 }
 0xca1   :  { %3047 = vadd.xlane.f32.xlu1 %v3046_v49 }
 0xca5   :  { %3050 = vadd.xlane.f32.xlu1 %v3049_v31 }
 0xd2a   :  { %v3045_v25 = vpop.xlane.xlu1 %3044  ;;  %v3042_v36 = vpop.xlane.xlu0 %3041 }
 0xd2b   :  { %v3063_v47 = vrot.slane %v3045_v25, %v11981_v50  ;;  %v3059_v51 = vrot.slane %v3042_v36, %v11984_v52 }
 0xd2d   :  { %v3064_v12 = vsel %vm237_vm2, %v3063_v47, %v3059_v51 }
 0xd2e   :  { %v3048_v39 = vpop.xlane.xlu1 %3047 }
 0xd2f   :  { %v3068_v56 = vrot.slane %v3048_v39, %v11984_v52 }
 0xd32   :  { %v3051_v54 = vpop.xlane.xlu1 %3050 }
 0xd33   :  { %v3072_v62 = vrot.slane %v3051_v54, %v11981_v50 }
 0xd35   :  { %v3073_v33 = vsel %vm237_vm2, %v3072_v62, %v3068_v56  ;;  %v3215_v62 = vld [vmem:[%s14358_s11 + $0x8] sm:$0xff] }
 0xd36   :  { %v3074_v34 = vsel %vm248_vm3, %v3073_v33, %v3064_v12  ;;  %v3220_v12 = vld [vmem:[%s14358_s11 + $0x30] sm:$0xff] }
 0xd37   :  { %v3076_v41 = vsel %vm251_vm4, %v3074_v34, -inf  ;;  %v12700_v33 = vpack.c.bf16 %v3220_v12, %v3215_v62  ;;  %v3214_v34 = vld [vmem:[%s14358_s11] sm:$0xff]  ;;  %v12801_v12 = vld [vmem:[%s14359_s2 + $0x18] sm:$0xff] }
 0xd38   :  { %3077 = vmax.xlane.f32.xlu1 %v3076_v41  ;;  %v3219_v41 = vld [vmem:[%s14358_s11 + $0x28] sm:$0xff] }
 0xd39   :  { %11107 = vmatprep.subr.bf16.mxu0 %v12700_v33 }
 0xdc5   :  { %v3078_v43 = vpop.xlane.xlu1 %3077 }
 0xdc6   :  { %v3083_v48 = vrot.slane %v3078_v43, %v11937_v20  ;;  %v3087_v46 = vrot.slane %v3078_v43, %v11997_v1  ;;  %v3217_v43 = vld [vmem:[%s14358_s11 + $0x18] sm:$0xff] }
 0xdc8   :  { %v3090_v0 = vsub.f32 %v3042_v36, %v3083_v48  ;;  %v3091_v28 = vsub.f32 %v3045_v25, %v3083_v48  ;;  %v3092_v55 = vsub.f32 %v3048_v39, %v3087_v46  ;;  %v3093_v24 = vsub.f32 %v3051_v54, %v3087_v46  ;;  %v3222_v46 = vld [vmem:[%s14358_s11 + $0x40] sm:$0xff] }
 0xdc9   :  { %v12711_v48 = vpack.c.bf16 %v3219_v41, %v3214_v34 }
 0xdca   :  { %v3094_v23 = vmul.f32 1.442695, %v3090_v0  ;;  %v3096_v4 = vmul.f32 1.442695, %v3091_v28  ;;  %v3098_v40 = vmul.f32 1.442695, %v3092_v55  ;;  %v12723_v55 = vpack.c.bf16 %v3222_v46, %v3217_v43 }
 0xdcb   :  { %v3100_v3 = vmul.f32 1.442695, %v3093_v24  ;;  %v3216_v0 = vld [vmem:[%s14358_s11 + $0x10] sm:$0xff]  ;;  %v3221_v28 = vld [vmem:[%s14358_s11 + $0x38] sm:$0xff]  ;;  %11109 = vmatpush1.bf16.msra.mxu0 %v12711_v48  ;;  %v3230_v24 = vld [vmem:[%s14358_s11 + $0x80] sm:$0xff] }
 0xdcc   :  { %11633 = vpow2.f32 %v3094_v23  ;;  %v12725_v23 = vpack.c.bf16 %v3221_v28, %v3216_v0  ;;  %11115 = vmatprep.subr.bf16.mxu1 %v12723_v55 }
 0xdcd   :  { %11635 = vpow2.f32 %v3096_v4  ;;  %v3225_v4 = vld [vmem:[%s14358_s11 + $0x58] sm:$0xff] }
 0xdce   :  { %11637 = vpow2.f32 %v3098_v40  ;;  %v3224_v40 = vld [vmem:[%s14358_s11 + $0x50] sm:$0xff]  ;;  %11117 = vmatpush1.bf16.msra.mxu1 %v12725_v23 }
 0xdcf   :  { %11639 = vpow2.f32 %v3100_v3  ;;  %v12738_v3 = vpack.c.bf16 %v3230_v24, %v3225_v4 }
 0xdd1   :  { %11111 = vmatprep.subr.bf16.mxu0 %v12738_v3 }
 0xdd6   :  { %v11634_v29 = vpop.eup %11633 }
 0xdd7   :  { %v11636_v30 = vpop.eup %11635  ;;  %3107 = vperm.xlu1 %11571, %v11634_v29  }
 0xdd8   :  { %3110 = vperm.xlu0 %11572, %v11636_v30   ;;  %v11638_v38 = vpop.eup %11637 }
 0xdd9   :  { %v11640_v7 = vpop.eup %11639 }
 0xddb   :  { %3113 = vperm.xlu1 %11571, %v11638_v38  }
 0xddf   :  { %3116 = vperm.xlu1 %11571, %v11640_v7  }
 0xe56   :  { %v3108_v32 = vpop.permute.xlu1 %3107 }
 0xe57   :  { %v3111_v18 = vpop.permute.xlu0 %3110  ;;  %v3121_v16 = vrot.slane %v3108_v32, %v11984_v52 }
 0xe58   :  { %v3125_v13 = vrot.slane %v3111_v18, %v11981_v50  ;;  %v3226_v18 = vld [vmem:[%s14358_s11 + $0x60] sm:$0xff] }
 0xe5a   :  { %v3114_v42 = vpop.permute.xlu1 %3113  ;;  %v3126_v44 = vsel %vm237_vm2, %v3125_v13, %v3121_v16  ;;  %v3207_v16 = vld [vmem:[%s14360_s10 + $0x18] sm:$0xff] }
 0xe5b   :  { %v3130_v21 = vrot.slane %v3114_v42, %v11984_v52  ;;  %v3231_v42 = vld [vmem:[%s14358_s11 + $0x88] sm:$0xff] }
 0xe5c   :  { %v12761_v13 = vpack.c.bf16 %v3231_v42, %v3226_v18 }
 0xe5e   :  { %v3117_v58 = vpop.permute.xlu1 %3116 }
 0xe5f   :  { %v3134_v9 = vrot.slane %v3117_v58, %v11981_v50  ;;  %v3212_v58 = vld [vmem:[%s14360_s10 + $0x40] sm:$0xff] }
 0xe61   :  { %v3135_v14 = vsel %vm237_vm2, %v3134_v9, %v3130_v21  ;;  %v12773_v21 = vpack.c.bf16 %v3212_v58, %v3207_v16  ;;  %v12779_v9 = vld [vmem:[%s14359_s2] sm:$0xff] }
 0xe62   :  { %v3136_v53 = vsel %vm248_vm3, %v3135_v14, %v3126_v44  ;;  %v12784_v14 = vld [vmem:[%s14359_s2 + $0x8] sm:$0xff] }
 0xe63   :  { %v3138_v49 = vsel %vm251_vm4, %v3136_v53, 0.0 }
 0xe64   :  { %3139 = vadd.xlane.f32.xlu1 %v3138_v49 }
 0xef1   :  { %v3140_v8 = vpop.xlane.xlu1 %3139 }
 0xef2   :  { %v3145_v31 = vrot.slane %v3140_v8, %v11937_v20  ;;  %v3149_v25 = vrot.slane %v3140_v8, %v11997_v1 }
 0xef4   :  { %11641 = vrcp.f32 %v3145_v31 }
 0xef5   :  { %11643 = vrcp.f32 %v3149_v25 }
 0xefe   :  { %v11642_v36 = vpop.eup %11641 }
 0xeff   :  { %v3153_v39 = vmul.f32 %v11642_v36, %v11634_v29  ;;  %v3154_v47 = vmul.f32 %v11642_v36, %v11636_v30  ;;  %v11644_v51 = vpop.eup %11643  ;;  %v3229_v29 = vld [vmem:[%s14358_s11 + $0x78] sm:$0xff]  ;;  %v3227_v30 = vld [vmem:[%s14358_s11 + $0x68] sm:$0xff] }
 0xf00   :  { %v3156_v54 = vmul.f32 %v11644_v51, %v11638_v38  ;;  %v3157_v56 = vmul.f32 %v11644_v51, %v11640_v7  ;;  %v3232_v38 = vld [vmem:[%s14358_s11 + $0x90] sm:$0xff]  ;;  %v12750_v7 = vpack.c.bf16 %v3229_v29, %v3224_v40 }
 0xf01   :  { %3164 = vperm.xlu0 %11572, %v3153_v39   ;;  %v12752_v32 = vpack.c.bf16 %v3232_v38, %v3227_v30 }
 0xf02   :  { %11113 = vmatpush1.bf16.msra.mxu0 %v12750_v7 }
 0xf03   :  { %11119 = vmatprep.subr.bf16.mxu1 %v12752_v32  ;;  %11122 = vmatprep.subr.bf16.mxu0 %v14437_v6 }
 0xf04   :  { %11121 = vmatpush1.bf16.msra.mxu1 %v12761_v13 }
 0xf05   :  { %3169 = vperm.xlu0 %11572, %v3154_v47   ;;  %11133 = vmatprep.subr.bf16.mxu1 %v12773_v21 }
 0xf09   :  { %3174 = vperm.xlu0 %11572, %v3156_v54   ;;  %v12796_v54 = vld [vmem:[%s14359_s2 + $0x10] sm:$0xff] }
 0xf0d   :  { %3179 = vperm.xlu0 %11572, %v3157_v56  }
 0xf80   :  { %v3165_v44 = vpop.permute.xlu0 %3164 }
 0xf81   :  { %v3182_v53 = vmul.f32 %v3165_v44, %v12779_v9  ;;  %v4134_v8 = vrot.slane %v3165_v44, %v11984_v52 }
 0xf83   :  { %v3186_v36 = vsel %vm80_vm1, %v3182_v53, 0.0 }
 0xf84   :  { %v3170_v49 = vpop.permute.xlu0 %3169 }
 0xf85   :  { %v3183_v31 = vmul.f32 %v3170_v49, %v12784_v14  ;;  %v4138_v25 = vrot.slane %v3170_v49, %v11981_v50  ;;  %v3218_v49 = vld [vmem:[%s14358_s11 + $0x20] sm:$0xff] }
 0xf87   :  { %v3187_v39 = vsel %vm80_vm1, %v3183_v31, 0.0  ;;  %v4139_v47 = vsel %vm237_vm2, %v4138_v25, %v4134_v8  ;;  %v3223_v8 = vld [vmem:[%s14358_s11 + $0x48] sm:$0xff]  ;;  %v3206_v31 = vld [vmem:[%s14360_s10 + $0x10] sm:$0xff]  ;;  %v3211_v25 = vld [vmem:[%s14360_s10 + $0x38] sm:$0xff] }
 0xf88   :  { %v3188_v51 = vadd.f32 %v3187_v39, %v3186_v36  ;;  %v3175_v56 = vpop.permute.xlu0 %3174 }
 0xf89   :  { %v3184_v34 = vmul.f32 %v3175_v56, %v12796_v54  ;;  %v4143_v46 = vrot.slane %v3175_v56, %v11984_v52  ;;  %v12827_v56 = vpack.c.bf16 %v3211_v25, %v3206_v31  ;;  %v3668_v31 = vld [vmem:[%s14361_s12 + $0x10] sm:$0xff]  ;;  %v3673_v25 = vld [vmem:[%s14361_s12 + $0x38] sm:$0xff] }
 0xf8a   :  { %v3189_v62 = vrot.slane %v3188_v51, 4 }
 0xf8b   :  { %v3195_v4 = vsel %vm80_vm1, %v3184_v34, 0.0  ;;  %v3233_v34 = vld [vmem:[%s14358_s11 + $0x98] sm:$0xff] }
 0xf8c   :  { %v3190_v41 = vadd.f32 %v3189_v62, %v3188_v51  ;;  %v3180_v43 = vpop.permute.xlu0 %3179  ;;  %v12825_v51 = vpack.c.bf16 %v3223_v8, %v3218_v49  ;;  %v3228_v62 = vld [vmem:[%s14358_s11 + $0x70] sm:$0xff]  ;;  %v3666_v49 = vld [vmem:[%s14361_s12] sm:$0xff]  ;;  %v3671_v8 = vld [vmem:[%s14361_s12 + $0x28] sm:$0xff] }
 0xf8d   :  { %v3185_v0 = vmul.f32 %v3180_v43, %v12801_v12  ;;  %v4147_v28 = vrot.slane %v3180_v43, %v11981_v50  ;;  %v3205_v43 = vld [vmem:[%s14360_s10 + $0x8] sm:$0xff] }
 0xf8e   :  { %v3191_v29 = vrot.slane %v3190_v41, 2 }
 0xf8f   :  { %v3196_v24 = vsel %vm80_vm1, %v3185_v0, 0.0  ;;  %v4148_v40 = vsel %vm237_vm2, %v4147_v28, %v4143_v46  ;;  %v3210_v46 = vld [vmem:[%s14360_s10 + $0x30] sm:$0xff]  ;;  %v12845_v0 = vpack.c.bf16 %v3233_v34, %v3228_v62  ;;  %v3204_v28 = vld [vmem:[%s14360_s10] sm:$0xff]  ;;  %v3679_v34 = vld [vmem:[%s14361_s12 + $0x68] sm:$0xff] }
 0xf90   :  { %v3197_v30 = vadd.f32 %v3196_v24, %v3195_v4  ;;  %v12811_v38 = vsel %vm248_vm3, %v4148_v40, %v4139_v47  ;;  %v3192_v42 = vadd.f32 %v3191_v29, %v3190_v41  ;;  %v12854_v4 = vpack.c.bf16 %v3210_v46, %v3205_v43  ;;  %v3209_v24 = vld [vmem:[%s14360_s10 + $0x28] sm:$0xff]  ;;  %v3208_v40 = vld [vmem:[%s14360_s10 + $0x20] sm:$0xff]  ;;  %v3684_v43 = vld [vmem:[%s14361_s12 + $0x90] sm:$0xff] }
 0xf91   :  { %v3213_v29 = vld [vmem:[%s14360_s10 + $0x48] sm:$0xff]  ;;  %v3682_v62 = vld [vmem:[%s14361_s12 + $0x80] sm:$0xff]  ;;  %v12920_v46 = vpack.c.bf16 %v3671_v8, %v3666_v49 }
 0xf92   :  { %v3198_v18 = vrot.slane %v3197_v30, 4  ;;  %v3193_v44 = vrot.slane %v3192_v42, 1  ;;  %v3670_v49 = vld [vmem:[%s14361_s12 + $0x20] sm:$0xff] }
 0xf93   :  { %14447 = vst [vmem:[#allocation3_spill] sm:$0xff] %v12920_v46 }
 0xf94   :  { %v3199_v16 = vadd.f32 %v3198_v18, %v3197_v30  ;;  %v3194_v39 = vadd.f32 %v3193_v44, %v3192_v42  ;;  %v3667_v30 = vld [vmem:[%s14361_s12 + $0x8] sm:$0xff]  ;;  %v3672_v18 = vld [vmem:[%s14361_s12 + $0x30] sm:$0xff]  ;;  %v3669_v42 = vld [vmem:[%s14361_s12 + $0x18] sm:$0xff] }
 0xf95   :  { %v10009_v44 = vld [vmem:[%s14362_s1 + $0x4] sm:$0x3] }
 0xf96   :  { %v3200_v58 = vrot.slane %v3199_v16, 2 }
 0xf98   :  { %v3201_v53 = vadd.f32 %v3200_v58, %v3199_v16  ;;  %v3674_v16 = vld [vmem:[%s14361_s12 + $0x40] sm:$0xff]  ;;  %v12880_v58 = vpack.c.bf16 %v3209_v24, %v3204_v28  ;;  %v12922_v28 = vpack.c.bf16 %v3673_v25, %v3668_v31  ;;  %v3676_v24 = vld [vmem:[%s14361_s12 + $0x50] sm:$0xff]  ;;  %v3685_v25 = vld [vmem:[%s14361_s12 + $0x98] sm:$0xff] }
 0xf99   :  { %v3680_v31 = vld [vmem:[%s14361_s12 + $0x70] sm:$0xff] }
 0xf9a   :  { %v3202_v36 = vrot.slane %v3201_v53, 1  ;;  %14448 = vst [vmem:[#allocation5_spill] sm:$0xff] %v12922_v28 }
 0xf9c   :  { %v3203_v47 = vadd.f32 %v3202_v36, %v3201_v53  ;;  %v12885_v53 = vpack.c.bf16 %v3213_v29, %v3208_v40  ;;  %v3677_v36 = vld [vmem:[%s14361_s12 + $0x58] sm:$0xff]  ;;  %v12932_v40 = vpack.c.bf16 %v3684_v43, %v3679_v34  ;;  %v3966_v34 = vld [vmem:[%s14363_s15 + $0x8] sm:$0xff]  ;;  %v3961_v43 = vld [vmem:[%s14364_s14] sm:$0xff] }
 0xf9d   :  { %v3681_v29 = vld [vmem:[%s14361_s12 + $0x78] sm:$0xff] }
 0xf9e   :  { %v3236_v41 = vsel %vm248_vm3, %v3203_v47, %v3194_v39  ;;  %v12903_v39 = vpack.c.bf16 %v3672_v18, %v3667_v30  ;;  %v12905_v47 = vpack.c.bf16 %v3674_v16, %v3669_v42  ;;  %14450 = vst [vmem:[#allocation7_spill] sm:$0xff] %v12932_v40  ;;  %v3678_v30 = vld [vmem:[%s14361_s12 + $0x60] sm:$0xff]  ;;  %v3683_v18 = vld [vmem:[%s14361_s12 + $0x88] sm:$0xff]  ;;  %v12949_v42 = vpack.c.bf16 %v3681_v29, %v3676_v24 }
 0xf9f   :  { %10013 = vmatmul.mubr.msk.f32.vlgmr.msra.gmra.mrb[24].mxu0 %vm80_vm1, %v3236_v41  ;;  %10014 = vmatmul.mubr.msk.f32.vlgmr.msra.gmra.mrb[22].mxu1 %vm80_vm1, %v3236_v41  ;;  %v12951_v16 = vpack.c.bf16 %v3683_v18, %v3678_v30  ;;  %v3967_v30 = vld [vmem:[%s14363_s15 + $0x10] sm:$0xff]  ;;  %v3968_v18 = vld [vmem:[%s14363_s15 + $0x18] sm:$0xff] }
 0xfa0   :  { %11124 = vmatpush3.bf16.msra.mxu0 %v12825_v51  ;;  %11135 = vmatpush1.bf16.msra.mxu1 %v12827_v56  ;;  %14451 = vst [vmem:[#allocation6_spill] sm:$0xff] %v12949_v42 }
 0xfa1   :  { %11125 = vmatprep.subr.bf16.mxu0 %v14437_v6  ;;  %10555 = vmatprep.mubr.msk.f32.mxu0 %vm11784_vm0, %v14436_v37  ;;  %14452 = vst [vmem:[#allocation8_spill] sm:$0xff] %v12951_v16 }
 0xfa2   :  { %3589 = vmatprep.mubr.f32.mxu1 %v14436_v37  ;;  %11136 = vmatprep.subr.bf16.mxu1 %v14437_v6 }
 0xfa4   :  { %11127 = vmatpush3.bf16.msra.mxu0 %v12845_v0 }
 0xfa5   :  { %11129 = vmatprep.subr.bf16.mxu0 %v12854_v4 }
 0xfa7   :  { %10556 = vmatmul.mubr.msk.f32.vlgmr.msra.gmra.mrb[26].mxu0 %vm80_vm1, %v3236_v41  ;;  %10017 = vmatmul.mubr.msk.f32.vlgmr.msra.gmra.mrb[22].mxu1 %vm627_vm5, %v10009_v44  ;;  %v12930_v41 = vpack.c.bf16 %v3682_v62, %v3677_v36  ;;  %v12980_v36 = vpack.c.bf16 %v3685_v25, %v3680_v31  ;;  %v3965_v62 = vld [vmem:[%s14363_s15] sm:$0xff]  ;;  %v3964_v31 = vld [vmem:[%s14364_s14 + $0x18] sm:$0xff] }
 0xfa8   :  { %11131 = vmatpush1.bf16.msra.mxu0 %v12880_v58  ;;  %11138 = vmatpush3.bf16.msra.mxu1 %v12885_v53  ;;  %v13002_v24 = vpack.c.bf16 %v3966_v34, %v3965_v62 }
 0xfa9   :  { %3518 = vmatprep.mubr.f32.mxu0 %v14436_v37  ;;  %10562 = vmatprep.mubr.msk.f32.mxu1 %vm11784_vm0, %v14436_v37  ;;  %14449 = vst [vmem:[#allocation4_spill] sm:$0xff] %v12930_v41  ;;  %14454 = vst [vmem:[#allocation12_spill] sm:$0xff] %v12980_v36 }
 0xfaa   :  { %11140 = vmatprep.subr.bf16.mxu0 %v12903_v39  ;;  %11148 = vmatprep.subr.bf16.mxu1 %v12905_v47  ;;  %14455 = vst [vmem:[#allocation13_spill] sm:$0xff] %v13002_v24 }
 0xfab   :  { %10016 = vmatmul.mubr.msk.f32.vlgmr.msra.gmra.mrb[24].mxu0 %vm627_vm5, %v10009_v44  ;;  %10563 = vmatmul.mubr.msk.f32.vlgmr.msra.gmra.mrb[24].mxu1 %vm627_vm5, %v10009_v44  ;;  %v3675_v44 = vld [vmem:[%s14361_s12 + $0x48] sm:$0xff] }
 0xfac   :  { %11142 = vmatpush1.bf16.msra.mxu0 %v12920_v46  ;;  %11150 = vmatpush1.bf16.msra.mxu1 %v12922_v28  ;;  %v12965_v8 = vpack.c.bf16 %v3675_v44, %v3670_v49  ;;  %v3963_v49 = vld [vmem:[%s14364_s14 + $0x10] sm:$0xff]  ;;  %v13021_v44 = vpack.c.bf16 %v3968_v18, %v3967_v30  ;;  %v3903_v18 = vld [vmem:[%s14365_s13] sm:$0x1f] }
 0xfad   :  { %11144 = vmatprep.subr.bf16.mxu0 %v12930_v41  ;;  %11152 = vmatprep.subr.bf16.mxu1 %v12932_v40  ;;  %v13027_v25 = vpack.c.bf16 %v3964_v31, %v3963_v49  ;;  %v3908_v49 = vrot.slane %v3903_v18, %v11937_v20  ;;  %v3916_v31 = vrot.slane %v3903_v18, %v12351_v17 }
 0xfae   :  { %3750 = vmatprep.mubr.f32.mxu0 %v14436_v37  ;;  %3821 = vmatprep.mubr.f32.mxu1 %v14436_v37  ;;  %14453 = vst [vmem:[#allocation11_spill] sm:$0xff] %v12965_v8  ;;  %14457 = vst [vmem:[#allocation15_spill] sm:$0xff] %v13021_v44  ;;  %v3912_v27 = vrot.slane %v3903_v18, %v11997_v1 }
 0xfaf   :  { %14458 = vst [vmem:[#allocation16_spill] sm:$0xff] %v13027_v25 }
 0xfb0   :  { %11146 = vmatpush1.bf16.msra.mxu0 %v12949_v42  ;;  %11154 = vmatpush1.bf16.msra.mxu1 %v12951_v16  ;;  %v3924_v42 = vrot.slane %v3903_v18, %v12365_v63 }
 0xfb1   :  { %11155 = vmatprep.subr.bf16.mxu1 %v14437_v6  ;;  %11161 = vmatprep.subr.bf16.mxu0 %v14437_v6 }
 0xfb3   :  { %10019 = vmatmul.mubr.msk.f32.vlgmr.msra.gmra.mrb[24].mxu0 %vm80_vm1, %v12616_v45  ;;  %10020 = vmatmul.mubr.msk.f32.vlgmr.msra.gmra.mrb[22].mxu1 %vm80_vm1, %v12616_v45 }
 0xfb4   :  { %11157 = vmatpush3.bf16.msra.mxu1 %v12965_v8  ;;  %10573 = vmatprep.mubr.msk.f32.mxu1 %vm11784_vm0, %v14436_v37 }
 0xfb5   :  { %11158 = vmatprep.subr.bf16.mxu1 %v14437_v6  ;;  %10584 = vmatprep.mubr.msk.f32.mxu0 %vm11784_vm0, %v14436_v37 }
 0xfb6   :  { %11163 = vmatpush3.bf16.msra.mxu0 %v13002_v24 }
 0xfb7   :  { %11164 = vmatprep.subr.bf16.mxu0 %v14437_v6 }
 0xfb8   :  { %11160 = vmatpush3.bf16.msra.mxu1 %v12980_v36 }
 0xfb9   :  { %11167 = vmatprep.subr.bf16.mxu1 %v14437_v6 }
 0xfba   :  { %11166 = vmatpush3.bf16.msra.mxu0 %v13021_v44 }
 0xfbb   :  { %10574 = vmatmul.mubr.msk.f32.vlgmr.msra.gmra.mrb[26].mxu1 %vm80_vm1, %v12616_v45  ;;  %v3962_v45 = vld [vmem:[%s14364_s14 + $0x8] sm:$0xff]  ;;  %11173 = vmatprep.subr.bf16.mxu0 %v14437_v6 }
 0xfbc   :  { %10595 = vmatprep.mubr.msk.f32.mxu1 %vm11784_vm0, %v14436_v37  ;;  %v13007_v29 = vpack.c.bf16 %v3962_v45, %v3961_v43 }
 0xfbe   :  { %14456 = vst [vmem:[#allocation14_spill] sm:$0xff] %v13007_v29  ;;  %11169 = vmatpush3.bf16.msra.mxu1 %v13007_v29 }
 0xfbf   :  { %11170 = vmatprep.subr.bf16.mxu1 %v14437_v6 }
 0xfc2   :  { %11172 = vmatpush3.bf16.msra.mxu1 %v13027_v25 }
 0xfc3   :  { %11182 = vmatprep.subr.bf16.mxu1 %v14437_v6 }
0x107a   :  { %v3447_v62 = vpop.f32.mrb[26].mxu0 }
0x107b   :  { %v10557_v34 = vpop.f32.mrb[27].mxu0 }
0x107e   :  { %v3662_v43 = vpop.f32.mrb[24].mxu1 }
0x107f   :  { %v3663_v45 = vadd.f32 %v3662_v43, %v3447_v62  ;;  %v10564_v30 = vpop.f32.mrb[25].mxu1  ;;  %v3920_v43 = vrot.slane %v3903_v18, %v12362_v22 }
0x1086   :  { %v3752_v5 = vpop.f32.mrb[24].mxu0  ;;  %v3823_v25 = vpop.f32.mrb[22].mxu1 }
0x1087   :  { %v3930_v29 = vadd.f32 %v3908_v49, %v3752_v5  ;;  %v3932_v44 = vadd.f32 %v3916_v31, %v3823_v25  ;;  %v3754_v36 = vpop.f32.mrb[25].mxu0  ;;  %v3825_v24 = vpop.f32.mrb[23].mxu1 }
0x1088   :  { %v3931_v34 = vadd.f32 %v3912_v27, %v3754_v36  ;;  %v3933_v40 = vadd.f32 %v3920_v43, %v3825_v24  ;;  %v13096_v43 = vld [vmem:[%s14370_s16] ss:$0 sm:$0xff] }
0x1089   :  { %v10022_v8 = vmul.f32 -1.442695, %v3930_v29  ;;  %v10024_v24 = vmul.f32 -1.442695, %v3932_v44 }
0x108a   :  { %v10023_v62 = vmul.f32 -1.442695, %v3931_v34 }
0x108b   :  { %11645 = vpow2.f32 %v10022_v8 }
0x108c   :  { %11647 = vpow2.f32 %v10023_v62 }
0x108d   :  { %11649 = vtanh.f32 %v3933_v40 }
0x108e   :  { %v3894_v30 = vpop.f32.mrb[26].mxu1 }
0x108f   :  { %v3902_v16 = vadd.f32 %v3894_v30, %v3663_v45  ;;  %v10575_v17 = vpop.f32.mrb[27].mxu1  ;;  %v4129_v45 = vld [vmem:[%s14368_s19] sm:$0xff] }
0x1090   :  { %v4130_v17 = vld [vmem:[%s14368_s19 + $0x8] sm:$0xff] }
0x1091   :  { %v3934_v41 = vadd.f32 %v3924_v42, %v3902_v16 }
0x1093   :  { %11651 = vtanh.f32 %v3934_v41  ;;  %v13049_v41 = vpack.c.bf16 %v4130_v17, %v4129_v45 }
0x1095   :  { %v11646_v28 = vpop.eup %11645 }
0x1096   :  { %v3938_v46 = vadd.f32 1.0, %v11646_v28  ;;  %v11648_v5 = vpop.eup %11647 }
0x1097   :  { %v3944_v27 = vadd.f32 1.0, %v11648_v5  ;;  %v11650_v36 = vpop.eup %11649 }
0x1098   :  { %11653 = vrcp.f32 %v3938_v46 }
0x1099   :  { %11655 = vrcp.f32 %v3944_v27 }
0x109a   :  { %11657 = vpow2.f32 %v10024_v24 }
0x109d   :  { %v11652_v8 = vpop.eup %11651 }
0x10a2   :  { %v11654_v29 = vpop.eup %11653 }
0x10a3   :  { %v3956_v25 = vmul.f32 %v11654_v29, %v11650_v36  ;;  %v3959_v49 = vmul.f32 %v11654_v29, %v11652_v8  ;;  %v11656_v28 = vpop.eup %11655 }
0x10a4   :  { %v3958_v40 = vmul.f32 %v11656_v28, %v12575_v61  ;;  %v3955_v46 = vmul.f32 %v11656_v28, %v12577_v10  ;;  %v4125_v61 = vld [vmem:[%s14369_s17] sm:$0xff]  ;;  %v4126_v10 = vld [vmem:[%s14369_s17 + $0x8] sm:$0xff]  ;;  %v11658_v18 = vpop.eup %11657 }
0x10a5   :  { %v3950_v31 = vadd.f32 1.0, %v11658_v18 }
0x10a6   :  { %v13051_v42 = vadd.f32 %v3959_v49, %v3958_v40  ;;  %v13053_v16 = vadd.f32 %v3956_v25, %v3955_v46 }
0x10a7   :  { %11659 = vrcp.f32 %v3950_v31 }
0x10a8   :  { %10585 = vmatmul.mubr.msk.f32.vlgmr.msra.gmra.mrb[28].mxu0 %vm80_vm1, %v13051_v42  ;;  %10596 = vmatmul.mubr.msk.f32.vlgmr.msra.gmra.mrb[28].mxu1 %vm80_vm1, %v13053_v16 }
0x10a9   :  { %11175 = vmatpush3.bf16.msra.mxu0 %v13049_v41  ;;  %10602 = vmatprep.mubr.msk.f32.mxu0 %vm11784_vm0, %v14436_v37 }
0x10aa   :  { %11176 = vmatprep.subr.bf16.mxu0 %v14437_v6  ;;  %11184 = vmatpush3.bf16.msra.mxu1 %v12605_v60  ;;  %v4127_v60 = vld [vmem:[%s14369_s17 + $0x10] sm:$0xff] }
0x10ab   :  { %11185 = vmatprep.subr.bf16.mxu1 %v14437_v6  ;;  %10624 = vmatprep.mubr.msk.f32.mxu1 %vm11784_vm0, %v14436_v37 }
0x10ac   :  { %10603 = vmatmul.mubr.msk.f32.vlgmr.msra.gmra.mrb[30].mxu0 %vm627_vm5, %v12811_v38  ;;  %v13082_v38 = vpack.c.bf16 %v4126_v10, %v4125_v61 }
0x10ad   :  { %10613 = vmatprep.mubr.msk.f32.mxu0 %vm11784_vm0, %v14436_v37 }
0x10ae   :  { %11187 = vmatpush3.bf16.msra.mxu1 %v12611_v2  ;;  %v4128_v2 = vld [vmem:[%s14369_s17 + $0x18] sm:$0xff]  ;;  %11178 = vmatpush3.bf16.msra.mxu0 %v13082_v38 }
0x10af   :  { %11197 = vmatprep.subr.bf16.mxu1 %v12723_v55  ;;  %v13088_v55 = vpack.c.bf16 %v4128_v2, %v4127_v60  ;;  %11179 = vmatprep.subr.bf16.mxu0 %v14437_v6 }
0x10b1   :  { %v11660_v44 = vpop.eup %11659 }
0x10b2   :  { %11181 = vmatpush3.bf16.msra.mxu0 %v13088_v55 }
0x10b3   :  { %11189 = vmatprep.subr.bf16.mxu0 %v12700_v33 }
0x117b   :  { %v4038_v34 = vpop.f32.mrb[28].mxu0  ;;  %v4111_v62 = vpop.f32.mrb[28].mxu1 }
0x117c   :  { %v4112_v30 = vadd.f32 %v4111_v62, %v4038_v34  ;;  %v10586_v5 = vpop.f32.mrb[29].mxu0  ;;  %v10597_v27 = vpop.f32.mrb[29].mxu1 }
0x117e   :  { %v4122_v36 = vadd.f32 %v13096_v43, %v4112_v30 }
0x117f   :  { %v4218_v8 = vpop.f32.mrb[30].mxu0 }
0x1180   :  { %11661 = vtanh.f32 %v4122_v36  ;;  %v10604_v33 = vpop.f32.mrb[31].mxu0 }
0x118a   :  { %v11662_v29 = vpop.eup %11661 }
0x118b   :  { %v13099_v25 = vmul.f32 %v11662_v29, %v11660_v44 }
0x118d   :  { %10614 = vmatmul.mubr.msk.f32.vlgmr.msra.gmra.mrb[32].mxu0 %vm80_vm1, %v13099_v25  ;;  %10625 = vmatmul.mubr.msk.f32.vlgmr.msra.gmra.mrb[30].mxu1 %vm80_vm1, %v13099_v25 }
0x118e   :  { %11191 = vmatpush1.bf16.msra.mxu0 %v12711_v48  ;;  %11199 = vmatpush1.bf16.msra.mxu1 %v12725_v23 }
0x118f   :  { %11193 = vmatprep.subr.bf16.mxu0 %v12738_v3  ;;  %11201 = vmatprep.subr.bf16.mxu1 %v12752_v32 }
0x1190   :  { %4715 = vmatprep.mubr.f32.mxu0 %v14436_v37  ;;  %4786 = vmatprep.mubr.f32.mxu1 %v14436_v37 }
0x1192   :  { %11195 = vmatpush1.bf16.msra.mxu0 %v12750_v7  ;;  %11203 = vmatpush1.bf16.msra.mxu1 %v12761_v13 }
0x1193   :  { %11204 = vmatprep.subr.bf16.mxu0 %v14437_v6  ;;  %11215 = vmatprep.subr.bf16.mxu1 %v12773_v21 }
0x1260   :  { %v4291_v49 = vpop.f32.mrb[32].mxu0  ;;  %v4392_v48 = vpop.f32.mrb[30].mxu1 }
0x1261   :  { %v13115_v45 = vadd.f32 %v4291_v49, %v4218_v8  ;;  %v4393_v23 = vadd.f32 %v12627_v26, %v4392_v48  ;;  %v10615_v3 = vpop.f32.mrb[33].mxu0  ;;  %v10626_v32 = vpop.f32.mrb[31].mxu1 }
0x1263   :  { %14459 = vst [vmem:[#allocation17_spill] sm:$0xff] %v13115_v45  ;;  %v4407_v17 = vrot.slane %v4393_v23, %v11932_v15 }
0x1265   :  { %v4408_v28 = vcombine.high %v4407_v17, %v4407_v17  ;;  %v4415_v40 = vrot.slane %v4407_v17, %v11932_v15 }
0x1267   :  { %v4422_v7 = vrot.slane %v4408_v28, %v11932_v15  ;;  %v4426_v13 = vrot.slane %v4415_v40, %v11937_v20 }
0x1269   :  { %v4434_v46 = vadd.f32 %v4426_v13, %v12637_v35  ;;  %v4433_v21 = vadd.f32 %v4426_v13, %v12642_v59  ;;  %v4430_v61 = vrot.slane %v4422_v7, %v11937_v20 }
0x126b   :  { %v4438_v10 = vmax.f32 %v4434_v46, 0.0  ;;  %v4437_v60 = vmax.f32 %v4433_v21, 0.0  ;;  %v4435_v26 = vadd.f32 %v4430_v61, %v12649_v11  ;;  %v4436_v2 = vadd.f32 %v4430_v61, %v12654_v19 }
0x126d   :  { %v4449_v24 = vmul.f32 %v12662_v57, %v4438_v10  ;;  %v4448_v18 = vmul.f32 %v12662_v57, %v4437_v60  ;;  %v4439_v31 = vmax.f32 %v4435_v26, 0.0  ;;  %v4440_v59 = vmax.f32 %v4436_v2, 0.0 }
0x126f   :  { %v4455_v34 = vsel %vm80_vm1, %v4449_v24, 0.0  ;;  %v4452_v62 = vsel %vm80_vm1, %v4448_v18, 0.0  ;;  %v4450_v35 = vmul.f32 %v12662_v57, %v4439_v31  ;;  %v4451_v11 = vmul.f32 %v12662_v57, %v4440_v59 }
0x1270   :  { %4456 = vadd.xlane.f32.xlu1 %v4455_v34  ;;  %4453 = vadd.xlane.f32.xlu0 %v4452_v62 }
0x1271   :  { %v4458_v30 = vsel %vm80_vm1, %v4450_v35, 0.0  ;;  %v4461_v19 = vsel %vm80_vm1, %v4451_v11, 0.0 }
0x1274   :  { %4459 = vadd.xlane.f32.xlu1 %v4458_v30 }
0x1278   :  { %4462 = vadd.xlane.f32.xlu1 %v4461_v19 }
0x12fd   :  { %v4457_v5 = vpop.xlane.xlu1 %4456  ;;  %v4454_v27 = vpop.xlane.xlu0 %4453 }
0x12fe   :  { %v4475_v8 = vrot.slane %v4457_v5, %v11981_v50  ;;  %v4471_v33 = vrot.slane %v4454_v27, %v11984_v52 }
0x1300   :  { %v4476_v48 = vsel %vm237_vm2, %v4475_v8, %v4471_v33 }
0x1301   :  { %v4460_v36 = vpop.xlane.xlu1 %4459 }
0x1302   :  { %v4480_v29 = vrot.slane %v4460_v36, %v11984_v52 }
0x1305   :  { %v4463_v44 = vpop.xlane.xlu1 %4462 }
0x1306   :  { %v4484_v49 = vrot.slane %v4463_v44, %v11981_v50 }
0x1308   :  { %v4485_v57 = vsel %vm237_vm2, %v4484_v49, %v4480_v29 }
0x1309   :  { %v4486_v23 = vsel %vm248_vm3, %v4485_v57, %v4476_v48 }
0x130a   :  { %v4488_v3 = vsel %vm251_vm4, %v4486_v23, -inf }
0x130b   :  { %4489 = vmax.xlane.f32.xlu1 %v4488_v3 }
0x1398   :  { %v4490_v32 = vpop.xlane.xlu1 %4489 }
0x1399   :  { %v4495_v17 = vrot.slane %v4490_v32, %v11937_v20  ;;  %v4499_v28 = vrot.slane %v4490_v32, %v11997_v1 }
0x139b   :  { %v4502_v40 = vsub.f32 %v4454_v27, %v4495_v17  ;;  %v4503_v7 = vsub.f32 %v4457_v5, %v4495_v17  ;;  %v4504_v13 = vsub.f32 %v4460_v36, %v4499_v28  ;;  %v4505_v61 = vsub.f32 %v4463_v44, %v4499_v28 }
0x139d   :  { %v4506_v46 = vmul.f32 1.442695, %v4502_v40  ;;  %v4508_v21 = vmul.f32 1.442695, %v4503_v7  ;;  %v4510_v10 = vmul.f32 1.442695, %v4504_v13 }
0x139e   :  { %v4512_v60 = vmul.f32 1.442695, %v4505_v61 }
0x139f   :  { %11663 = vpow2.f32 %v4506_v46 }
0x13a0   :  { %11665 = vpow2.f32 %v4508_v21 }
0x13a1   :  { %11667 = vpow2.f32 %v4510_v10 }
0x13a2   :  { %11669 = vpow2.f32 %v4512_v60 }
0x13a9   :  { %v11664_v26 = vpop.eup %11663 }
0x13aa   :  { %v11666_v2 = vpop.eup %11665  ;;  %4519 = vperm.xlu1 %11571, %v11664_v26  }
0x13ab   :  { %4522 = vperm.xlu0 %11572, %v11666_v2   ;;  %v11668_v24 = vpop.eup %11667 }
0x13ac   :  { %v11670_v18 = vpop.eup %11669 }
0x13ae   :  { %4525 = vperm.xlu1 %11571, %v11668_v24  }
0x13b2   :  { %4528 = vperm.xlu1 %11571, %v11670_v18  }
0x1429   :  { %v4520_v31 = vpop.permute.xlu1 %4519 }
0x142a   :  { %v4523_v34 = vpop.permute.xlu0 %4522  ;;  %v4533_v59 = vrot.slane %v4520_v31, %v11984_v52 }
0x142b   :  { %v4537_v35 = vrot.slane %v4523_v34, %v11981_v50 }
0x142d   :  { %v4526_v62 = vpop.permute.xlu1 %4525  ;;  %v4538_v5 = vsel %vm237_vm2, %v4537_v35, %v4533_v59 }
0x142e   :  { %v4542_v11 = vrot.slane %v4526_v62, %v11984_v52 }
0x1431   :  { %v4529_v30 = vpop.permute.xlu1 %4528 }
0x1432   :  { %v4546_v19 = vrot.slane %v4529_v30, %v11981_v50 }
0x1434   :  { %v4547_v27 = vsel %vm237_vm2, %v4546_v19, %v4542_v11 }
0x1435   :  { %v4548_v36 = vsel %vm248_vm3, %v4547_v27, %v4538_v5 }
0x1436   :  { %v4550_v8 = vsel %vm251_vm4, %v4548_v36, 0.0 }
0x1437   :  { %4551 = vadd.xlane.f32.xlu0 %v4550_v8 }
0x14c4   :  { %v4552_v33 = vpop.xlane.xlu0 %4551 }
0x14c5   :  { %v4557_v44 = vrot.slane %v4552_v33, %v11937_v20  ;;  %v4561_v29 = vrot.slane %v4552_v33, %v11997_v1 }
0x14c7   :  { %11671 = vrcp.f32 %v4557_v44 }
0x14c8   :  { %11673 = vrcp.f32 %v4561_v29 }
0x14d1   :  { %v11672_v49 = vpop.eup %11671 }
0x14d2   :  { %v4565_v48 = vmul.f32 %v11672_v49, %v11664_v26  ;;  %v4566_v57 = vmul.f32 %v11672_v49, %v11666_v2  ;;  %v11674_v23 = vpop.eup %11673 }
0x14d3   :  { %v4568_v3 = vmul.f32 %v11674_v23, %v11668_v24  ;;  %v4569_v32 = vmul.f32 %v11674_v23, %v11670_v18  ;;  %v14469_v23 = vld [vmem:[#allocation15_spill] sm:$0xff] }
0x14d4   :  { %4576 = vperm.xlu1 %11571, %v4565_v48   ;;  %v10032_v48 = vld [vmem:[%s14362_s1 + $0x6] sm:$0x3] }
0x14d8   :  { %4581 = vperm.xlu1 %11571, %v4566_v57   ;;  %v14468_v57 = vld [vmem:[#allocation12_spill] sm:$0xff] }
0x14dc   :  { %4586 = vperm.xlu1 %11571, %v4568_v3   ;;  %v14470_v3 = vld [vmem:[#allocation14_spill] sm:$0xff] }
0x14e0   :  { %4591 = vperm.xlu1 %11571, %v4569_v32   ;;  %v14471_v32 = vld [vmem:[#allocation16_spill] sm:$0xff] }
0x1553   :  { %v4577_v17 = vpop.permute.xlu1 %4576 }
0x1554   :  { %v4594_v28 = vmul.f32 %v4577_v17, %v12779_v9  ;;  %v5546_v7 = vrot.slane %v4577_v17, %v11984_v52 }
0x1556   :  { %v4598_v21 = vsel %vm80_vm1, %v4594_v28, 0.0 }
0x1557   :  { %v4582_v40 = vpop.permute.xlu1 %4581 }
0x1558   :  { %v4595_v13 = vmul.f32 %v4582_v40, %v12784_v14  ;;  %v5550_v46 = vrot.slane %v4582_v40, %v11981_v50 }
0x155a   :  { %v4599_v61 = vsel %vm80_vm1, %v4595_v13, 0.0  ;;  %v5551_v10 = vsel %vm237_vm2, %v5550_v46, %v5546_v7 }
0x155b   :  { %v4600_v60 = vadd.f32 %v4599_v61, %v4598_v21  ;;  %v4587_v26 = vpop.permute.xlu1 %4586  ;;  %v14472_v21 = vld [vmem:[#allocation9_spill] sm:$0xff] }
0x155c   :  { %v4596_v24 = vmul.f32 %v4587_v26, %v12796_v54  ;;  %v5555_v31 = vrot.slane %v4587_v26, %v11984_v52 }
0x155d   :  { %v4601_v2 = vrot.slane %v4600_v60, 4 }
0x155e   :  { %v4607_v62 = vsel %vm80_vm1, %v4596_v24, 0.0 }
0x155f   :  { %v4602_v18 = vadd.f32 %v4601_v2, %v4600_v60  ;;  %v4592_v9 = vpop.permute.xlu1 %4591 }
0x1560   :  { %v4597_v34 = vmul.f32 %v4592_v9, %v12801_v12  ;;  %v5559_v14 = vrot.slane %v4592_v9, %v11981_v50 }
0x1561   :  { %v4603_v30 = vrot.slane %v4602_v18, 2 }
0x1562   :  { %v4608_v35 = vsel %vm80_vm1, %v4597_v34, 0.0  ;;  %v5560_v59 = vsel %vm237_vm2, %v5559_v14, %v5555_v31 }
0x1563   :  { %v4609_v11 = vadd.f32 %v4608_v35, %v4607_v62  ;;  %v13170_v19 = vsel %vm248_vm3, %v5560_v59, %v5551_v10  ;;  %v4604_v5 = vadd.f32 %v4603_v30, %v4602_v18 }
0x1565   :  { %v4610_v54 = vrot.slane %v4609_v11, 4  ;;  %v4605_v8 = vrot.slane %v4604_v5, 1 }
0x1567   :  { %v4611_v27 = vadd.f32 %v4610_v54, %v4609_v11  ;;  %v4606_v44 = vadd.f32 %v4605_v8, %v4604_v5 }
0x1569   :  { %v4612_v36 = vrot.slane %v4611_v27, 2 }
0x156b   :  { %v4613_v33 = vadd.f32 %v4612_v36, %v4611_v27 }
0x156d   :  { %v4614_v12 = vrot.slane %v4613_v33, 1 }
0x156f   :  { %v4615_v29 = vadd.f32 %v4614_v12, %v4613_v33 }
0x1571   :  { %v4648_v49 = vsel %vm248_vm3, %v4615_v29, %v4606_v44 }
0x1572   :  { %10036 = vmatmul.mubr.msk.f32.vlgmr.msra.gmra.mrb[34].mxu0 %vm80_vm1, %v4648_v49  ;;  %10037 = vmatmul.mubr.msk.f32.vlgmr.msra.gmra.mrb[32].mxu1 %vm80_vm1, %v4648_v49 }
0x1573   :  { %11206 = vmatpush3.bf16.msra.mxu0 %v12825_v51  ;;  %11217 = vmatpush1.bf16.msra.mxu1 %v12827_v56  ;;  %v14460_v51 = vld [vmem:[#allocation3_spill] sm:$0xff]  ;;  %v14461_v56 = vld [vmem:[#allocation5_spill] sm:$0xff] }
0x1574   :  { %11207 = vmatprep.subr.bf16.mxu0 %v14437_v6  ;;  %10635 = vmatprep.mubr.msk.f32.mxu0 %vm11784_vm0, %v14436_v37 }
0x1575   :  { %5001 = vmatprep.mubr.f32.mxu1 %v14436_v37  ;;  %11218 = vmatprep.subr.bf16.mxu1 %v14437_v6 }
0x1577   :  { %11209 = vmatpush3.bf16.msra.mxu0 %v12845_v0  ;;  %v14462_v0 = vld [vmem:[#allocation4_spill] sm:$0xff] }
0x1578   :  { %11211 = vmatprep.subr.bf16.mxu0 %v12854_v4  ;;  %v14463_v4 = vld [vmem:[#allocation7_spill] sm:$0xff] }
0x157a   :  { %10636 = vmatmul.mubr.msk.f32.vlgmr.msra.gmra.mrb[36].mxu0 %vm80_vm1, %v4648_v49  ;;  %10040 = vmatmul.mubr.msk.f32.vlgmr.msra.gmra.mrb[32].mxu1 %vm627_vm5, %v10032_v48 }
0x157b   :  { %11213 = vmatpush1.bf16.msra.mxu0 %v12880_v58  ;;  %11220 = vmatpush3.bf16.msra.mxu1 %v12885_v53  ;;  %v14464_v58 = vld [vmem:[#allocation6_spill] sm:$0xff]  ;;  %v14465_v53 = vld [vmem:[#allocation8_spill] sm:$0xff] }
0x157c   :  { %4930 = vmatprep.mubr.f32.mxu0 %v14436_v37  ;;  %10642 = vmatprep.mubr.msk.f32.mxu1 %vm11784_vm0, %v14436_v37 }
0x157d   :  { %11222 = vmatprep.subr.bf16.mxu0 %v12903_v39  ;;  %11230 = vmatprep.subr.bf16.mxu1 %v12905_v47  ;;  %v14466_v39 = vld [vmem:[#allocation11_spill] sm:$0xff]  ;;  %v14467_v47 = vld [vmem:[#allocation13_spill] sm:$0xff] }
0x157e   :  { %10039 = vmatmul.mubr.msk.f32.vlgmr.msra.gmra.mrb[34].mxu0 %vm627_vm5, %v10032_v48  ;;  %10643 = vmatmul.mubr.msk.f32.vlgmr.msra.gmra.mrb[34].mxu1 %vm627_vm5, %v10032_v48 }
0x157f   :  { %11224 = vmatpush1.bf16.msra.mxu0 %v14460_v51  ;;  %11232 = vmatpush1.bf16.msra.mxu1 %v14461_v56 }
0x1580   :  { %11226 = vmatprep.subr.bf16.mxu0 %v14462_v0  ;;  %11234 = vmatprep.subr.bf16.mxu1 %v14463_v4 }
0x1581   :  { %5162 = vmatprep.mubr.f32.mxu0 %v14436_v37  ;;  %5233 = vmatprep.mubr.f32.mxu1 %v14436_v37 }
0x1583   :  { %11228 = vmatpush1.bf16.msra.mxu0 %v14464_v58  ;;  %11236 = vmatpush1.bf16.msra.mxu1 %v14465_v53 }
0x1584   :  { %11237 = vmatprep.subr.bf16.mxu1 %v14437_v6  ;;  %11243 = vmatprep.subr.bf16.mxu0 %v14437_v6 }
0x1586   :  { %10042 = vmatmul.mubr.msk.f32.vlgmr.msra.gmra.mrb[34].mxu0 %vm80_vm1, %v13099_v25  ;;  %10043 = vmatmul.mubr.msk.f32.vlgmr.msra.gmra.mrb[32].mxu1 %vm80_vm1, %v13099_v25 }
0x1587   :  { %11239 = vmatpush3.bf16.msra.mxu1 %v14466_v39  ;;  %10653 = vmatprep.mubr.msk.f32.mxu1 %vm11784_vm0, %v14436_v37 }
0x1588   :  { %11240 = vmatprep.subr.bf16.mxu1 %v14437_v6  ;;  %11245 = vmatpush3.bf16.msra.mxu0 %v14467_v47 }
0x1589   :  { %11246 = vmatprep.subr.bf16.mxu0 %v14437_v6  ;;  %10664 = vmatprep.mubr.msk.f32.mxu0 %vm11784_vm0, %v14436_v37 }
0x158b   :  { %11242 = vmatpush3.bf16.msra.mxu1 %v14468_v57 }
0x158c   :  { %11249 = vmatprep.subr.bf16.mxu1 %v14437_v6  ;;  %11248 = vmatpush3.bf16.msra.mxu0 %v14469_v23 }
0x158d   :  { %11255 = vmatprep.subr.bf16.mxu0 %v14437_v6 }
0x158e   :  { %10654 = vmatmul.mubr.msk.f32.vlgmr.msra.gmra.mrb[36].mxu1 %vm80_vm1, %v13099_v25  ;;  %v5315_v25 = vld [vmem:[%s14365_s13] sm:$0x1f] }
0x158f   :  { %11251 = vmatpush3.bf16.msra.mxu1 %v14470_v3  ;;  %10675 = vmatprep.mubr.msk.f32.mxu1 %vm11784_vm0, %v14436_v37  ;;  %v5320_v46 = vrot.slane %v5315_v25, %v11937_v20  ;;  %v5328_v61 = vrot.slane %v5315_v25, %v14472_v21  ;;  %v5324_v10 = vrot.slane %v5315_v25, %v11997_v1 }
0x1590   :  { %11252 = vmatprep.subr.bf16.mxu1 %v14437_v6  ;;  %v5332_v62 = vrot.slane %v5315_v25, %v12362_v22  ;;  %v5336_v30 = vrot.slane %v5315_v25, %v12365_v63 }
0x1593   :  { %11254 = vmatpush3.bf16.msra.mxu1 %v14471_v32 }
0x1594   :  { %11264 = vmatprep.subr.bf16.mxu1 %v14437_v6 }
0x164d   :  { %v4859_v17 = vpop.f32.mrb[36].mxu0 }
0x164e   :  { %v10637_v28 = vpop.f32.mrb[37].mxu0 }
0x1651   :  { %v5074_v40 = vpop.f32.mrb[34].mxu1 }
0x1652   :  { %v5075_v7 = vadd.f32 %v5074_v40, %v4859_v17  ;;  %v10644_v13 = vpop.f32.mrb[35].mxu1 }
0x1659   :  { %v5164_v60 = vpop.f32.mrb[34].mxu0  ;;  %v5235_v26 = vpop.f32.mrb[32].mxu1 }
0x165a   :  { %v5342_v2 = vadd.f32 %v5320_v46, %v5164_v60  ;;  %v5344_v24 = vadd.f32 %v5328_v61, %v5235_v26  ;;  %v5166_v18 = vpop.f32.mrb[35].mxu0  ;;  %v5237_v9 = vpop.f32.mrb[33].mxu1 }
0x165b   :  { %v5343_v31 = vadd.f32 %v5324_v10, %v5166_v18  ;;  %v5345_v54 = vadd.f32 %v5332_v62, %v5237_v9 }
0x165c   :  { %v10045_v34 = vmul.f32 -1.442695, %v5342_v2  ;;  %v10047_v53 = vmul.f32 -1.442695, %v5344_v24 }
0x165d   :  { %v10046_v14 = vmul.f32 -1.442695, %v5343_v31 }
0x165e   :  { %11675 = vpow2.f32 %v10045_v34  ;;  %v13304_v34 = vld [vmem:[%s14426_s24 + $0x8] sm:$0xff] }
0x165f   :  { %11677 = vpow2.f32 %v10046_v14  ;;  %v13309_v14 = vld [vmem:[%s14426_s24] sm:$0xff] }
0x1660   :  { %11679 = vtanh.f32 %v5345_v54 }
0x1661   :  { %v5306_v35 = vpop.f32.mrb[36].mxu1 }
0x1662   :  { %v5314_v59 = vadd.f32 %v5306_v35, %v5075_v7  ;;  %v10655_v11 = vpop.f32.mrb[37].mxu1 }
0x1664   :  { %v5346_v5 = vadd.f32 %v5336_v30, %v5314_v59  ;;  %v13316_v59 = vld [vmem:[%s14426_s24 + $0x10] sm:$0xff]  ;;  %v13321_v30 = vld [vmem:[%s14426_s24 + $0x18] sm:$0xff] }
0x1666   :  { %11681 = vtanh.f32 %v5346_v5 }
0x1668   :  { %v11676_v27 = vpop.eup %11675 }
0x1669   :  { %v5350_v36 = vadd.f32 1.0, %v11676_v27  ;;  %v11678_v8 = vpop.eup %11677  ;;  %v13329_v27 = vld [vmem:[%s14427_s30] ss:$0 sm:$0xff] }
0x166a   :  { %v5356_v33 = vadd.f32 1.0, %v11678_v8  ;;  %v11680_v12 = vpop.eup %11679 }
0x166b   :  { %11683 = vrcp.f32 %v5350_v36 }
0x166c   :  { %11685 = vrcp.f32 %v5356_v33 }
0x166d   :  { %11687 = vpow2.f32 %v10047_v53 }
0x1670   :  { %v11682_v44 = vpop.eup %11681 }
0x1675   :  { %v11684_v29 = vpop.eup %11683 }
0x1676   :  { %v5368_v49 = vmul.f32 %v11684_v29, %v11680_v12  ;;  %v5371_v48 = vmul.f32 %v11684_v29, %v11682_v44  ;;  %v11686_v51 = vpop.eup %11685 }
0x1677   :  { %v5370_v56 = vmul.f32 %v11686_v51, %v13051_v42  ;;  %v5367_v0 = vmul.f32 %v11686_v51, %v13053_v16  ;;  %v5728_v42 = vld [vmem:[%s14423_s23 + $0x8] sm:$0xff]  ;;  %v5729_v16 = vld [vmem:[%s14423_s23 + $0x10] sm:$0xff]  ;;  %v11688_v39 = vpop.eup %11687 }
0x1678   :  { %v5362_v47 = vadd.f32 1.0, %v11688_v39 }
0x1679   :  { %v13242_v4 = vadd.f32 %v5371_v48, %v5370_v56  ;;  %v13244_v58 = vadd.f32 %v5368_v49, %v5367_v0 }
0x167a   :  { %11689 = vrcp.f32 %v5362_v47 }
0x167b   :  { %10665 = vmatmul.mubr.msk.f32.vlgmr.msra.gmra.mrb[38].mxu0 %vm80_vm1, %v13242_v4  ;;  %10676 = vmatmul.mubr.msk.f32.vlgmr.msra.gmra.mrb[38].mxu1 %vm80_vm1, %v13244_v58 }
0x167c   :  { %11257 = vmatpush3.bf16.msra.mxu0 %v13049_v41  ;;  %10682 = vmatprep.mubr.msk.f32.mxu0 %vm11784_vm0, %v14436_v37  ;;  %v5727_v41 = vld [vmem:[%s14423_s23] sm:$0xff] }
0x167d   :  { %11258 = vmatprep.subr.bf16.mxu0 %v14437_v6  ;;  %10704 = vmatprep.mubr.msk.f32.mxu1 %vm11784_vm0, %v14436_v37 }
0x167f   :  { %10683 = vmatmul.mubr.msk.f32.vlgmr.msra.gmra.mrb[40].mxu0 %vm627_vm5, %v13170_v19  ;;  %v5730_v19 = vld [vmem:[%s14423_s23 + $0x18] sm:$0xff] }
0x1680   :  { %11260 = vmatpush3.bf16.msra.mxu0 %v13082_v38  ;;  %10693 = vmatprep.mubr.msk.f32.mxu0 %vm11784_vm0, %v14436_v37  ;;  %v13272_v38 = vpack.c.bf16 %v5728_v42, %v5727_v41 }
0x1681   :  { %11261 = vmatprep.subr.bf16.mxu0 %v14437_v6 }
0x1682   :  { %11266 = vmatpush3.bf16.msra.mxu1 %v13272_v38 }
0x1683   :  { %11267 = vmatprep.subr.bf16.mxu1 %v14437_v6 }
0x1684   :  { %11263 = vmatpush3.bf16.msra.mxu0 %v13088_v55  ;;  %v13278_v55 = vpack.c.bf16 %v5730_v19, %v5729_v16  ;;  %v11690_v13 = vpop.eup %11689 }
0x1686   :  { %11269 = vmatpush3.bf16.msra.mxu1 %v13278_v55 }
0x174e   :  { %v5450_v57 = vpop.f32.mrb[38].mxu0  ;;  %v5523_v23 = vpop.f32.mrb[38].mxu1 }
0x174f   :  { %v5524_v3 = vadd.f32 %v5523_v23, %v5450_v57  ;;  %v10666_v32 = vpop.f32.mrb[39].mxu0  ;;  %v10677_v17 = vpop.f32.mrb[39].mxu1 }
0x1751   :  { %v5534_v28 = vadd.f32 %v13096_v43, %v5524_v3  ;;  %v13294_v43 = vld [vmem:[%s14425_s21] ss:$0 sm:$0xff] }
0x1752   :  { %v5630_v40 = vpop.f32.mrb[40].mxu0 }
0x1753   :  { %11691 = vtanh.f32 %v5534_v28  ;;  %v10684_v7 = vpop.f32.mrb[41].mxu0 }
0x175d   :  { %v11692_v25 = vpop.eup %11691 }
0x175e   :  { %v13283_v46 = vmul.f32 %v11692_v25, %v11690_v13 }
0x1760   :  { %10694 = vmatmul.mubr.msk.f32.vlgmr.msra.gmra.mrb[42].mxu0 %vm80_vm1, %v13283_v46  ;;  %10705 = vmatmul.mubr.msk.f32.vlgmr.msra.gmra.mrb[40].mxu1 %vm80_vm1, %v13283_v46 }
0x1761   :  { %6127 = vmatprep.mubr.f32.mxu0 %v14436_v37  ;;  %6198 = vmatprep.mubr.f32.mxu1 %v14436_v37 }
0x1833   :  { %v5703_v61 = vpop.f32.mrb[42].mxu0  ;;  %v5804_v10 = vpop.f32.mrb[40].mxu1 }
0x1834   :  { %v13296_v60 = vadd.f32 %v5703_v61, %v5630_v40  ;;  %v5805_v26 = vadd.f32 %v13294_v43, %v5804_v10  ;;  %v10695_v2 = vpop.f32.mrb[43].mxu0  ;;  %v10706_v24 = vpop.f32.mrb[41].mxu1 }
0x1836   :  { %14473 = vst [vmem:[#allocation3_spill] sm:$0xff] %v13296_v60  ;;  %v5819_v18 = vrot.slane %v5805_v26, %v11932_v15 }
0x1838   :  { %v5820_v9 = vcombine.high %v5819_v18, %v5819_v18  ;;  %v5827_v31 = vrot.slane %v5819_v18, %v11932_v15 }
0x183a   :  { %v5834_v62 = vrot.slane %v5820_v9, %v11932_v15  ;;  %v5838_v35 = vrot.slane %v5827_v31, %v11937_v20 }
0x183c   :  { %v5846_v11 = vadd.f32 %v5838_v35, %v13304_v34  ;;  %v5845_v54 = vadd.f32 %v5838_v35, %v13309_v14  ;;  %v5842_v5 = vrot.slane %v5834_v62, %v11937_v20 }
0x183e   :  { %v5850_v36 = vmax.f32 %v5846_v11, 0.0  ;;  %v5849_v8 = vmax.f32 %v5845_v54, 0.0  ;;  %v5847_v33 = vadd.f32 %v5842_v5, %v13316_v59  ;;  %v5848_v12 = vadd.f32 %v5842_v5, %v13321_v30 }
0x1840   :  { %v5861_v44 = vmul.f32 %v13329_v27, %v5850_v36  ;;  %v5860_v29 = vmul.f32 %v13329_v27, %v5849_v8  ;;  %v5851_v49 = vmax.f32 %v5847_v33, 0.0  ;;  %v5852_v0 = vmax.f32 %v5848_v12, 0.0 }
0x1842   :  { %v5867_v48 = vsel %vm80_vm1, %v5861_v44, 0.0  ;;  %v5864_v51 = vsel %vm80_vm1, %v5860_v29, 0.0  ;;  %v5862_v56 = vmul.f32 %v13329_v27, %v5851_v49  ;;  %v5863_v42 = vmul.f32 %v13329_v27, %v5852_v0 }
0x1843   :  { %5868 = vadd.xlane.f32.xlu0 %v5867_v48  ;;  %5865 = vadd.xlane.f32.xlu1 %v5864_v51 }
0x1844   :  { %v5870_v41 = vsel %vm80_vm1, %v5862_v56, 0.0  ;;  %v5873_v16 = vsel %vm80_vm1, %v5863_v42, 0.0 }
0x1847   :  { %5871 = vadd.xlane.f32.xlu0 %v5870_v41 }
0x184b   :  { %5874 = vadd.xlane.f32.xlu0 %v5873_v16 }
0x18d0   :  { %v5869_v19 = vpop.xlane.xlu0 %5868  ;;  %v5866_v53 = vpop.xlane.xlu1 %5865 }
0x18d1   :  { %v5887_v47 = vrot.slane %v5869_v19, %v11981_v50  ;;  %v5883_v57 = vrot.slane %v5866_v53, %v11984_v52 }
0x18d3   :  { %v5888_v17 = vsel %vm237_vm2, %v5887_v47, %v5883_v57 }
0x18d4   :  { %v5872_v39 = vpop.xlane.xlu0 %5871 }
0x18d5   :  { %v5892_v3 = vrot.slane %v5872_v39, %v11984_v52 }
0x18d8   :  { %v5875_v23 = vpop.xlane.xlu0 %5874 }
0x18d9   :  { %v5896_v32 = vrot.slane %v5875_v23, %v11981_v50 }
0x18db   :  { %v5897_v28 = vsel %vm237_vm2, %v5896_v32, %v5892_v3  ;;  %v6039_v32 = vld [vmem:[%s14358_s11 + $0x8] sm:$0xff] }
0x18dc   :  { %v5898_v40 = vsel %vm248_vm3, %v5897_v28, %v5888_v17  ;;  %v6044_v17 = vld [vmem:[%s14358_s11 + $0x30] sm:$0xff] }
0x18dd   :  { %v5900_v7 = vsel %vm251_vm4, %v5898_v40, -inf  ;;  %v13367_v28 = vpack.c.bf16 %v6044_v17, %v6039_v32  ;;  %v6038_v40 = vld [vmem:[%s14358_s11] sm:$0xff]  ;;  %v13468_v17 = vld [vmem:[%s14359_s2 + $0x18] sm:$0xff] }
0x18de   :  { %5901 = vmax.xlane.f32.xlu0 %v5900_v7  ;;  %v6043_v7 = vld [vmem:[%s14358_s11 + $0x28] sm:$0xff] }
0x18df   :  { %11271 = vmatprep.subr.bf16.mxu0 %v13367_v28 }
0x196b   :  { %v5902_v13 = vpop.xlane.xlu0 %5901 }
0x196c   :  { %v5907_v25 = vrot.slane %v5902_v13, %v11937_v20  ;;  %v5911_v61 = vrot.slane %v5902_v13, %v11997_v1  ;;  %v6041_v13 = vld [vmem:[%s14358_s11 + $0x18] sm:$0xff] }
0x196e   :  { %v5914_v10 = vsub.f32 %v5866_v53, %v5907_v25  ;;  %v5915_v26 = vsub.f32 %v5869_v19, %v5907_v25  ;;  %v5916_v2 = vsub.f32 %v5872_v39, %v5911_v61  ;;  %v5917_v24 = vsub.f32 %v5875_v23, %v5911_v61  ;;  %v6046_v61 = vld [vmem:[%s14358_s11 + $0x40] sm:$0xff] }
0x196f   :  { %v13378_v25 = vpack.c.bf16 %v6043_v7, %v6038_v40 }
0x1970   :  { %v5918_v18 = vmul.f32 1.442695, %v5914_v10  ;;  %v5920_v9 = vmul.f32 1.442695, %v5915_v26  ;;  %v5922_v31 = vmul.f32 1.442695, %v5916_v2  ;;  %v13390_v2 = vpack.c.bf16 %v6046_v61, %v6041_v13 }
0x1971   :  { %v5924_v62 = vmul.f32 1.442695, %v5917_v24  ;;  %v6040_v10 = vld [vmem:[%s14358_s11 + $0x10] sm:$0xff]  ;;  %v6045_v26 = vld [vmem:[%s14358_s11 + $0x38] sm:$0xff]  ;;  %11273 = vmatpush1.bf16.msra.mxu0 %v13378_v25 }
0x1972   :  { %11693 = vpow2.f32 %v5918_v18  ;;  %v13392_v24 = vpack.c.bf16 %v6045_v26, %v6040_v10  ;;  %v6049_v18 = vld [vmem:[%s14358_s11 + $0x58] sm:$0xff]  ;;  %11279 = vmatprep.subr.bf16.mxu1 %v13390_v2 }
0x1973   :  { %11695 = vpow2.f32 %v5920_v9  ;;  %v6054_v9 = vld [vmem:[%s14358_s11 + $0x80] sm:$0xff] }
0x1974   :  { %11697 = vpow2.f32 %v5922_v31  ;;  %v13402_v31 = vpack.c.bf16 %v6054_v9, %v6049_v18  ;;  %11281 = vmatpush1.bf16.msra.mxu1 %v13392_v24 }
0x1975   :  { %11699 = vpow2.f32 %v5924_v62  ;;  %v6048_v62 = vld [vmem:[%s14358_s11 + $0x50] sm:$0xff] }
0x1976   :  { %11275 = vmatprep.subr.bf16.mxu0 %v13402_v31 }
0x197c   :  { %v11694_v35 = vpop.eup %11693 }
0x197d   :  { %v11696_v11 = vpop.eup %11695  ;;  %5931 = vperm.xlu0 %11572, %v11694_v35  }
0x197e   :  { %5934 = vperm.xlu1 %11571, %v11696_v11   ;;  %v11698_v54 = vpop.eup %11697 }
0x197f   :  { %v11700_v5 = vpop.eup %11699 }
0x1981   :  { %5937 = vperm.xlu0 %11572, %v11698_v54  }
0x1982   :  { %5940 = vperm.xlu1 %11571, %v11700_v5  }
0x19fc   :  { %v5932_v36 = vpop.permute.xlu0 %5931 }
0x19fd   :  { %v5935_v8 = vpop.permute.xlu1 %5934  ;;  %v5945_v12 = vrot.slane %v5932_v36, %v11984_v52  ;;  %v6050_v36 = vld [vmem:[%s14358_s11 + $0x60] sm:$0xff] }
0x19fe   :  { %v5949_v33 = vrot.slane %v5935_v8, %v11981_v50  ;;  %v6055_v8 = vld [vmem:[%s14358_s11 + $0x88] sm:$0xff] }
0x1a00   :  { %v5938_v44 = vpop.permute.xlu0 %5937  ;;  %v5950_v51 = vsel %vm237_vm2, %v5949_v33, %v5945_v12  ;;  %v13428_v12 = vpack.c.bf16 %v6055_v8, %v6050_v36 }
0x1a01   :  { %v5941_v29 = vpop.permute.xlu1 %5940  ;;  %v5954_v49 = vrot.slane %v5938_v44, %v11984_v52  ;;  %v6031_v44 = vld [vmem:[%s14360_s10 + $0x18] sm:$0xff] }
0x1a02   :  { %v5958_v48 = vrot.slane %v5941_v29, %v11981_v50  ;;  %v6036_v29 = vld [vmem:[%s14360_s10 + $0x40] sm:$0xff] }
0x1a04   :  { %v5959_v56 = vsel %vm237_vm2, %v5958_v48, %v5954_v49  ;;  %v13440_v49 = vpack.c.bf16 %v6036_v29, %v6031_v44  ;;  %v13446_v48 = vld [vmem:[%s14359_s2] sm:$0xff] }
0x1a05   :  { %v5960_v0 = vsel %vm248_vm3, %v5959_v56, %v5950_v51  ;;  %v13451_v56 = vld [vmem:[%s14359_s2 + $0x8] sm:$0xff] }
0x1a06   :  { %v5962_v41 = vsel %vm251_vm4, %v5960_v0, 0.0 }
0x1a07   :  { %5963 = vadd.xlane.f32.xlu0 %v5962_v41 }
0x1a94   :  { %v5964_v42 = vpop.xlane.xlu0 %5963 }
0x1a95   :  { %v5969_v16 = vrot.slane %v5964_v42, %v11937_v20  ;;  %v5973_v19 = vrot.slane %v5964_v42, %v11997_v1 }
0x1a97   :  { %11701 = vrcp.f32 %v5969_v16 }
0x1a98   :  { %11703 = vrcp.f32 %v5973_v19 }
0x1aa1   :  { %v11702_v53 = vpop.eup %11701 }
0x1aa2   :  { %v5977_v39 = vmul.f32 %v11702_v53, %v11694_v35  ;;  %v5978_v47 = vmul.f32 %v11702_v53, %v11696_v11  ;;  %v11704_v57 = vpop.eup %11703  ;;  %v6053_v35 = vld [vmem:[%s14358_s11 + $0x78] sm:$0xff]  ;;  %v6051_v11 = vld [vmem:[%s14358_s11 + $0x68] sm:$0xff] }
0x1aa3   :  { %v5980_v23 = vmul.f32 %v11704_v57, %v11698_v54  ;;  %v5981_v3 = vmul.f32 %v11704_v57, %v11700_v5  ;;  %v13414_v54 = vpack.c.bf16 %v6053_v35, %v6048_v62  ;;  %v6056_v5 = vld [vmem:[%s14358_s11 + $0x90] sm:$0xff] }
0x1aa4   :  { %5988 = vperm.xlu1 %11571, %v5977_v39   ;;  %v13426_v33 = vpack.c.bf16 %v6056_v5, %v6051_v11 }
0x1aa5   :  { %11277 = vmatpush1.bf16.msra.mxu0 %v13414_v54 }
0x1aa6   :  { %11283 = vmatprep.subr.bf16.mxu1 %v13426_v33  ;;  %11286 = vmatprep.subr.bf16.mxu0 %v14437_v6 }
0x1aa7   :  { %11285 = vmatpush1.bf16.msra.mxu1 %v13428_v12 }
0x1aa8   :  { %5993 = vperm.xlu1 %11571, %v5978_v47   ;;  %11297 = vmatprep.subr.bf16.mxu1 %v13440_v49 }
0x1aac   :  { %5998 = vperm.xlu1 %11571, %v5980_v23   ;;  %v13463_v23 = vld [vmem:[%s14359_s2 + $0x10] sm:$0xff] }
0x1ab0   :  { %6003 = vperm.xlu1 %11571, %v5981_v3  }
0x1b23   :  { %v5989_v51 = vpop.permute.xlu1 %5988 }
0x1b24   :  { %v6006_v0 = vmul.f32 %v5989_v51, %v13446_v48  ;;  %v6958_v42 = vrot.slane %v5989_v51, %v11984_v52 }
0x1b26   :  { %v6010_v53 = vsel %vm80_vm1, %v6006_v0, 0.0 }
0x1b27   :  { %v5994_v41 = vpop.permute.xlu1 %5993 }
0x1b28   :  { %v6007_v16 = vmul.f32 %v5994_v41, %v13451_v56  ;;  %v6962_v19 = vrot.slane %v5994_v41, %v11981_v50  ;;  %v6042_v41 = vld [vmem:[%s14358_s11 + $0x20] sm:$0xff] }
0x1b2a   :  { %v6011_v39 = vsel %vm80_vm1, %v6007_v16, 0.0  ;;  %v6963_v47 = vsel %vm237_vm2, %v6962_v19, %v6958_v42  ;;  %v6047_v42 = vld [vmem:[%s14358_s11 + $0x48] sm:$0xff]  ;;  %v6030_v16 = vld [vmem:[%s14360_s10 + $0x10] sm:$0xff]  ;;  %v6035_v19 = vld [vmem:[%s14360_s10 + $0x38] sm:$0xff] }
0x1b2b   :  { %v6012_v57 = vadd.f32 %v6011_v39, %v6010_v53  ;;  %v5999_v3 = vpop.permute.xlu1 %5998 }
0x1b2c   :  { %v6008_v40 = vmul.f32 %v5999_v3, %v13463_v23  ;;  %v6967_v61 = vrot.slane %v5999_v3, %v11984_v52  ;;  %v13494_v3 = vpack.c.bf16 %v6035_v19, %v6030_v16  ;;  %v6492_v16 = vld [vmem:[%s14361_s12 + $0x10] sm:$0xff]  ;;  %v6497_v19 = vld [vmem:[%s14361_s12 + $0x38] sm:$0xff] }
0x1b2d   :  { %v6013_v32 = vrot.slane %v6012_v57, 4 }
0x1b2e   :  { %v6019_v18 = vsel %vm80_vm1, %v6008_v40, 0.0  ;;  %v6057_v40 = vld [vmem:[%s14358_s11 + $0x98] sm:$0xff] }
0x1b2f   :  { %v6014_v7 = vadd.f32 %v6013_v32, %v6012_v57  ;;  %v6004_v13 = vpop.permute.xlu1 %6003  ;;  %v13492_v57 = vpack.c.bf16 %v6047_v42, %v6042_v41  ;;  %v6052_v32 = vld [vmem:[%s14358_s11 + $0x70] sm:$0xff]  ;;  %v6490_v41 = vld [vmem:[%s14361_s12] sm:$0xff]  ;;  %v6495_v42 = vld [vmem:[%s14361_s12 + $0x28] sm:$0xff] }
0x1b30   :  { %v6009_v10 = vmul.f32 %v6004_v13, %v13468_v17  ;;  %v6971_v26 = vrot.slane %v6004_v13, %v11981_v50  ;;  %v6029_v13 = vld [vmem:[%s14360_s10 + $0x8] sm:$0xff] }
0x1b31   :  { %v6015_v35 = vrot.slane %v6014_v7, 2 }
0x1b32   :  { %v6020_v9 = vsel %vm80_vm1, %v6009_v10, 0.0  ;;  %v6972_v62 = vsel %vm237_vm2, %v6971_v26, %v6967_v61  ;;  %v6034_v61 = vld [vmem:[%s14360_s10 + $0x30] sm:$0xff]  ;;  %v13512_v10 = vpack.c.bf16 %v6057_v40, %v6052_v32  ;;  %v6028_v26 = vld [vmem:[%s14360_s10] sm:$0xff]  ;;  %v6503_v40 = vld [vmem:[%s14361_s12 + $0x68] sm:$0xff] }
0x1b33   :  { %v6021_v11 = vadd.f32 %v6020_v9, %v6019_v18  ;;  %v13478_v5 = vsel %vm248_vm3, %v6972_v62, %v6963_v47  ;;  %v6016_v8 = vadd.f32 %v6015_v35, %v6014_v7  ;;  %v13521_v18 = vpack.c.bf16 %v6034_v61, %v6029_v13  ;;  %v6033_v9 = vld [vmem:[%s14360_s10 + $0x28] sm:$0xff]  ;;  %v6032_v62 = vld [vmem:[%s14360_s10 + $0x20] sm:$0xff]  ;;  %v6508_v13 = vld [vmem:[%s14361_s12 + $0x90] sm:$0xff] }
0x1b34   :  { %v6037_v35 = vld [vmem:[%s14360_s10 + $0x48] sm:$0xff]  ;;  %v6506_v32 = vld [vmem:[%s14361_s12 + $0x80] sm:$0xff]  ;;  %v13587_v61 = vpack.c.bf16 %v6495_v42, %v6490_v41 }
0x1b35   :  { %v6022_v36 = vrot.slane %v6021_v11, 4  ;;  %v6017_v51 = vrot.slane %v6016_v8, 1  ;;  %v6494_v41 = vld [vmem:[%s14361_s12 + $0x20] sm:$0xff] }
0x1b36   :  { %14474 = vst [vmem:[#allocation5_spill] sm:$0xff] %v13587_v61 }
0x1b37   :  { %v6023_v44 = vadd.f32 %v6022_v36, %v6021_v11  ;;  %v6018_v39 = vadd.f32 %v6017_v51, %v6016_v8  ;;  %v6491_v11 = vld [vmem:[%s14361_s12 + $0x8] sm:$0xff]  ;;  %v6496_v36 = vld [vmem:[%s14361_s12 + $0x30] sm:$0xff]  ;;  %v6493_v8 = vld [vmem:[%s14361_s12 + $0x18] sm:$0xff] }
0x1b38   :  { %v10055_v51 = vld [vmem:[%s14362_s1 + $0x8] sm:$0x3] }
0x1b39   :  { %v6024_v29 = vrot.slane %v6023_v44, 2 }
0x1b3b   :  { %v6025_v0 = vadd.f32 %v6024_v29, %v6023_v44  ;;  %v6498_v44 = vld [vmem:[%s14361_s12 + $0x40] sm:$0xff]  ;;  %v13547_v29 = vpack.c.bf16 %v6033_v9, %v6028_v26  ;;  %v13589_v26 = vpack.c.bf16 %v6497_v19, %v6492_v16  ;;  %v6500_v9 = vld [vmem:[%s14361_s12 + $0x50] sm:$0xff]  ;;  %v6509_v19 = vld [vmem:[%s14361_s12 + $0x98] sm:$0xff] }
0x1b3c   :  { %v6504_v16 = vld [vmem:[%s14361_s12 + $0x70] sm:$0xff] }
0x1b3d   :  { %v6026_v53 = vrot.slane %v6025_v0, 1  ;;  %14475 = vst [vmem:[#allocation4_spill] sm:$0xff] %v13589_v26 }
0x1b3f   :  { %v6027_v47 = vadd.f32 %v6026_v53, %v6025_v0  ;;  %v13552_v0 = vpack.c.bf16 %v6037_v35, %v6032_v62  ;;  %v6501_v53 = vld [vmem:[%s14361_s12 + $0x58] sm:$0xff]  ;;  %v13599_v62 = vpack.c.bf16 %v6508_v13, %v6503_v40  ;;  %v6790_v40 = vld [vmem:[%s14363_s15 + $0x8] sm:$0xff]  ;;  %v6785_v13 = vld [vmem:[%s14364_s14] sm:$0xff] }
0x1b40   :  { %v6505_v35 = vld [vmem:[%s14361_s12 + $0x78] sm:$0xff] }
0x1b41   :  { %v6060_v7 = vsel %vm248_vm3, %v6027_v47, %v6018_v39  ;;  %v13570_v39 = vpack.c.bf16 %v6496_v36, %v6491_v11  ;;  %v13572_v47 = vpack.c.bf16 %v6498_v44, %v6493_v8  ;;  %14477 = vst [vmem:[#allocation6_spill] sm:$0xff] %v13599_v62  ;;  %v6502_v11 = vld [vmem:[%s14361_s12 + $0x60] sm:$0xff]  ;;  %v6507_v36 = vld [vmem:[%s14361_s12 + $0x88] sm:$0xff]  ;;  %v13616_v8 = vpack.c.bf16 %v6505_v35, %v6500_v9 }
0x1b42   :  { %10059 = vmatmul.mubr.msk.f32.vlgmr.msra.gmra.mrb[44].mxu0 %vm80_vm1, %v6060_v7  ;;  %10060 = vmatmul.mubr.msk.f32.vlgmr.msra.gmra.mrb[42].mxu1 %vm80_vm1, %v6060_v7  ;;  %v13618_v44 = vpack.c.bf16 %v6507_v36, %v6502_v11  ;;  %v6791_v11 = vld [vmem:[%s14363_s15 + $0x10] sm:$0xff]  ;;  %v6792_v36 = vld [vmem:[%s14363_s15 + $0x18] sm:$0xff] }
0x1b43   :  { %11288 = vmatpush3.bf16.msra.mxu0 %v13492_v57  ;;  %11299 = vmatpush1.bf16.msra.mxu1 %v13494_v3  ;;  %14478 = vst [vmem:[#allocation8_spill] sm:$0xff] %v13616_v8 }
0x1b44   :  { %11289 = vmatprep.subr.bf16.mxu0 %v14437_v6  ;;  %10715 = vmatprep.mubr.msk.f32.mxu0 %vm11784_vm0, %v14436_v37  ;;  %14479 = vst [vmem:[#allocation11_spill] sm:$0xff] %v13618_v44 }
0x1b45   :  { %6413 = vmatprep.mubr.f32.mxu1 %v14436_v37  ;;  %11300 = vmatprep.subr.bf16.mxu1 %v14437_v6 }
0x1b47   :  { %11291 = vmatpush3.bf16.msra.mxu0 %v13512_v10 }
0x1b48   :  { %11293 = vmatprep.subr.bf16.mxu0 %v13521_v18 }
0x1b4a   :  { %10716 = vmatmul.mubr.msk.f32.vlgmr.msra.gmra.mrb[46].mxu0 %vm80_vm1, %v6060_v7  ;;  %10063 = vmatmul.mubr.msk.f32.vlgmr.msra.gmra.mrb[42].mxu1 %vm627_vm5, %v10055_v51  ;;  %v13597_v7 = vpack.c.bf16 %v6506_v32, %v6501_v53  ;;  %v13647_v53 = vpack.c.bf16 %v6509_v19, %v6504_v16  ;;  %v6789_v32 = vld [vmem:[%s14363_s15] sm:$0xff]  ;;  %v6788_v16 = vld [vmem:[%s14364_s14 + $0x18] sm:$0xff] }
0x1b4b   :  { %11295 = vmatpush1.bf16.msra.mxu0 %v13547_v29  ;;  %11302 = vmatpush3.bf16.msra.mxu1 %v13552_v0  ;;  %v13669_v9 = vpack.c.bf16 %v6790_v40, %v6789_v32 }
0x1b4c   :  { %6342 = vmatprep.mubr.f32.mxu0 %v14436_v37  ;;  %10722 = vmatprep.mubr.msk.f32.mxu1 %vm11784_vm0, %v14436_v37  ;;  %14476 = vst [vmem:[#allocation7_spill] sm:$0xff] %v13597_v7  ;;  %14481 = vst [vmem:[#allocation12_spill] sm:$0xff] %v13647_v53 }
0x1b4d   :  { %11304 = vmatprep.subr.bf16.mxu0 %v13570_v39  ;;  %11312 = vmatprep.subr.bf16.mxu1 %v13572_v47  ;;  %14482 = vst [vmem:[#allocation15_spill] sm:$0xff] %v13669_v9 }
0x1b4e   :  { %10062 = vmatmul.mubr.msk.f32.vlgmr.msra.gmra.mrb[44].mxu0 %vm627_vm5, %v10055_v51  ;;  %10723 = vmatmul.mubr.msk.f32.vlgmr.msra.gmra.mrb[44].mxu1 %vm627_vm5, %v10055_v51  ;;  %v6499_v51 = vld [vmem:[%s14361_s12 + $0x48] sm:$0xff] }
0x1b4f   :  { %11306 = vmatpush1.bf16.msra.mxu0 %v13587_v61  ;;  %11314 = vmatpush1.bf16.msra.mxu1 %v13589_v26  ;;  %v13632_v42 = vpack.c.bf16 %v6499_v51, %v6494_v41  ;;  %v6787_v41 = vld [vmem:[%s14364_s14 + $0x10] sm:$0xff]  ;;  %v13689_v51 = vpack.c.bf16 %v6792_v36, %v6791_v11  ;;  %v6727_v36 = vld [vmem:[%s14365_s13] sm:$0x1f] }
0x1b50   :  { %11308 = vmatprep.subr.bf16.mxu0 %v13597_v7  ;;  %11316 = vmatprep.subr.bf16.mxu1 %v13599_v62  ;;  %v13694_v19 = vpack.c.bf16 %v6788_v16, %v6787_v41  ;;  %v6732_v41 = vrot.slane %v6727_v36, %v11937_v20  ;;  %v6740_v16 = vrot.slane %v6727_v36, %v14472_v21 }
0x1b51   :  { %6574 = vmatprep.mubr.f32.mxu0 %v14436_v37  ;;  %6645 = vmatprep.mubr.f32.mxu1 %v14436_v37  ;;  %14480 = vst [vmem:[#allocation13_spill] sm:$0xff] %v13632_v42  ;;  %14484 = vst [vmem:[#allocation16_spill] sm:$0xff] %v13689_v51  ;;  %v6736_v60 = vrot.slane %v6727_v36, %v11997_v1 }
0x1b52   :  { %14485 = vst [vmem:[#allocation18_spill] sm:$0xff] %v13694_v19 }
0x1b53   :  { %11310 = vmatpush1.bf16.msra.mxu0 %v13616_v8  ;;  %11318 = vmatpush1.bf16.msra.mxu1 %v13618_v44  ;;  %v6748_v8 = vrot.slane %v6727_v36, %v12365_v63 }
0x1b54   :  { %11319 = vmatprep.subr.bf16.mxu1 %v14437_v6  ;;  %11325 = vmatprep.subr.bf16.mxu0 %v14437_v6 }
0x1b56   :  { %10065 = vmatmul.mubr.msk.f32.vlgmr.msra.gmra.mrb[44].mxu0 %vm80_vm1, %v13283_v46  ;;  %10066 = vmatmul.mubr.msk.f32.vlgmr.msra.gmra.mrb[42].mxu1 %vm80_vm1, %v13283_v46 }
0x1b57   :  { %11321 = vmatpush3.bf16.msra.mxu1 %v13632_v42  ;;  %10733 = vmatprep.mubr.msk.f32.mxu1 %vm11784_vm0, %v14436_v37 }
0x1b58   :  { %11322 = vmatprep.subr.bf16.mxu1 %v14437_v6  ;;  %10744 = vmatprep.mubr.msk.f32.mxu0 %vm11784_vm0, %v14436_v37 }
0x1b59   :  { %11327 = vmatpush3.bf16.msra.mxu0 %v13669_v9 }
0x1b5a   :  { %11328 = vmatprep.subr.bf16.mxu0 %v14437_v6 }
0x1b5b   :  { %11324 = vmatpush3.bf16.msra.mxu1 %v13647_v53 }
0x1b5c   :  { %11331 = vmatprep.subr.bf16.mxu1 %v14437_v6 }
0x1b5d   :  { %11330 = vmatpush3.bf16.msra.mxu0 %v13689_v51 }
0x1b5e   :  { %10734 = vmatmul.mubr.msk.f32.vlgmr.msra.gmra.mrb[46].mxu1 %vm80_vm1, %v13283_v46  ;;  %v6786_v46 = vld [vmem:[%s14364_s14 + $0x8] sm:$0xff]  ;;  %11337 = vmatprep.subr.bf16.mxu0 %v14437_v6 }
0x1b5f   :  { %10755 = vmatprep.mubr.msk.f32.mxu1 %vm11784_vm0, %v14436_v37  ;;  %v13674_v35 = vpack.c.bf16 %v6786_v46, %v6785_v13 }
0x1b61   :  { %14483 = vst [vmem:[#allocation14_spill] sm:$0xff] %v13674_v35  ;;  %11333 = vmatpush3.bf16.msra.mxu1 %v13674_v35 }
0x1b62   :  { %11334 = vmatprep.subr.bf16.mxu1 %v14437_v6 }
0x1b65   :  { %11336 = vmatpush3.bf16.msra.mxu1 %v13694_v19 }
0x1b66   :  { %11346 = vmatprep.subr.bf16.mxu1 %v14437_v6 }
0x1c1d   :  { %v6271_v32 = vpop.f32.mrb[46].mxu0 }
0x1c1e   :  { %v10717_v40 = vpop.f32.mrb[47].mxu0 }
0x1c21   :  { %v6486_v13 = vpop.f32.mrb[44].mxu1 }
0x1c22   :  { %v6487_v46 = vadd.f32 %v6486_v13, %v6271_v32  ;;  %v10724_v11 = vpop.f32.mrb[45].mxu1  ;;  %v6744_v13 = vrot.slane %v6727_v36, %v12362_v22 }
0x1c29   :  { %v6576_v45 = vpop.f32.mrb[44].mxu0  ;;  %v6647_v19 = vpop.f32.mrb[42].mxu1 }
0x1c2a   :  { %v6754_v35 = vadd.f32 %v6732_v41, %v6576_v45  ;;  %v6756_v51 = vadd.f32 %v6740_v16, %v6647_v19  ;;  %v6578_v53 = vpop.f32.mrb[45].mxu0  ;;  %v6649_v9 = vpop.f32.mrb[43].mxu1 }
0x1c2b   :  { %v6755_v40 = vadd.f32 %v6736_v60, %v6578_v53  ;;  %v6757_v62 = vadd.f32 %v6744_v13, %v6649_v9  ;;  %v13763_v13 = vld [vmem:[%s14370_s16] ss:$0 sm:$0xff] }
0x1c2c   :  { %v10068_v42 = vmul.f32 -1.442695, %v6754_v35  ;;  %v10070_v9 = vmul.f32 -1.442695, %v6756_v51 }
0x1c2d   :  { %v10069_v32 = vmul.f32 -1.442695, %v6755_v40 }
0x1c2e   :  { %11705 = vpow2.f32 %v10068_v42 }
0x1c2f   :  { %11707 = vpow2.f32 %v10069_v32 }
0x1c30   :  { %11709 = vtanh.f32 %v6757_v62 }
0x1c31   :  { %v6718_v11 = vpop.f32.mrb[46].mxu1 }
0x1c32   :  { %v6726_v44 = vadd.f32 %v6718_v11, %v6487_v46  ;;  %v10735_v21 = vpop.f32.mrb[47].mxu1  ;;  %v6953_v46 = vld [vmem:[%s14368_s19] sm:$0xff] }
0x1c33   :  { %v6954_v21 = vld [vmem:[%s14368_s19 + $0x8] sm:$0xff] }
0x1c34   :  { %v6758_v7 = vadd.f32 %v6748_v8, %v6726_v44 }
0x1c36   :  { %11711 = vtanh.f32 %v6758_v7  ;;  %v13716_v7 = vpack.c.bf16 %v6954_v21, %v6953_v46 }
0x1c38   :  { %v11706_v26 = vpop.eup %11705 }
0x1c39   :  { %v6762_v61 = vadd.f32 1.0, %v11706_v26  ;;  %v11708_v45 = vpop.eup %11707 }
0x1c3a   :  { %v6768_v60 = vadd.f32 1.0, %v11708_v45  ;;  %v11710_v53 = vpop.eup %11709 }
0x1c3b   :  { %11713 = vrcp.f32 %v6762_v61 }
0x1c3c   :  { %11715 = vrcp.f32 %v6768_v60 }
0x1c3d   :  { %11717 = vpow2.f32 %v10070_v9 }
0x1c40   :  { %v11712_v42 = vpop.eup %11711 }
0x1c45   :  { %v11714_v35 = vpop.eup %11713 }
0x1c46   :  { %v6780_v19 = vmul.f32 %v11714_v35, %v11710_v53  ;;  %v6783_v41 = vmul.f32 %v11714_v35, %v11712_v42  ;;  %v11716_v26 = vpop.eup %11715 }
0x1c47   :  { %v6782_v62 = vmul.f32 %v11716_v26, %v13242_v4  ;;  %v6779_v61 = vmul.f32 %v11716_v26, %v13244_v58  ;;  %v6949_v4 = vld [vmem:[%s14369_s17] sm:$0xff]  ;;  %v6950_v58 = vld [vmem:[%s14369_s17 + $0x8] sm:$0xff]  ;;  %v11718_v36 = vpop.eup %11717 }
0x1c48   :  { %v6774_v16 = vadd.f32 1.0, %v11718_v36 }
0x1c49   :  { %v13718_v8 = vadd.f32 %v6783_v41, %v6782_v62  ;;  %v13720_v44 = vadd.f32 %v6780_v19, %v6779_v61 }
0x1c4a   :  { %11719 = vrcp.f32 %v6774_v16 }
0x1c4b   :  { %10745 = vmatmul.mubr.msk.f32.vlgmr.msra.gmra.mrb[48].mxu0 %vm80_vm1, %v13718_v8  ;;  %10756 = vmatmul.mubr.msk.f32.vlgmr.msra.gmra.mrb[48].mxu1 %vm80_vm1, %v13720_v44 }
0x1c4c   :  { %11339 = vmatpush3.bf16.msra.mxu0 %v13716_v7  ;;  %10762 = vmatprep.mubr.msk.f32.mxu0 %vm11784_vm0, %v14436_v37 }
0x1c4d   :  { %11340 = vmatprep.subr.bf16.mxu0 %v14437_v6  ;;  %11348 = vmatpush3.bf16.msra.mxu1 %v13272_v38  ;;  %v6951_v38 = vld [vmem:[%s14369_s17 + $0x10] sm:$0xff] }
0x1c4e   :  { %11349 = vmatprep.subr.bf16.mxu1 %v14437_v6  ;;  %10784 = vmatprep.mubr.msk.f32.mxu1 %vm11784_vm0, %v14436_v37 }
0x1c4f   :  { %10763 = vmatmul.mubr.msk.f32.vlgmr.msra.gmra.mrb[50].mxu0 %vm627_vm5, %v13478_v5  ;;  %v13749_v5 = vpack.c.bf16 %v6950_v58, %v6949_v4 }
0x1c50   :  { %10773 = vmatprep.mubr.msk.f32.mxu0 %vm11784_vm0, %v14436_v37 }
0x1c51   :  { %11351 = vmatpush3.bf16.msra.mxu1 %v13278_v55  ;;  %v6952_v55 = vld [vmem:[%s14369_s17 + $0x18] sm:$0xff]  ;;  %11342 = vmatpush3.bf16.msra.mxu0 %v13749_v5 }
0x1c52   :  { %11361 = vmatprep.subr.bf16.mxu1 %v13390_v2  ;;  %v13755_v2 = vpack.c.bf16 %v6952_v55, %v6951_v38  ;;  %11343 = vmatprep.subr.bf16.mxu0 %v14437_v6 }
0x1c54   :  { %v11720_v51 = vpop.eup %11719 }
0x1c55   :  { %11345 = vmatpush3.bf16.msra.mxu0 %v13755_v2 }
0x1c56   :  { %11353 = vmatprep.subr.bf16.mxu0 %v13367_v28 }
0x1d1e   :  { %v6862_v40 = vpop.f32.mrb[48].mxu0  ;;  %v6935_v32 = vpop.f32.mrb[48].mxu1 }
0x1d1f   :  { %v6936_v11 = vadd.f32 %v6935_v32, %v6862_v40  ;;  %v10746_v45 = vpop.f32.mrb[49].mxu0  ;;  %v10757_v60 = vpop.f32.mrb[49].mxu1 }
0x1d21   :  { %v6946_v53 = vadd.f32 %v13763_v13, %v6936_v11 }
0x1d22   :  { %v7042_v42 = vpop.f32.mrb[50].mxu0 }
0x1d23   :  { %11721 = vtanh.f32 %v6946_v53  ;;  %v10764_v28 = vpop.f32.mrb[51].mxu0 }
0x1d2d   :  { %v11722_v35 = vpop.eup %11721 }
0x1d2e   :  { %v13766_v19 = vmul.f32 %v11722_v35, %v11720_v51 }
0x1d30   :  { %10774 = vmatmul.mubr.msk.f32.vlgmr.msra.gmra.mrb[52].mxu0 %vm80_vm1, %v13766_v19  ;;  %10785 = vmatmul.mubr.msk.f32.vlgmr.msra.gmra.mrb[50].mxu1 %vm80_vm1, %v13766_v19 }
0x1d31   :  { %11355 = vmatpush1.bf16.msra.mxu0 %v13378_v25  ;;  %11363 = vmatpush1.bf16.msra.mxu1 %v13392_v24 }
0x1d32   :  { %11357 = vmatprep.subr.bf16.mxu0 %v13402_v31  ;;  %11365 = vmatprep.subr.bf16.mxu1 %v13426_v33 }
0x1d33   :  { %7539 = vmatprep.mubr.f32.mxu0 %v14436_v37  ;;  %7610 = vmatprep.mubr.f32.mxu1 %v14436_v37 }
0x1d35   :  { %11359 = vmatpush1.bf16.msra.mxu0 %v13414_v54  ;;  %11367 = vmatpush1.bf16.msra.mxu1 %v13428_v12 }
0x1d36   :  { %11368 = vmatprep.subr.bf16.mxu0 %v14437_v6  ;;  %11379 = vmatprep.subr.bf16.mxu1 %v13440_v49 }
0x1e03   :  { %v7115_v41 = vpop.f32.mrb[52].mxu0  ;;  %v7216_v25 = vpop.f32.mrb[50].mxu1 }
0x1e04   :  { %v13782_v46 = vadd.f32 %v7115_v41, %v7042_v42  ;;  %v7217_v24 = vadd.f32 %v13294_v43, %v7216_v25  ;;  %v10775_v31 = vpop.f32.mrb[53].mxu0  ;;  %v10786_v33 = vpop.f32.mrb[51].mxu1 }
0x1e06   :  { %v7231_v21 = vrot.slane %v7217_v24, %v11932_v15 }
0x1e08   :  { %v7232_v26 = vcombine.high %v7231_v21, %v7231_v21  ;;  %v7239_v62 = vrot.slane %v7231_v21, %v11932_v15 }
0x1e0a   :  { %v7246_v54 = vrot.slane %v7232_v26, %v11932_v15  ;;  %v7250_v12 = vrot.slane %v7239_v62, %v11937_v20 }
0x1e0c   :  { %v7258_v61 = vadd.f32 %v7250_v12, %v13304_v34  ;;  %v7257_v49 = vadd.f32 %v7250_v12, %v13309_v14  ;;  %v7254_v4 = vrot.slane %v7246_v54, %v11937_v20 }
0x1e0e   :  { %v7262_v58 = vmax.f32 %v7258_v61, 0.0  ;;  %v7261_v38 = vmax.f32 %v7257_v49, 0.0  ;;  %v7259_v43 = vadd.f32 %v7254_v4, %v13316_v59  ;;  %v7260_v55 = vadd.f32 %v7254_v4, %v13321_v30 }
0x1e10   :  { %v7273_v9 = vmul.f32 %v13329_v27, %v7262_v58  ;;  %v7272_v36 = vmul.f32 %v13329_v27, %v7261_v38  ;;  %v7263_v16 = vmax.f32 %v7259_v43, 0.0  ;;  %v7264_v14 = vmax.f32 %v7260_v55, 0.0 }
0x1e12   :  { %v7279_v40 = vsel %vm80_vm1, %v7273_v9, 0.0  ;;  %v7276_v32 = vsel %vm80_vm1, %v7272_v36, 0.0  ;;  %v7274_v34 = vmul.f32 %v13329_v27, %v7263_v16  ;;  %v7275_v59 = vmul.f32 %v13329_v27, %v7264_v14 }
0x1e13   :  { %7280 = vadd.xlane.f32.xlu0 %v7279_v40  ;;  %7277 = vadd.xlane.f32.xlu1 %v7276_v32 }
0x1e14   :  { %v7282_v11 = vsel %vm80_vm1, %v7274_v34, 0.0  ;;  %v7285_v30 = vsel %vm80_vm1, %v7275_v59, 0.0 }
0x1e17   :  { %7283 = vadd.xlane.f32.xlu0 %v7282_v11 }
0x1e1b   :  { %7286 = vadd.xlane.f32.xlu0 %v7285_v30 }
0x1ea0   :  { %v7281_v45 = vpop.xlane.xlu0 %7280  ;;  %v7278_v60 = vpop.xlane.xlu1 %7277 }
0x1ea1   :  { %v7299_v42 = vrot.slane %v7281_v45, %v11981_v50  ;;  %v7295_v28 = vrot.slane %v7278_v60, %v11984_v52 }
0x1ea3   :  { %v7300_v25 = vsel %vm237_vm2, %v7299_v42, %v7295_v28 }
0x1ea4   :  { %v7284_v53 = vpop.xlane.xlu0 %7283 }
0x1ea5   :  { %v7304_v35 = vrot.slane %v7284_v53, %v11984_v52 }
0x1ea8   :  { %v7287_v51 = vpop.xlane.xlu0 %7286 }
0x1ea9   :  { %v7308_v41 = vrot.slane %v7287_v51, %v11981_v50 }
0x1eab   :  { %v7309_v27 = vsel %vm237_vm2, %v7308_v41, %v7304_v35 }
0x1eac   :  { %v7310_v24 = vsel %vm248_vm3, %v7309_v27, %v7300_v25 }
0x1ead   :  { %v7312_v31 = vsel %vm251_vm4, %v7310_v24, -inf }
0x1eae   :  { %7313 = vmax.xlane.f32.xlu0 %v7312_v31 }
0x1f3b   :  { %v7314_v33 = vpop.xlane.xlu0 %7313 }
0x1f3c   :  { %v7319_v21 = vrot.slane %v7314_v33, %v11937_v20  ;;  %v7323_v26 = vrot.slane %v7314_v33, %v11997_v1 }
0x1f3e   :  { %v7326_v62 = vsub.f32 %v7278_v60, %v7319_v21  ;;  %v7327_v54 = vsub.f32 %v7281_v45, %v7319_v21  ;;  %v7328_v12 = vsub.f32 %v7284_v53, %v7323_v26  ;;  %v7329_v61 = vsub.f32 %v7287_v51, %v7323_v26 }
0x1f40   :  { %v7330_v49 = vmul.f32 1.442695, %v7326_v62  ;;  %v7332_v4 = vmul.f32 1.442695, %v7327_v54  ;;  %v7334_v58 = vmul.f32 1.442695, %v7328_v12 }
0x1f41   :  { %v7336_v38 = vmul.f32 1.442695, %v7329_v61 }
0x1f42   :  { %11723 = vpow2.f32 %v7330_v49 }
0x1f43   :  { %11725 = vpow2.f32 %v7332_v4 }
0x1f44   :  { %11727 = vpow2.f32 %v7334_v58 }
0x1f45   :  { %11729 = vpow2.f32 %v7336_v38 }
0x1f4c   :  { %v11724_v43 = vpop.eup %11723 }
0x1f4d   :  { %v11726_v55 = vpop.eup %11725  ;;  %7343 = vperm.xlu0 %11572, %v11724_v43  }
0x1f4e   :  { %7346 = vperm.xlu1 %11571, %v11726_v55   ;;  %v11728_v9 = vpop.eup %11727 }
0x1f4f   :  { %v11730_v36 = vpop.eup %11729 }
0x1f51   :  { %7349 = vperm.xlu0 %11572, %v11728_v9  }
0x1f52   :  { %7352 = vperm.xlu1 %11571, %v11730_v36  }
0x1fcc   :  { %v7344_v16 = vpop.permute.xlu0 %7343 }
0x1fcd   :  { %v7347_v40 = vpop.permute.xlu1 %7346  ;;  %v7357_v34 = vrot.slane %v7344_v16, %v11984_v52 }
0x1fce   :  { %v7361_v32 = vrot.slane %v7347_v40, %v11981_v50 }
0x1fd0   :  { %v7350_v14 = vpop.permute.xlu0 %7349  ;;  %v7362_v45 = vsel %vm237_vm2, %v7361_v32, %v7357_v34 }
0x1fd1   :  { %v7353_v11 = vpop.permute.xlu1 %7352  ;;  %v7366_v59 = vrot.slane %v7350_v14, %v11984_v52 }
0x1fd2   :  { %v7370_v30 = vrot.slane %v7353_v11, %v11981_v50 }
0x1fd4   :  { %v7371_v60 = vsel %vm237_vm2, %v7370_v30, %v7366_v59 }
0x1fd5   :  { %v7372_v53 = vsel %vm248_vm3, %v7371_v60, %v7362_v45 }
0x1fd6   :  { %v7374_v42 = vsel %vm251_vm4, %v7372_v53, 0.0 }
0x1fd7   :  { %7375 = vadd.xlane.f32.xlu0 %v7374_v42 }
0x2064   :  { %v7376_v28 = vpop.xlane.xlu0 %7375 }
0x2065   :  { %v7381_v51 = vrot.slane %v7376_v28, %v11937_v20  ;;  %v7385_v35 = vrot.slane %v7376_v28, %v11997_v1 }
0x2067   :  { %11731 = vrcp.f32 %v7381_v51 }
0x2068   :  { %11733 = vrcp.f32 %v7385_v35 }
0x2071   :  { %v11732_v41 = vpop.eup %11731 }
0x2072   :  { %v7389_v25 = vmul.f32 %v11732_v41, %v11724_v43  ;;  %v7390_v27 = vmul.f32 %v11732_v41, %v11726_v55  ;;  %v11734_v24 = vpop.eup %11733 }
0x2073   :  { %v7392_v31 = vmul.f32 %v11734_v24, %v11728_v9  ;;  %v7393_v33 = vmul.f32 %v11734_v24, %v11730_v36  ;;  %v14495_v24 = vld [vmem:[#allocation16_spill] sm:$0xff] }
0x2074   :  { %7400 = vperm.xlu1 %11571, %v7389_v25   ;;  %v10078_v25 = vld [vmem:[%s14362_s1 + $0xa] sm:$0x3] }
0x2078   :  { %7405 = vperm.xlu1 %11571, %v7390_v27   ;;  %v14494_v27 = vld [vmem:[#allocation12_spill] sm:$0xff] }
0x207c   :  { %7410 = vperm.xlu1 %11571, %v7392_v31   ;;  %v14496_v31 = vld [vmem:[#allocation14_spill] sm:$0xff] }
0x2080   :  { %7415 = vperm.xlu1 %11571, %v7393_v33   ;;  %v14497_v33 = vld [vmem:[#allocation18_spill] sm:$0xff] }
0x20f3   :  { %v7401_v21 = vpop.permute.xlu1 %7400 }
0x20f4   :  { %v7418_v26 = vmul.f32 %v7401_v21, %v13446_v48  ;;  %v8370_v54 = vrot.slane %v7401_v21, %v11984_v52 }
0x20f6   :  { %v7422_v49 = vsel %vm80_vm1, %v7418_v26, 0.0 }
0x20f7   :  { %v7406_v62 = vpop.permute.xlu1 %7405 }
0x20f8   :  { %v7419_v12 = vmul.f32 %v7406_v62, %v13451_v56  ;;  %v8374_v61 = vrot.slane %v7406_v62, %v11981_v50 }
0x20fa   :  { %v7423_v4 = vsel %vm80_vm1, %v7419_v12, 0.0  ;;  %v8375_v58 = vsel %vm237_vm2, %v8374_v61, %v8370_v54 }
0x20fb   :  { %v7424_v38 = vadd.f32 %v7423_v4, %v7422_v49  ;;  %v7411_v43 = vpop.permute.xlu1 %7410  ;;  %v14498_v49 = vld [vmem:[#allocation9_spill] sm:$0xff] }
0x20fc   :  { %v7420_v9 = vmul.f32 %v7411_v43, %v13463_v23  ;;  %v8379_v16 = vrot.slane %v7411_v43, %v11984_v52 }
0x20fd   :  { %v7425_v55 = vrot.slane %v7424_v38, 4 }
0x20fe   :  { %v7431_v32 = vsel %vm80_vm1, %v7420_v9, 0.0 }
0x20ff   :  { %v7426_v36 = vadd.f32 %v7425_v55, %v7424_v38  ;;  %v7416_v48 = vpop.permute.xlu1 %7415 }
0x2100   :  { %v7421_v40 = vmul.f32 %v7416_v48, %v13468_v17  ;;  %v8383_v56 = vrot.slane %v7416_v48, %v11981_v50 }
0x2101   :  { %v7427_v11 = vrot.slane %v7426_v36, 2 }
0x2102   :  { %v7432_v34 = vsel %vm80_vm1, %v7421_v40, 0.0  ;;  %v8384_v14 = vsel %vm237_vm2, %v8383_v56, %v8379_v16 }
0x2103   :  { %v7433_v59 = vadd.f32 %v7432_v34, %v7431_v32  ;;  %v13837_v30 = vsel %vm248_vm3, %v8384_v14, %v8375_v58  ;;  %v7428_v45 = vadd.f32 %v7427_v11, %v7426_v36 }
0x2105   :  { %v7434_v23 = vrot.slane %v7433_v59, 4  ;;  %v7429_v42 = vrot.slane %v7428_v45, 1 }
0x2107   :  { %v7435_v60 = vadd.f32 %v7434_v23, %v7433_v59  ;;  %v7430_v51 = vadd.f32 %v7429_v42, %v7428_v45 }
0x2109   :  { %v7436_v53 = vrot.slane %v7435_v60, 2 }
0x210b   :  { %v7437_v28 = vadd.f32 %v7436_v53, %v7435_v60 }
0x210d   :  { %v7438_v17 = vrot.slane %v7437_v28, 1 }
0x210f   :  { %v7439_v35 = vadd.f32 %v7438_v17, %v7437_v28 }
0x2111   :  { %v7472_v41 = vsel %vm248_vm3, %v7439_v35, %v7430_v51 }
0x2112   :  { %10082 = vmatmul.mubr.msk.f32.vlgmr.msra.gmra.mrb[54].mxu0 %vm80_vm1, %v7472_v41  ;;  %10083 = vmatmul.mubr.msk.f32.vlgmr.msra.gmra.mrb[52].mxu1 %vm80_vm1, %v7472_v41 }
0x2113   :  { %11370 = vmatpush3.bf16.msra.mxu0 %v13492_v57  ;;  %11381 = vmatpush1.bf16.msra.mxu1 %v13494_v3  ;;  %v14486_v57 = vld [vmem:[#allocation5_spill] sm:$0xff]  ;;  %v14487_v3 = vld [vmem:[#allocation4_spill] sm:$0xff] }
0x2114   :  { %11371 = vmatprep.subr.bf16.mxu0 %v14437_v6  ;;  %10795 = vmatprep.mubr.msk.f32.mxu0 %vm11784_vm0, %v14436_v37 }
0x2115   :  { %7825 = vmatprep.mubr.f32.mxu1 %v14436_v37  ;;  %11382 = vmatprep.subr.bf16.mxu1 %v14437_v6 }
0x2117   :  { %11373 = vmatpush3.bf16.msra.mxu0 %v13512_v10  ;;  %v14488_v10 = vld [vmem:[#allocation7_spill] sm:$0xff] }
0x2118   :  { %11375 = vmatprep.subr.bf16.mxu0 %v13521_v18  ;;  %v14489_v18 = vld [vmem:[#allocation6_spill] sm:$0xff] }
0x211a   :  { %10796 = vmatmul.mubr.msk.f32.vlgmr.msra.gmra.mrb[56].mxu0 %vm80_vm1, %v7472_v41  ;;  %10086 = vmatmul.mubr.msk.f32.vlgmr.msra.gmra.mrb[52].mxu1 %vm627_vm5, %v10078_v25 }
0x211b   :  { %11377 = vmatpush1.bf16.msra.mxu0 %v13547_v29  ;;  %11384 = vmatpush3.bf16.msra.mxu1 %v13552_v0  ;;  %v14490_v29 = vld [vmem:[#allocation8_spill] sm:$0xff]  ;;  %v14491_v0 = vld [vmem:[#allocation11_spill] sm:$0xff] }
0x211c   :  { %7754 = vmatprep.mubr.f32.mxu0 %v14436_v37  ;;  %10802 = vmatprep.mubr.msk.f32.mxu1 %vm11784_vm0, %v14436_v37 }
0x211d   :  { %11386 = vmatprep.subr.bf16.mxu0 %v13570_v39  ;;  %11394 = vmatprep.subr.bf16.mxu1 %v13572_v47  ;;  %v14492_v39 = vld [vmem:[#allocation13_spill] sm:$0xff]  ;;  %v14493_v47 = vld [vmem:[#allocation15_spill] sm:$0xff] }
0x211e   :  { %10085 = vmatmul.mubr.msk.f32.vlgmr.msra.gmra.mrb[54].mxu0 %vm627_vm5, %v10078_v25  ;;  %10803 = vmatmul.mubr.msk.f32.vlgmr.msra.gmra.mrb[54].mxu1 %vm627_vm5, %v10078_v25 }
0x211f   :  { %11388 = vmatpush1.bf16.msra.mxu0 %v14486_v57  ;;  %11396 = vmatpush1.bf16.msra.mxu1 %v14487_v3 }
0x2120   :  { %11390 = vmatprep.subr.bf16.mxu0 %v14488_v10  ;;  %11398 = vmatprep.subr.bf16.mxu1 %v14489_v18 }
0x2121   :  { %7986 = vmatprep.mubr.f32.mxu0 %v14436_v37  ;;  %8057 = vmatprep.mubr.f32.mxu1 %v14436_v37 }
0x2123   :  { %11392 = vmatpush1.bf16.msra.mxu0 %v14490_v29  ;;  %11400 = vmatpush1.bf16.msra.mxu1 %v14491_v0 }
0x2124   :  { %11401 = vmatprep.subr.bf16.mxu1 %v14437_v6  ;;  %11407 = vmatprep.subr.bf16.mxu0 %v14437_v6 }
0x2126   :  { %10088 = vmatmul.mubr.msk.f32.vlgmr.msra.gmra.mrb[54].mxu0 %vm80_vm1, %v13766_v19  ;;  %10089 = vmatmul.mubr.msk.f32.vlgmr.msra.gmra.mrb[52].mxu1 %vm80_vm1, %v13766_v19 }
0x2127   :  { %11403 = vmatpush3.bf16.msra.mxu1 %v14492_v39  ;;  %10813 = vmatprep.mubr.msk.f32.mxu1 %vm11784_vm0, %v14436_v37 }
0x2128   :  { %11404 = vmatprep.subr.bf16.mxu1 %v14437_v6  ;;  %11409 = vmatpush3.bf16.msra.mxu0 %v14493_v47 }
0x2129   :  { %11410 = vmatprep.subr.bf16.mxu0 %v14437_v6  ;;  %10824 = vmatprep.mubr.msk.f32.mxu0 %vm11784_vm0, %v14436_v37 }
0x212b   :  { %11406 = vmatpush3.bf16.msra.mxu1 %v14494_v27 }
0x212c   :  { %11413 = vmatprep.subr.bf16.mxu1 %v14437_v6  ;;  %11412 = vmatpush3.bf16.msra.mxu0 %v14495_v24 }
0x212d   :  { %11419 = vmatprep.subr.bf16.mxu0 %v14437_v6 }
0x212e   :  { %10814 = vmatmul.mubr.msk.f32.vlgmr.msra.gmra.mrb[56].mxu1 %vm80_vm1, %v13766_v19  ;;  %v8139_v19 = vld [vmem:[%s14365_s13] sm:$0x1f] }
0x212f   :  { %11415 = vmatpush3.bf16.msra.mxu1 %v14496_v31  ;;  %10835 = vmatprep.mubr.msk.f32.mxu1 %vm11784_vm0, %v14436_v37  ;;  %v8144_v61 = vrot.slane %v8139_v19, %v11937_v20  ;;  %v8152_v4 = vrot.slane %v8139_v19, %v14498_v49  ;;  %v8148_v58 = vrot.slane %v8139_v19, %v11997_v1 }
0x2130   :  { %11416 = vmatprep.subr.bf16.mxu1 %v14437_v6  ;;  %v8156_v32 = vrot.slane %v8139_v19, %v12362_v22  ;;  %v8160_v11 = vrot.slane %v8139_v19, %v12365_v63 }
0x2133   :  { %11418 = vmatpush3.bf16.msra.mxu1 %v14497_v33 }
0x2134   :  { %11428 = vmatprep.subr.bf16.mxu1 %v14437_v6 }
0x21ed   :  { %v7683_v21 = vpop.f32.mrb[56].mxu0 }
0x21ee   :  { %v10797_v26 = vpop.f32.mrb[57].mxu0 }
0x21f1   :  { %v7898_v62 = vpop.f32.mrb[54].mxu1 }
0x21f2   :  { %v7899_v54 = vadd.f32 %v7898_v62, %v7683_v21  ;;  %v10804_v12 = vpop.f32.mrb[55].mxu1 }
0x21f9   :  { %v7988_v38 = vpop.f32.mrb[54].mxu0  ;;  %v8059_v43 = vpop.f32.mrb[52].mxu1 }
0x21fa   :  { %v8166_v55 = vadd.f32 %v8144_v61, %v7988_v38  ;;  %v8168_v9 = vadd.f32 %v8152_v4, %v8059_v43  ;;  %v7990_v36 = vpop.f32.mrb[55].mxu0  ;;  %v8061_v48 = vpop.f32.mrb[53].mxu1 }
0x21fb   :  { %v8167_v16 = vadd.f32 %v8148_v58, %v7990_v36  ;;  %v8169_v23 = vadd.f32 %v8156_v32, %v8061_v48 }
0x21fc   :  { %v10091_v40 = vmul.f32 -1.442695, %v8166_v55 }
0x21fd   :  { %v10092_v56 = vmul.f32 -1.442695, %v8167_v16 }
0x21fe   :  { %11735 = vpow2.f32 %v10091_v40  ;;  %v8633_v40 = vld [vmem:[%s14426_s24 + $0x8] sm:$0xff] }
0x21ff   :  { %11737 = vpow2.f32 %v10092_v56  ;;  %v8632_v56 = vld [vmem:[%s14426_s24] sm:$0xff] }
0x2200   :  { %11739 = vtanh.f32 %v8169_v23 }
0x2201   :  { %v8130_v34 = vpop.f32.mrb[56].mxu1 }
0x2202   :  { %v8138_v14 = vadd.f32 %v8130_v34, %v7899_v54  ;;  %v10815_v59 = vpop.f32.mrb[57].mxu1 }
0x2204   :  { %v8170_v45 = vadd.f32 %v8160_v11, %v8138_v14  ;;  %v8634_v14 = vld [vmem:[%s14426_s24 + $0x10] sm:$0xff]  ;;  %v8635_v11 = vld [vmem:[%s14426_s24 + $0x18] sm:$0xff] }
0x2206   :  { %11741 = vtanh.f32 %v8170_v45 }
0x2208   :  { %v11736_v60 = vpop.eup %11735 }
0x2209   :  { %v8174_v53 = vadd.f32 1.0, %v11736_v60  ;;  %v11738_v42 = vpop.eup %11737  ;;  %v10104_v60 = vld [vmem:[%s14427_s30] ss:$0 sm:$0xff] }
0x220a   :  { %v8180_v28 = vadd.f32 1.0, %v11738_v42  ;;  %v11740_v17 = vpop.eup %11739 }
0x220b   :  { %11743 = vrcp.f32 %v8174_v53 }
0x220c   :  { %11745 = vrcp.f32 %v8180_v28 }
0x2210   :  { %v11742_v51 = vpop.eup %11741 }
0x2215   :  { %v11744_v35 = vpop.eup %11743 }
0x2216   :  { %v8192_v41 = vmul.f32 %v11744_v35, %v11740_v17  ;;  %v8195_v25 = vmul.f32 %v11744_v35, %v11742_v51  ;;  %v11746_v57 = vpop.eup %11745 }
0x2217   :  { %v8194_v3 = vmul.f32 %v11746_v57, %v13718_v8  ;;  %v8191_v10 = vmul.f32 %v11746_v57, %v13720_v44  ;;  %v8552_v8 = vld [vmem:[%s14423_s23 + $0x8] sm:$0xff]  ;;  %v8553_v44 = vld [vmem:[%s14423_s23 + $0x10] sm:$0xff] }
0x2219   :  { %v13909_v18 = vadd.f32 %v8195_v25, %v8194_v3  ;;  %v13911_v29 = vadd.f32 %v8192_v41, %v8191_v10 }
0x221b   :  { %10825 = vmatmul.mubr.msk.f32.vlgmr.msra.gmra.mrb[58].mxu0 %vm80_vm1, %v13909_v18  ;;  %10836 = vmatmul.mubr.msk.f32.vlgmr.msra.gmra.mrb[58].mxu1 %vm80_vm1, %v13911_v29 }
0x221c   :  { %11421 = vmatpush3.bf16.msra.mxu0 %v13716_v7  ;;  %10842 = vmatprep.mubr.msk.f32.mxu0 %vm11784_vm0, %v14436_v37  ;;  %v8551_v7 = vld [vmem:[%s14423_s23] sm:$0xff] }
0x221d   :  { %11422 = vmatprep.subr.bf16.mxu0 %v14437_v6  ;;  %10864 = vmatprep.mubr.msk.f32.mxu1 %vm11784_vm0, %v14436_v37 }
0x221f   :  { %10843 = vmatmul.mubr.msk.f32.vlgmr.msra.gmra.mrb[60].mxu0 %vm627_vm5, %v13837_v30  ;;  %v8554_v30 = vld [vmem:[%s14423_s23 + $0x18] sm:$0xff] }
0x2220   :  { %11424 = vmatpush3.bf16.msra.mxu0 %v13749_v5  ;;  %10853 = vmatprep.mubr.msk.f32.mxu0 %vm11784_vm0, %v14436_v37  ;;  %v11429_v5 = vpack.c.bf16 %v8552_v8, %v8551_v7  ;;  %v11432_v0 = vpack.c.bf16 %v8554_v30, %v8553_v44 }
0x2221   :  { %11425 = vmatprep.subr.bf16.mxu0 %v14437_v6 }
0x2222   :  { %11430 = vmatpush3.bf16.msra.mxu1 %v11429_v5 }
0x2223   :  { %11431 = vmatprep.subr.bf16.mxu1 %v14437_v6 }
0x2224   :  { %11427 = vmatpush3.bf16.msra.mxu0 %v13755_v2  ;;  %v10093_v2 = vmul.f32 -1.442695, %v8168_v9 }
0x2226   :  { %11433 = vmatpush3.bf16.msra.mxu1 %v11432_v0  ;;  %11747 = vpow2.f32 %v10093_v2 }
0x2230   :  { %v11748_v39 = vpop.eup %11747 }
0x2231   :  { %v8186_v47 = vadd.f32 1.0, %v11748_v39 }
0x2233   :  { %11749 = vrcp.f32 %v8186_v47 }
0x223d   :  { %v11750_v12 = vpop.eup %11749 }
0x22ee   :  { %v8274_v27 = vpop.f32.mrb[58].mxu0  ;;  %v8347_v24 = vpop.f32.mrb[58].mxu1 }
0x22ef   :  { %v8348_v31 = vadd.f32 %v8347_v24, %v8274_v27  ;;  %v10826_v33 = vpop.f32.mrb[59].mxu0  ;;  %v10837_v21 = vpop.f32.mrb[59].mxu1 }
0x22f1   :  { %v8358_v26 = vadd.f32 %v13763_v13, %v8348_v31  ;;  %v10102_v13 = vld [vmem:[%s14425_s21] ss:$0 sm:$0xff] }
0x22f2   :  { %v8454_v62 = vpop.f32.mrb[60].mxu0 }
0x22f3   :  { %11751 = vtanh.f32 %v8358_v26  ;;  %v10844_v54 = vpop.f32.mrb[61].mxu0 }
0x22fd   :  { %v11752_v19 = vpop.eup %11751 }
0x22fe   :  { %v13944_v61 = vmul.f32 %v11752_v19, %v11750_v12 }
0x2300   :  { %10854 = vmatmul.mubr.msk.f32.vlgmr.msra.gmra.mrb[62].mxu0 %vm80_vm1, %v13944_v61  ;;  %10865 = vmatmul.mubr.msk.f32.vlgmr.msra.gmra.mrb[60].mxu1 %vm80_vm1, %v13944_v61 }
0x2301   :  { %8951 = vmatprep.mubr.f32.mxu0 %v14436_v37  ;;  %9022 = vmatprep.mubr.f32.mxu1 %v14436_v37 }
0x23d3   :  { %v8527_v4 = vpop.f32.mrb[62].mxu0  ;;  %v8628_v58 = vpop.f32.mrb[60].mxu1 }
0x23d4   :  { %v13955_v38 = vadd.f32 %v8527_v4, %v8454_v62  ;;  %v8629_v43 = vadd.f32 %v10102_v13, %v8628_v58  ;;  %v10855_v55 = vpop.f32.mrb[63].mxu0  ;;  %v10866_v9 = vpop.f32.mrb[61].mxu1 }
0x23d6   :  { %v8643_v36 = vrot.slane %v8629_v43, %v11932_v15 }
0x23d8   :  { %v8644_v48 = vcombine.high %v8643_v36, %v8643_v36  ;;  %v8651_v16 = vrot.slane %v8643_v36, %v11932_v15 }
0x23da   :  { %v8658_v32 = vrot.slane %v8644_v48, %v11932_v15  ;;  %v8662_v34 = vrot.slane %v8651_v16, %v11937_v20 }
0x23dc   :  { %v8670_v59 = vadd.f32 %v8662_v34, %v8633_v40  ;;  %v8669_v23 = vadd.f32 %v8662_v34, %v8632_v56  ;;  %v8666_v45 = vrot.slane %v8658_v32, %v11937_v20 }
0x23de   :  { %v8674_v53 = vmax.f32 %v8670_v59, 0.0  ;;  %v8673_v15 = vmax.f32 %v8669_v23, 0.0  ;;  %v8671_v42 = vadd.f32 %v8666_v45, %v8634_v14  ;;  %v8672_v28 = vadd.f32 %v8666_v45, %v8635_v11 }
0x23e0   :  { %v8685_v17 = vmul.f32 %v10104_v60, %v8674_v53  ;;  %v8684_v51 = vmul.f32 %v10104_v60, %v8673_v15  ;;  %v8675_v35 = vmax.f32 %v8671_v42, 0.0  ;;  %v8676_v3 = vmax.f32 %v8672_v28, 0.0  ;;  %v7127_v28 = vld [vmem:[%s14371_s0] sm:$0x3] }
0x23e1   :  { %vm7128_vm6 = vcmp.gt.s32.totalorder %v7127_v28, 4  ;;  %v8855_v28 = vld [vmem:[%s14360_s10 + $0x18] sm:$0xff] }
0x23e2   :  { %v8691_v41 = vsel %vm80_vm1, %v8685_v17, 0.0  ;;  %v8688_v25 = vsel %vm80_vm1, %v8684_v51, 0.0  ;;  %v8686_v57 = vmul.f32 %v10104_v60, %v8675_v35  ;;  %v8687_v7 = vmul.f32 %v10104_v60, %v8676_v3 }
0x23e3   :  { %8692 = vadd.xlane.f32.xlu0 %v8691_v41  ;;  %8689 = vadd.xlane.f32.xlu1 %v8688_v25  ;;  %v14499_v17 = vmov 0   ;;  %v14007_v25 = vld [vmem:[%s14372_s18] ss:$0 sm:$0xff] }
0x23e4   :  { %v8694_v10 = vsel %vm80_vm1, %v8686_v57, 0.0  ;;  %v8697_v8 = vsel %vm80_vm1, %v8687_v7, 0.0  ;;  %v7129_v51 = vsel %vm7128_vm6, 1, %v14499_v17  ;;  %v7126_v3 = vadd.f32 %v14007_v25, %v13782_v46 }
0x23e7   :  { %8695 = vadd.xlane.f32.xlu0 %v8694_v10 }
0x23eb   :  { %8698 = vadd.xlane.f32.xlu0 %v8697_v8 }
0x2470   :  { %v8693_v44 = vpop.xlane.xlu0 %8692  ;;  %v8690_v5 = vpop.xlane.xlu1 %8689 }
0x2471   :  { %v8711_v0 = vrot.slane %v8693_v44, %v11981_v50  ;;  %v8707_v2 = vrot.slane %v8690_v5, %v11984_v52 }
0x2473   :  { %v8712_v24 = vsel %vm237_vm2, %v8711_v0, %v8707_v2  ;;  %v1480_v2 = vld [vmem:[%s14371_s0] sm:$0x3] }
0x2474   :  { %v8696_v30 = vpop.xlane.xlu0 %8695  ;;  %vm1481_vm8 = vcmp.gt.s32.totalorder %v1480_v2, 0 }
0x2475   :  { %v8716_v47 = vrot.slane %v8696_v30, %v11984_v52 }
0x2478   :  { %v8699_v39 = vpop.xlane.xlu0 %8698 }
0x2479   :  { %v8720_v27 = vrot.slane %v8699_v39, %v11981_v50 }
0x247b   :  { %v8721_v31 = vsel %vm237_vm2, %v8720_v27, %v8716_v47  ;;  %v1482_v47 = vsel %vm1481_vm8, 1, %v14499_v17  ;;  %v4303_v27 = vld [vmem:[%s14371_s0] sm:$0x3] }
0x247c   :  { %v8722_v33 = vsel %vm248_vm3, %v8721_v31, %v8712_v24  ;;  %vm4304_vm10 = vcmp.gt.s32.totalorder %v4303_v27, 2  ;;  %v5715_v31 = vld [vmem:[%s14371_s0] sm:$0x3] }
0x247d   :  { %v8724_v21 = vsel %vm251_vm4, %v8722_v33, -inf  ;;  %v8863_v33 = vld [vmem:[%s14358_s11 + $0x8] sm:$0xff]  ;;  %vm5716_vm11 = vcmp.gt.s32.totalorder %v5715_v31, 3 }
0x247e   :  { %8725 = vmax.xlane.f32.xlu0 %v8724_v21  ;;  %v8868_v21 = vld [vmem:[%s14358_s11 + $0x30] sm:$0xff] }
0x250b   :  { %v8726_v26 = vpop.xlane.xlu0 %8725 }
0x250c   :  { %v8731_v62 = vrot.slane %v8726_v26, %v11937_v20  ;;  %v8735_v54 = vrot.slane %v8726_v26, %v11997_v1  ;;  %v4305_v26 = vsel %vm4304_vm10, 1, %v14499_v17 }
0x250e   :  { %v8738_v12 = vsub.f32 %v8690_v5, %v8731_v62  ;;  %v8739_v19 = vsub.f32 %v8693_v44, %v8731_v62  ;;  %v8740_v13 = vsub.f32 %v8696_v30, %v8735_v54  ;;  %v8741_v4 = vsub.f32 %v8699_v39, %v8735_v54  ;;  %v2891_v39 = vld [vmem:[%s14371_s0] sm:$0x3] }
0x250f   :  { %vm2892_vm9 = vcmp.gt.s32.totalorder %v2891_v39, 1  ;;  %v11434_v62 = vpack.c.bf16 %v8868_v21, %v8863_v33  ;;  %v8862_v54 = vld [vmem:[%s14358_s11] sm:$0xff]  ;;  %v8808_v39 = vld [vmem:[%s14359_s2 + $0x10] sm:$0xff] }
0x2510   :  { %v8742_v58 = vmul.f32 1.442695, %v8738_v12  ;;  %v8744_v43 = vmul.f32 1.442695, %v8739_v19  ;;  %v8746_v55 = vmul.f32 1.442695, %v8740_v13 }
0x2511   :  { %v8748_v9 = vmul.f32 1.442695, %v8741_v4  ;;  %v2893_v24 = vsel %vm2892_vm9, 1, %v14499_v17  ;;  %v8867_v12 = vld [vmem:[%s14358_s11 + $0x28] sm:$0xff]  ;;  %v8865_v19 = vld [vmem:[%s14358_s11 + $0x18] sm:$0xff]  ;;  %v8870_v4 = vld [vmem:[%s14358_s11 + $0x40] sm:$0xff]  ;;  %11435 = vmatprep.subr.bf16.mxu0 %v11434_v62 }
0x2512   :  { %11753 = vpow2.f32 %v8742_v58  ;;  %v11436_v13 = vpack.c.bf16 %v8867_v12, %v8862_v54  ;;  %v8864_v58 = vld [vmem:[%s14358_s11 + $0x10] sm:$0xff] }
0x2513   :  { %11755 = vpow2.f32 %v8744_v43  ;;  %v8869_v43 = vld [vmem:[%s14358_s11 + $0x38] sm:$0xff] }
0x2514   :  { %11757 = vpow2.f32 %v8746_v55  ;;  %v8539_v55 = vld [vmem:[%s14371_s0] sm:$0x3]  ;;  %11437 = vmatpush1.bf16.msra.mxu0 %v11436_v13 }
0x2515   :  { %11759 = vpow2.f32 %v8748_v9  ;;  %v11442_v9 = vpack.c.bf16 %v8870_v4, %v8865_v19  ;;  %vm8540_vm12 = vcmp.gt.s32.totalorder %v8539_v55, 5 }
0x2517   :  { %11443 = vmatprep.subr.bf16.mxu1 %v11442_v9 }
0x251c   :  { %v11754_v36 = vpop.eup %11753 }
0x251d   :  { %v11756_v48 = vpop.eup %11755  ;;  %8755 = vperm.xlu0 %11572, %v11754_v36  }
0x251e   :  { %8758 = vperm.xlu1 %11571, %v11756_v48   ;;  %v11758_v16 = vpop.eup %11757 }
0x251f   :  { %v11760_v40 = vpop.eup %11759 }
0x2521   :  { %8761 = vperm.xlu0 %11572, %v11758_v16  }
0x2522   :  { %8764 = vperm.xlu1 %11571, %v11760_v40  }
0x259c   :  { %v8756_v56 = vpop.permute.xlu0 %8755 }
0x259d   :  { %v8759_v32 = vpop.permute.xlu1 %8758  ;;  %v8769_v14 = vrot.slane %v8756_v56, %v11984_v52 }
0x259e   :  { %v8773_v34 = vrot.slane %v8759_v32, %v11981_v50  ;;  %v8872_v32 = vld [vmem:[%s14358_s11 + $0x50] sm:$0xff] }
0x25a0   :  { %v8762_v11 = vpop.permute.xlu0 %8761  ;;  %v8774_v60 = vsel %vm237_vm2, %v8773_v34, %v8769_v14  ;;  %v8877_v34 = vld [vmem:[%s14358_s11 + $0x78] sm:$0xff]  ;;  %v8875_v14 = vld [vmem:[%s14358_s11 + $0x68] sm:$0xff] }
0x25a1   :  { %v8765_v59 = vpop.permute.xlu1 %8764  ;;  %v8778_v23 = vrot.slane %v8762_v11, %v11984_v52  ;;  %v11440_v11 = vpack.c.bf16 %v8877_v34, %v8872_v32 }
0x25a2   :  { %v8782_v45 = vrot.slane %v8765_v59, %v11981_v50  ;;  %v8880_v59 = vld [vmem:[%s14358_s11 + $0x90] sm:$0xff] }
0x25a4   :  { %v8783_v53 = vsel %vm237_vm2, %v8782_v45, %v8778_v23  ;;  %v8874_v23 = vld [vmem:[%s14358_s11 + $0x60] sm:$0xff]  ;;  %v8879_v45 = vld [vmem:[%s14358_s11 + $0x88] sm:$0xff] }
0x25a5   :  { %v8784_v15 = vsel %vm248_vm3, %v8783_v53, %v8774_v60  ;;  %v9951_v60 = vld [vmem:[%s14371_s0] sm:$0x3]  ;;  %v11446_v53 = vpack.c.bf16 %v8880_v59, %v8875_v14 }
0x25a6   :  { %v8786_v42 = vsel %vm251_vm4, %v8784_v15, 0.0  ;;  %v11448_v15 = vpack.c.bf16 %v8879_v45, %v8874_v23  ;;  %vm9952_vm13 = vcmp.gt.s32.totalorder %v9951_v60, 6  ;;  %v10030_v14 = vld [vmem:[%s14372_s18] ss:$0 sm:$0xff]  ;;  %v14502_v23 = vld [vmem:[#allocation17_spill] sm:$0xff] }
0x25a7   :  { %8787 = vadd.xlane.f32.xlu0 %v8786_v42  ;;  %v8541_v42 = vsel %vm8540_vm12, 1, %v14499_v17  ;;  %v4302_v45 = vadd.f32 %v10030_v14, %v14502_v23 }
0x25bd   :  { %7131 = vperm.xlu0 %11572, %v7129_v51   ;;  %v8860_v51 = vld [vmem:[%s14360_s10 + $0x40] sm:$0xff] }
0x2634   :  { %v8788_v35 = vpop.xlane.xlu0 %8787 }
0x2635   :  { %v8793_v41 = vrot.slane %v8788_v35, %v11937_v20  ;;  %v8797_v57 = vrot.slane %v8788_v35, %v11997_v1  ;;  %v9953_v35 = vsel %vm9952_vm13, 1, %v14499_v17 }
0x2637   :  { %11761 = vrcp.f32 %v8793_v41  ;;  %v11460_v41 = vpack.c.bf16 %v8860_v51, %v8855_v28  ;;  %v8871_v28 = vld [vmem:[%s14358_s11 + $0x48] sm:$0xff]  ;;  %v8854_v51 = vld [vmem:[%s14360_s10 + $0x10] sm:$0xff] }
0x2638   :  { %11763 = vrcp.f32 %v8797_v57  ;;  %v8806_v57 = vld [vmem:[%s14359_s2] sm:$0xff] }
0x263c   :  { %v7132_v10 = vpop.permute.xlu0 %7131 }
0x263d   :  { %vm7133_vm7 = vcmp.eq.s32.totalorder %v7132_v10, 1  ;;  %v8807_v10 = vld [vmem:[%s14359_s2 + $0x8] sm:$0xff] }
0x263e   :  { %v7134_v7 = vsel %vm7133_vm7, %v7126_v3, 0.0 }
0x263f   :  { %10077 = vst [vmem:[%s14373_s20 + $0x8] sm:$0x3] %v7134_v7 }
0x2641   :  { %v11762_v8 = vpop.eup %11761 }
0x2642   :  { %v8801_v44 = vmul.f32 %v11762_v8, %v11754_v36  ;;  %v8802_v5 = vmul.f32 %v11762_v8, %v11756_v48  ;;  %v11764_v30 = vpop.eup %11763  ;;  %v11444_v36 = vpack.c.bf16 %v8869_v43, %v8864_v58  ;;  %v8873_v48 = vld [vmem:[%s14358_s11 + $0x58] sm:$0xff]  ;;  %v14500_v58 = vld [vmem:[#allocation10_spill] sm:$0xff] }
0x2643   :  { %v8804_v0 = vmul.f32 %v11764_v30, %v11758_v16  ;;  %v8805_v46 = vmul.f32 %v11764_v30, %v11760_v40  ;;  %v8878_v16 = vld [vmem:[%s14358_s11 + $0x80] sm:$0xff]  ;;  %v5717_v40 = vsel %vm5716_vm11, 1, %v14499_v17 }
0x2644   :  { %8812 = vperm.xlu1 %11571, %v8801_v44   ;;  %v11438_v56 = vpack.c.bf16 %v8878_v16, %v8873_v48  ;;  %11445 = vmatpush1.bf16.msra.mxu1 %v11444_v36 }
0x2645   :  { %11447 = vmatprep.subr.bf16.mxu1 %v11446_v53 }
0x2646   :  { %11439 = vmatprep.subr.bf16.mxu0 %v11438_v56 }
0x2647   :  { %11441 = vmatpush1.bf16.msra.mxu0 %v11440_v11 }
0x2648   :  { %8817 = vperm.xlu1 %11571, %v8802_v5   ;;  %11450 = vmatprep.subr.bf16.mxu0 %v14437_v6 }
0x2649   :  { %11449 = vmatpush1.bf16.msra.mxu1 %v11448_v15 }
0x264a   :  { %11461 = vmatprep.subr.bf16.mxu1 %v11460_v41 }
0x264c   :  { %8822 = vperm.xlu1 %11571, %v8804_v0  }
0x2650   :  { %8827 = vperm.xlu1 %11571, %v8805_v46  }
0x2654   :  { %1484 = vperm.xlu1 %11571, %v1482_v47  }
0x2658   :  { %2895 = vperm.xlu1 %11571, %v2893_v24   ;;  %v8809_v24 = vld [vmem:[%s14359_s2 + $0x18] sm:$0xff] }
0x265c   :  { %4307 = vperm.xlu1 %11571, %v4305_v26   ;;  %v9985_v26 = vld [vmem:[%s14372_s18] ss:$0 sm:$0xff] }
0x265d   :  { %v1479_v43 = vadd.f32 %v9985_v26, %v14500_v58  ;;  %v10101_v58 = vld [vmem:[%s14362_s1 + $0xc] sm:$0x3] }
0x2660   :  { %5719 = vperm.xlu1 %11571, %v5717_v40  }
0x2664   :  { %8543 = vperm.xlu1 %11571, %v8541_v42   ;;  %v8866_v42 = vld [vmem:[%s14358_s11 + $0x20] sm:$0xff] }
0x2668   :  { %9955 = vperm.xlu1 %11571, %v9953_v35   ;;  %v8859_v35 = vld [vmem:[%s14360_s10 + $0x38] sm:$0xff] }
0x26c3   :  { %v8813_v3 = vpop.permute.xlu1 %8812 }
0x26c4   :  { %v8830_v7 = vmul.f32 %v8813_v3, %v8806_v57  ;;  %v9782_v44 = vrot.slane %v8813_v3, %v11984_v52  ;;  %v14503_v3 = vld [vmem:[#allocation3_spill] sm:$0xff] }
0x26c6   :  { %v8834_v17 = vsel %vm80_vm1, %v8830_v7, 0.0 }
0x26c7   :  { %v8818_v8 = vpop.permute.xlu1 %8817 }
0x26c8   :  { %v8831_v5 = vmul.f32 %v8818_v8, %v8807_v10  ;;  %v9786_v30 = vrot.slane %v8818_v8, %v11981_v50  ;;  %v5714_v10 = vadd.f32 %v10030_v14, %v14503_v3  ;;  %v9333_v3 = vld [vmem:[%s14361_s12 + $0x98] sm:$0xff] }
0x26ca   :  { %v8835_v0 = vsel %vm80_vm1, %v8831_v5, 0.0  ;;  %v9787_v2 = vsel %vm237_vm2, %v9786_v30, %v9782_v44  ;;  %v11451_v5 = vpack.c.bf16 %v8871_v28, %v8866_v42  ;;  %v11462_v30 = vpack.c.bf16 %v8859_v35, %v8854_v51  ;;  %v9318_v51 = vld [vmem:[%s14361_s12 + $0x20] sm:$0xff]  ;;  %v9323_v35 = vld [vmem:[%s14361_s12 + $0x48] sm:$0xff] }
0x26cb   :  { %v8836_v46 = vadd.f32 %v8835_v0, %v8834_v17  ;;  %v8823_v47 = vpop.permute.xlu1 %8822  ;;  %v8876_v17 = vld [vmem:[%s14358_s11 + $0x70] sm:$0xff]  ;;  %v8881_v0 = vld [vmem:[%s14358_s11 + $0x98] sm:$0xff] }
0x26cc   :  { %v8832_v31 = vmul.f32 %v8823_v47, %v8808_v39  ;;  %v9791_v62 = vrot.slane %v8823_v47, %v11984_v52  ;;  %v8853_v39 = vld [vmem:[%s14360_s10 + $0x8] sm:$0xff]  ;;  %v8858_v47 = vld [vmem:[%s14360_s10 + $0x30] sm:$0xff] }
0x26cd   :  { %v8837_v27 = vrot.slane %v8836_v46, 4 }
0x26ce   :  { %v8843_v19 = vsel %vm80_vm1, %v8832_v31, 0.0  ;;  %v11454_v31 = vpack.c.bf16 %v8881_v0, %v8876_v17  ;;  %v9615_v17 = vld [vmem:[%s14363_s15 + $0x10] sm:$0xff]  ;;  %v9616_v0 = vld [vmem:[%s14363_s15 + $0x18] sm:$0xff] }
0x26cf   :  { %v8838_v33 = vadd.f32 %v8837_v27, %v8836_v46  ;;  %v8828_v21 = vpop.permute.xlu1 %8827  ;;  %v8538_v27 = vadd.f32 %v14007_v25, %v13955_v38  ;;  %v8856_v38 = vld [vmem:[%s14360_s10 + $0x20] sm:$0xff]  ;;  %v8861_v25 = vld [vmem:[%s14360_s10 + $0x48] sm:$0xff] }
0x26d0   :  { %v8833_v54 = vmul.f32 %v8828_v21, %v8809_v24  ;;  %v9795_v12 = vrot.slane %v8828_v21, %v11981_v50  ;;  %v14501_v50 = vld [vmem:[#allocation2_spill] sm:$0xff]  ;;  %v11456_v21 = vpack.c.bf16 %v8858_v47, %v8853_v39  ;;  %v9612_v39 = vld [vmem:[%s14364_s14 + $0x18] sm:$0xff] }
0x26d1   :  { %v8839_v55 = vrot.slane %v8838_v33, 2  ;;  %v2890_v40 = vadd.f32 %v9985_v26, %v14501_v50  ;;  %v8857_v26 = vld [vmem:[%s14360_s10 + $0x28] sm:$0xff] }
0x26d2   :  { %v8844_v13 = vsel %vm80_vm1, %v8833_v54, 0.0  ;;  %v9796_v4 = vsel %vm237_vm2, %v9795_v12, %v9791_v62  ;;  %v9315_v54 = vld [vmem:[%s14361_s12 + $0x8] sm:$0xff]  ;;  %v9320_v12 = vld [vmem:[%s14361_s12 + $0x30] sm:$0xff] }
0x26d3   :  { %v8845_v9 = vadd.f32 %v8844_v13, %v8843_v19  ;;  %v1485_v36 = vpop.permute.xlu1 %1484  ;;  %v14121_v48 = vsel %vm248_vm3, %v9796_v4, %v9787_v2  ;;  %v8840_v56 = vadd.f32 %v8839_v55, %v8838_v33  ;;  %v8852_v33 = vld [vmem:[%s14360_s10] sm:$0xff]  ;;  %v9317_v19 = vld [vmem:[%s14361_s12 + $0x18] sm:$0xff]  ;;  %v11467_v50 = vpack.c.bf16 %v9320_v12, %v9315_v54 }
0x26d4   :  { %vm1486_vm14 = vcmp.eq.s32.totalorder %v1485_v36, 1  ;;  %v9322_v13 = vld [vmem:[%s14361_s12 + $0x40] sm:$0xff]  ;;  %v11458_v4 = vpack.c.bf16 %v8857_v26, %v8852_v33  ;;  %v9316_v36 = vld [vmem:[%s14361_s12 + $0x10] sm:$0xff] }
0x26d5   :  { %v8846_v16 = vrot.slane %v8845_v9, 4  ;;  %v1487_v52 = vsel %vm1486_vm14, %v1479_v43, 0.0  ;;  %v8841_v60 = vrot.slane %v8840_v56, 1  ;;  %v11465_v43 = vpack.c.bf16 %v8861_v25, %v8856_v38  ;;  %v9314_v55 = vld [vmem:[%s14361_s12] sm:$0xff] }
0x26d6   :  { %1488 = vst [vmem:[%s14373_s20] sm:$0x3] %v1487_v52  ;;  %v9325_v52 = vld [vmem:[%s14361_s12 + $0x58] sm:$0xff]  ;;  %v9551_v26 = vld [vmem:[%s14365_s13] sm:$0x1f] }
0x26d7   :  { %v8847_v32 = vadd.f32 %v8846_v16, %v8845_v9  ;;  %v2896_v34 = vpop.permute.xlu1 %2895  ;;  %v8842_v8 = vadd.f32 %v8841_v60, %v8840_v56  ;;  %v9319_v9 = vld [vmem:[%s14361_s12 + $0x28] sm:$0xff]  ;;  %v9321_v16 = vld [vmem:[%s14361_s12 + $0x38] sm:$0xff]  ;;  %v9330_v56 = vld [vmem:[%s14361_s12 + $0x80] sm:$0xff]  ;;  %v9556_v38 = vrot.slane %v9551_v26, %v11937_v20  ;;  %v9564_v25 = vrot.slane %v9551_v26, %v14498_v49 }
0x26d8   :  { %vm2897_vm15 = vcmp.eq.s32.totalorder %v2896_v34, 1  ;;  %v9332_v34 = vld [vmem:[%s14361_s12 + $0x90] sm:$0xff]  ;;  %v11469_v14 = vpack.c.bf16 %v9319_v9, %v9314_v55  ;;  %v11471_v23 = vpack.c.bf16 %v9330_v56, %v9325_v52  ;;  %v9329_v60 = vld [vmem:[%s14361_s12 + $0x78] sm:$0xff]  ;;  %v9572_v20 = vrot.slane %v9551_v26, %v12365_v63  ;;  %v9777_v63 = vld [vmem:[%s14368_s19] sm:$0xff] }
0x26d9   :  { %v8848_v11 = vrot.slane %v8847_v32, 2  ;;  %v2898_v59 = vsel %vm2897_vm15, %v2890_v40, 0.0  ;;  %v11475_v40 = vpack.c.bf16 %v9322_v13, %v9317_v19 }
0x26da   :  { %10008 = vst [vmem:[%s14373_s20 + $0x2] sm:$0x3] %v2898_v59  ;;  %v9324_v59 = vld [vmem:[%s14361_s12 + $0x50] sm:$0xff] }
0x26db   :  { %v8849_v53 = vadd.f32 %v8848_v11, %v8847_v32  ;;  %v4308_v15 = vpop.permute.xlu1 %4307  ;;  %v9327_v32 = vld [vmem:[%s14361_s12 + $0x68] sm:$0xff]  ;;  %v11477_v11 = vpack.c.bf16 %v9321_v16, %v9316_v36  ;;  %v11473_v42 = vpack.c.bf16 %v9329_v60, %v9324_v59  ;;  %v9568_v36 = vrot.slane %v9551_v26, %v12362_v22 }
0x26dc   :  { %vm4309_vm2 = vcmp.eq.s32.totalorder %v4308_v15, 1  ;;  %v9331_v15 = vld [vmem:[%s14361_s12 + $0x88] sm:$0xff] }
0x26dd   :  { %v8850_v41 = vrot.slane %v8849_v53, 1  ;;  %v4310_v57 = vsel %vm4309_vm2, %v4302_v45, 0.0  ;;  %v11479_v45 = vpack.c.bf16 %v9332_v34, %v9327_v32 }
0x26de   :  { %10031 = vst [vmem:[%s14373_s20 + $0x4] sm:$0x3] %v4310_v57  ;;  %v9328_v57 = vld [vmem:[%s14361_s12 + $0x70] sm:$0xff] }
0x26df   :  { %v5720_v7 = vpop.permute.xlu1 %5719  ;;  %v8851_v44 = vadd.f32 %v8850_v41, %v8849_v53  ;;  %v9326_v53 = vld [vmem:[%s14361_s12 + $0x60] sm:$0xff]  ;;  %v11484_v41 = vpack.c.bf16 %v9323_v35, %v9318_v51  ;;  %v9775_v35 = vld [vmem:[%s14369_s17 + $0x10] sm:$0xff] }
0x26e0   :  { %vm5721_vm4 = vcmp.eq.s32.totalorder %v5720_v7, 1  ;;  %v11481_v28 = vpack.c.bf16 %v9331_v15, %v9326_v53  ;;  %v9613_v7 = vld [vmem:[%s14363_s15] sm:$0xff] }
0x26e1   :  { %v5722_v2 = vsel %vm5721_vm4, %v5714_v10, 0.0  ;;  %v8884_v46 = vsel %vm248_vm3, %v8851_v44, %v8842_v8  ;;  %v11487_v10 = vpack.c.bf16 %v9333_v3, %v9328_v57  ;;  %v9614_v8 = vld [vmem:[%s14363_s15 + $0x8] sm:$0xff]  ;;  %v9609_v44 = vld [vmem:[%s14364_s14] sm:$0xff] }
0x26e2   :  { %10054 = vst [vmem:[%s14373_s20 + $0x6] sm:$0x3] %v5722_v2  ;;  %10105 = vmatmul.mubr.msk.f32.vlgmr.msra.gmra.mrb[64].mxu0 %vm80_vm1, %v8884_v46  ;;  %10106 = vmatmul.mubr.msk.f32.vlgmr.msra.gmra.mrb[62].mxu1 %vm80_vm1, %v8884_v46  ;;  %v9611_v2 = vld [vmem:[%s14364_s14 + $0x10] sm:$0xff] }
0x26e3   :  { %11452 = vmatpush3.bf16.msra.mxu0 %v11451_v5  ;;  %v8544_v24 = vpop.permute.xlu1 %8543  ;;  %11463 = vmatpush1.bf16.msra.mxu1 %v11462_v30  ;;  %v11490_v5 = vpack.c.bf16 %v9614_v8, %v9613_v7  ;;  %v11499_v47 = vpack.c.bf16 %v9612_v39, %v9611_v2 }
0x26e4   :  { %vm8545_vm3 = vcmp.eq.s32.totalorder %v8544_v24, 1  ;;  %11453 = vmatprep.subr.bf16.mxu0 %v14437_v6  ;;  %10875 = vmatprep.mubr.msk.f32.mxu0 %vm11784_vm0, %v14436_v37 }
0x26e5   :  { %v8546_v62 = vsel %vm8545_vm3, %v8538_v27, 0.0  ;;  %9237 = vmatprep.mubr.f32.mxu1 %v14436_v37  ;;  %11464 = vmatprep.subr.bf16.mxu1 %v14437_v6 }
0x26e6   :  { %10100 = vst [vmem:[%s14373_s20 + $0xa] sm:$0x3] %v8546_v62  ;;  %v9560_v62 = vrot.slane %v9551_v26, %v11997_v1 }
0x26e7   :  { %11455 = vmatpush3.bf16.msra.mxu0 %v11454_v31 }
0x26e8   :  { %11457 = vmatprep.subr.bf16.mxu0 %v11456_v21 }
0x26ea   :  { %10876 = vmatmul.mubr.msk.f32.vlgmr.msra.gmra.mrb[66].mxu0 %vm80_vm1, %v8884_v46  ;;  %10109 = vmatmul.mubr.msk.f32.vlgmr.msra.gmra.mrb[62].mxu1 %vm627_vm5, %v10101_v58  ;;  %v11493_v46 = vpack.c.bf16 %v9616_v0, %v9615_v17 }
0x26eb   :  { %11459 = vmatpush1.bf16.msra.mxu0 %v11458_v4  ;;  %11466 = vmatpush3.bf16.msra.mxu1 %v11465_v43 }
0x26ec   :  { %9166 = vmatprep.mubr.f32.mxu0 %v14436_v37  ;;  %10882 = vmatprep.mubr.msk.f32.mxu1 %vm11784_vm0, %v14436_v37 }
0x26ed   :  { %11468 = vmatprep.subr.bf16.mxu0 %v11467_v50  ;;  %11476 = vmatprep.subr.bf16.mxu1 %v11475_v40 }
0x26ee   :  { %10108 = vmatmul.mubr.msk.f32.vlgmr.msra.gmra.mrb[64].mxu0 %vm627_vm5, %v10101_v58  ;;  %10883 = vmatmul.mubr.msk.f32.vlgmr.msra.gmra.mrb[64].mxu1 %vm627_vm5, %v10101_v58 }
0x26ef   :  { %11470 = vmatpush1.bf16.msra.mxu0 %v11469_v14  ;;  %11478 = vmatpush1.bf16.msra.mxu1 %v11477_v11 }
0x26f0   :  { %11472 = vmatprep.subr.bf16.mxu0 %v11471_v23  ;;  %11480 = vmatprep.subr.bf16.mxu1 %v11479_v45  ;;  %v9778_v45 = vld [vmem:[%s14368_s19 + $0x8] sm:$0xff] }
0x26f1   :  { %9398 = vmatprep.mubr.f32.mxu0 %v14436_v37  ;;  %9469 = vmatprep.mubr.f32.mxu1 %v14436_v37 }
0x26f3   :  { %11474 = vmatpush1.bf16.msra.mxu0 %v11473_v42  ;;  %11482 = vmatpush1.bf16.msra.mxu1 %v11481_v28  ;;  %v11502_v42 = vpack.c.bf16 %v9778_v45, %v9777_v63 }
0x26f4   :  { %11483 = vmatprep.subr.bf16.mxu1 %v14437_v6  ;;  %11489 = vmatprep.subr.bf16.mxu0 %v14437_v6 }
0x26f6   :  { %10111 = vmatmul.mubr.msk.f32.vlgmr.msra.gmra.mrb[64].mxu0 %vm80_vm1, %v13944_v61  ;;  %10112 = vmatmul.mubr.msk.f32.vlgmr.msra.gmra.mrb[62].mxu1 %vm80_vm1, %v13944_v61 }
0x26f7   :  { %11485 = vmatpush3.bf16.msra.mxu1 %v11484_v41  ;;  %10893 = vmatprep.mubr.msk.f32.mxu1 %vm11784_vm0, %v14436_v37 }
0x26f8   :  { %11486 = vmatprep.subr.bf16.mxu1 %v14437_v6  ;;  %10904 = vmatprep.mubr.msk.f32.mxu0 %vm11784_vm0, %v14436_v37 }
0x26f9   :  { %11491 = vmatpush3.bf16.msra.mxu0 %v11490_v5 }
0x26fa   :  { %11492 = vmatprep.subr.bf16.mxu0 %v14437_v6 }
0x26fb   :  { %11488 = vmatpush3.bf16.msra.mxu1 %v11487_v10 }
0x26fc   :  { %11495 = vmatprep.subr.bf16.mxu1 %v14437_v6 }
0x26fd   :  { %11494 = vmatpush3.bf16.msra.mxu0 %v11493_v46 }
0x26fe   :  { %10894 = vmatmul.mubr.msk.f32.vlgmr.msra.gmra.mrb[66].mxu1 %vm80_vm1, %v13944_v61  ;;  %v9610_v61 = vld [vmem:[%s14364_s14 + $0x8] sm:$0xff]  ;;  %11501 = vmatprep.subr.bf16.mxu0 %v14437_v6 }
0x26ff   :  { %10915 = vmatprep.mubr.msk.f32.mxu1 %vm11784_vm0, %v14436_v37  ;;  %v11496_v30 = vpack.c.bf16 %v9610_v61, %v9609_v44  ;;  %v10119_v44 = vld [vmem:[%s14370_s16] ss:$0 sm:$0xff] }
0x2701   :  { %11497 = vmatpush3.bf16.msra.mxu1 %v11496_v30 }
0x2702   :  { %11498 = vmatprep.subr.bf16.mxu1 %v14437_v6 }
0x2705   :  { %11500 = vmatpush3.bf16.msra.mxu1 %v11499_v47 }
0x27bd   :  { %v9095_v27 = vpop.f32.mrb[66].mxu0 }
0x27be   :  { %v10877_v24 = vpop.f32.mrb[67].mxu0 }
0x27bf   :  { %v9956_v24 = vpop.permute.xlu1 %9955 }
0x27c1   :  { %v9310_v31 = vpop.f32.mrb[64].mxu1 }
0x27c2   :  { %v9311_v33 = vadd.f32 %v9310_v31, %v9095_v27  ;;  %v10884_v21 = vpop.f32.mrb[65].mxu1  ;;  %v10122_v27 = vld [vmem:[%s14372_s18] ss:$0 sm:$0xff] }
0x27c9   :  { %v9400_v54 = vpop.f32.mrb[64].mxu0  ;;  %v9471_v12 = vpop.f32.mrb[62].mxu1 }
0x27ca   :  { %v9578_v19 = vadd.f32 %v9556_v38, %v9400_v54  ;;  %v9580_v13 = vadd.f32 %v9564_v25, %v9471_v12  ;;  %v9402_v4 = vpop.f32.mrb[65].mxu0  ;;  %v9473_v58 = vpop.f32.mrb[63].mxu1 }
0x27cb   :  { %v9579_v43 = vadd.f32 %v9560_v62, %v9402_v4  ;;  %v9581_v50 = vadd.f32 %v9568_v36, %v9473_v58 }
0x27cc   :  { %v10114_v55 = vmul.f32 -1.442695, %v9578_v19 }
0x27cd   :  { %v10115_v9 = vmul.f32 -1.442695, %v9579_v43 }
0x27ce   :  { %11765 = vpow2.f32 %v10114_v55 }
0x27cf   :  { %11767 = vpow2.f32 %v10115_v9 }
0x27d0   :  { %11769 = vtanh.f32 %v9581_v50 }
0x27d1   :  { %v9542_v16 = vpop.f32.mrb[66].mxu1 }
0x27d2   :  { %v9550_v52 = vadd.f32 %v9542_v16, %v9311_v33  ;;  %v10895_v49 = vpop.f32.mrb[67].mxu1 }
0x27d4   :  { %v9582_v1 = vadd.f32 %v9572_v20, %v9550_v52 }
0x27d6   :  { %11771 = vtanh.f32 %v9582_v1 }
0x27d8   :  { %v11766_v40 = vpop.eup %11765 }
0x27d9   :  { %v9586_v56 = vadd.f32 1.0, %v11766_v40  ;;  %v11768_v32 = vpop.eup %11767 }
0x27da   :  { %v9592_v34 = vadd.f32 1.0, %v11768_v32  ;;  %v11770_v14 = vpop.eup %11769 }
0x27db   :  { %11773 = vrcp.f32 %v9586_v56 }
0x27dc   :  { %11775 = vrcp.f32 %v9592_v34 }
0x27e0   :  { %v11772_v11 = vpop.eup %11771 }
0x27e5   :  { %v11774_v59 = vpop.eup %11773 }
0x27e6   :  { %v9604_v23 = vmul.f32 %v11774_v59, %v11770_v14  ;;  %v9607_v22 = vmul.f32 %v11774_v59, %v11772_v11  ;;  %v11776_v60 = vpop.eup %11775 }
0x27e7   :  { %v9606_v53 = vmul.f32 %v11776_v60, %v13909_v18  ;;  %v9603_v15 = vmul.f32 %v11776_v60, %v13911_v29  ;;  %v9773_v18 = vld [vmem:[%s14369_s17] sm:$0xff]  ;;  %v9774_v29 = vld [vmem:[%s14369_s17 + $0x8] sm:$0xff] }
0x27e8   :  { %v11505_v41 = vpack.c.bf16 %v9774_v29, %v9773_v18 }
0x27e9   :  { %v9608_v28 = vadd.f32 %v9607_v22, %v9606_v53  ;;  %v9605_v51 = vadd.f32 %v9604_v23, %v9603_v15 }
0x27eb   :  { %10905 = vmatmul.mubr.msk.f32.vlgmr.msra.gmra.mrb[68].mxu0 %vm80_vm1, %v9608_v28  ;;  %10916 = vmatmul.mubr.msk.f32.vlgmr.msra.gmra.mrb[68].mxu1 %vm80_vm1, %v9605_v51 }
0x27ec   :  { %11503 = vmatpush3.bf16.msra.mxu0 %v11502_v42  ;;  %10922 = vmatprep.mubr.msk.f32.mxu0 %vm11784_vm0, %v14436_v37 }
0x27ed   :  { %11504 = vmatprep.subr.bf16.mxu0 %v14437_v6 }
0x27ef   :  { %10923 = vmatmul.mubr.msk.f32.vlgmr.msra.gmra.mrb[70].mxu0 %vm627_vm5, %v14121_v48  ;;  %v9776_v48 = vld [vmem:[%s14369_s17 + $0x18] sm:$0xff] }
0x27f0   :  { %10933 = vmatprep.mubr.msk.f32.mxu0 %vm11784_vm0, %v14436_v37  ;;  %11506 = vmatpush3.bf16.msra.mxu0 %v11505_v41  ;;  %v11508_v57 = vpack.c.bf16 %v9776_v48, %v9775_v35  ;;  %v10116_v37 = vmul.f32 -1.442695, %v9580_v13  ;;  %vm9957_vm0 = vcmp.eq.s32.totalorder %v9956_v24, 1 }
0x27f1   :  { %11507 = vmatprep.subr.bf16.mxu0 %v14437_v6 }
0x27f2   :  { %11777 = vpow2.f32 %v10116_v37 }
0x27f4   :  { %11509 = vmatpush3.bf16.msra.mxu0 %v11508_v57 }
0x27fc   :  { %v11778_v3 = vpop.eup %11777 }
0x27fd   :  { %v9598_v10 = vadd.f32 1.0, %v11778_v3 }
0x27ff   :  { %11779 = vrcp.f32 %v9598_v10 }
0x2809   :  { %v11780_v6 = vpop.eup %11779 }
0x28be   :  { %v9686_v7 = vpop.f32.mrb[68].mxu0  ;;  %v9759_v8 = vpop.f32.mrb[68].mxu1 }
0x28bf   :  { %v9760_v5 = vadd.f32 %v9759_v8, %v9686_v7  ;;  %v10906_v61 = vpop.f32.mrb[69].mxu0  ;;  %v10917_v30 = vpop.f32.mrb[69].mxu1 }
0x28c1   :  { %v9770_v17 = vadd.f32 %v10119_v44, %v9760_v5 }
0x28c2   :  { %v9866_v0 = vpop.f32.mrb[70].mxu0 }
0x28c3   :  { %11781 = vtanh.f32 %v9770_v17  ;;  %v10924_v2 = vpop.f32.mrb[71].mxu0 }
0x28cd   :  { %v11782_v46 = vpop.eup %11781 }
0x28ce   :  { %v9772_v39 = vmul.f32 %v11782_v46, %v11780_v6 }
0x28d0   :  { %10934 = vmatmul.mubr.msk.f32.vlgmr.msra.gmra.mrb[72].mxu0 %vm80_vm1, %v9772_v39 }
0x29a3   :  { %v9939_v47 = vpop.f32.mrb[72].mxu0 }
0x29a4   :  { %v9940_v31 = vadd.f32 %v9939_v47, %v9866_v0  ;;  %v10935_v33 = vpop.f32.mrb[73].mxu0 }
0x29a6   :  { %v9950_v21 = vadd.f32 %v10122_v27, %v9940_v31 }
0x29a8   :  { %v9958_v26 = vsel %vm9957_vm0, %v9950_v21, 0.0 }
0x29a9   :  { %10123 = vst [vmem:[%s14373_s20 + $0xc] sm:$0x3] %v9958_v26 }

</bundles_post_ra>
